<compile_context>
chip_gen: v5e
topology: v5e:2x2
jax: 0.10.0
libtpu: 0.0.40
codegen_flags: <defaults>
</compile_context>

<pallas_src>
import jax
import jax.numpy as jnp
from jax.experimental import pallas as pl
from jax.experimental.pallas import tpu as pltpu


def rnn_linear_kernel(x_ref, wih_ref, whh_ref, b_ref, wlin_ref, blin_ref, out_ref):
    """One batch tile of the fused RNN + Linear forward.

    x_ref    : [L, C, Bb]  VMEM  input, batch on lanes
    wih_ref  : [C, C]      SMEM  W_ih
    whh_ref  : [C, C]      SMEM  W_hh
    b_ref    : [C]         SMEM  b_ih + b_hh (combined)
    wlin_ref : [P, L]      SMEM  Linear weight (seq_len -> pred_len)
    blin_ref : [P]         SMEM  Linear bias
    out_ref  : [P, C, Bb]  VMEM  output, batch on lanes
    """
    L, C, Bb = x_ref.shape
    P = out_ref.shape[0]
    f32 = jnp.float32

    # Hoist the tiny weight scalars out of the unrolled loops (SMEM scalar reads).
    wih = [[wih_ref[c, j] for j in range(C)] for c in range(C)]
    whh = [[whh_ref[c, j] for j in range(C)] for c in range(C)]

    # ---- hoisted input projection (off the serial recurrence chain) ----------
    # xp[c][t, :] = (b_ih + b_hh)[c] + sum_j W_ih[c, j] * x[t, j, :]
    xj = [x_ref[:, j, :] for j in range(C)]              # C loads of [L, Bb]
    xp = []
    for c in range(C):
        acc = b_ref[c] + jnp.zeros((L, Bb), f32)
        for j in range(C):
            acc = acc + wih[c][j] * xj[j]                 # scalar-splat FMA (VPU)
        xp.append(acc)

    # ---- fused Linear accumulators: bias folded into the init ----------------
    y = [blin_ref[p] + jnp.zeros((C, Bb), f32) for p in range(P)]

    # ---- recurrence: h kept as C vreg-resident rows of [1, Bb] ---------------
    h = [jnp.zeros((1, Bb), f32) for _ in range(C)]
    for t in range(L):
        new_h = []
        for c in range(C):
            pre = xp[c][t:t + 1, :]                       # [1, Bb] static slice
            if t > 0:                                     # h == 0 at t == 0
                for j in range(C):
                    pre = pre + whh[c][j] * h[j]          # scalar-splat FMA (VPU)
            new_h.append(jnp.tanh(pre))                   # EUP
        h = new_h

        # Fused Linear over the time axis (independent of the serial chain):
        h_stack = jnp.concatenate(h, axis=0)              # [C, Bb]
        for p in range(P):
            y[p] = y[p] + wlin_ref[p, t] * h_stack        # scalar-splat FMA (VPU)

    # ---- lane-dense stores ----------------------------------------------------
    for p in range(P):
        out_ref[p] = y[p]


def _pick_batch_block(batch, target=128):
    """Largest multiple of 128 dividing `batch` and <= target, else the whole batch.

    (A BlockSpec's last block dim must be a multiple of 128 or span the full dim.)
    """
    best = None
    m = 128
    while m <= min(batch, target):
        if batch % m == 0:
            best = m
        m += 128
    return best if best is not None else batch


def rnn_model_forward(x, w_ih, w_hh, b_ih, b_hh, w_lin, b_lin, pred_len,
                      batch_block=128):
    """x: [B, L, C] (batch_first, as in the PyTorch module). Returns [B, pred_len, C]."""
    B, L, C = x.shape
    P = pred_len

    bb = _pick_batch_block(B, batch_block)
    nb = B // bb

    # Wrapper-side layout plumbing: put batch on the lane axis.
    x_t = jnp.transpose(x.astype(jnp.float32), (1, 2, 0))       # [L, C, B]
    b_comb = (b_ih + b_hh).astype(jnp.float32)                   # [C]

    smem = pl.BlockSpec(memory_space=pltpu.MemorySpace.SMEM)

    out = pl.pallas_call(
        rnn_linear_kernel,
        out_shape=jax.ShapeDtypeStruct((P, C, B), jnp.float32),
        grid=(nb,),
        in_specs=[
            pl.BlockSpec((L, C, bb), lambda i: (0, 0, i)),       # x batch tile
            smem,                                                # W_ih
            smem,                                                # W_hh
            smem,                                                # b_ih + b_hh
            smem,                                                # W_lin
            smem,                                                # b_lin
        ],
        out_specs=pl.BlockSpec((P, C, bb), lambda i: (0, 0, i)),
        compiler_params=pltpu.CompilerParams(
            dimension_semantics=("parallel",),                   # batch tiles -> cores
        ),
    )(x_t, w_ih.astype(jnp.float32), w_hh.astype(jnp.float32), b_comb,
      w_lin.astype(jnp.float32), b_lin.astype(jnp.float32))

    # [P, C, B] -> [B, P, C]
    return jnp.transpose(out, (2, 0, 1))


def reference_forward(x, w_ih, w_hh, b_ih, b_hh, w_lin, b_lin):
    """Pure-JAX reference matching torch nn.RNN (tanh) + Linear semantics."""
    B, L, C = x.shape
    h = jnp.zeros((B, C), jnp.float32)
    outs = []
    for t in range(L):
        h = jnp.tanh(x[:, t, :] @ w_ih.T + b_ih + h @ w_hh.T + b_hh)
        outs.append(h)
    seq = jnp.stack(outs, axis=1)                # [B, L, C]
    seq_p = jnp.transpose(seq, (0, 2, 1))        # [B, C, L]
    y = seq_p @ w_lin.T + b_lin                  # [B, C, P]
    return jnp.transpose(y, (0, 2, 1))           # [B, P, C]


if __name__ == "__main__":
    # Small config consistent with the module: seq_len=8, pred_len=12, enc_in=4, batch=2
    B, L, C, P = 2, 8, 4, 12

    key = jax.random.PRNGKey(0)
    k_x, k_wih, k_whh, k_bih, k_bhh, k_wl, k_bl = jax.random.split(key, 7)

    scale = 1.0 / jnp.sqrt(C)
    x = jax.random.normal(k_x, (B, L, C), jnp.float32)
    w_ih = jax.random.uniform(k_wih, (C, C), jnp.float32, -scale, scale)
    w_hh = jax.random.uniform(k_whh, (C, C), jnp.float32, -scale, scale)
    b_ih = jax.random.uniform(k_bih, (C,), jnp.float32, -scale, scale)
    b_hh = jax.random.uniform(k_bhh, (C,), jnp.float32, -scale, scale)
    lin_scale = 1.0 / jnp.sqrt(L)
    w_lin = jax.random.uniform(k_wl, (P, L), jnp.float32, -lin_scale, lin_scale)
    b_lin = jax.random.uniform(k_bl, (P,), jnp.float32, -lin_scale, lin_scale)

    out = rnn_model_forward(x, w_ih, w_hh, b_ih, b_hh, w_lin, b_lin, P)
    out = jax.block_until_ready(out)

    ref = reference_forward(x, w_ih, w_hh, b_ih, b_hh, w_lin, b_lin)
    assert out.shape == (B, P, C), out.shape
    err = float(jnp.max(jnp.abs(out - ref)))
    assert err < 1e-5, err

    print("KERNEL_OK")
</pallas_src>

<mosaic_0001>
module attributes {stable_mosaic.version = 11 : i64} {
  func.func @rnn_linear_kernel(%arg0: i32, %arg1: memref<8x4x2xf32, #tpu.memory_space<vmem>>, %arg2: memref<4x4xf32, #tpu.memory_space<smem>>, %arg3: memref<4x4xf32, #tpu.memory_space<smem>>, %arg4: memref<4xf32, #tpu.memory_space<smem>>, %arg5: memref<12x8xf32, #tpu.memory_space<smem>>, %arg6: memref<12xf32, #tpu.memory_space<smem>>, %arg7: memref<12x4x2xf32, #tpu.memory_space<vmem>>) attributes {dimension_semantics = [#tpu.dimension_semantics<parallel>], iteration_bounds = array<i64: 1>, scalar_prefetch = 0 : i64, scratch_operands = 0 : i64, tpu.core_type = #tpu.core_type<tc>, window_params = [{transform_indices = @transform_0, window_bounds = array<i64: 8, 4, 2>}, {transform_indices = @transform_1, window_bounds = array<i64: 4, 4>}, {transform_indices = @transform_2, window_bounds = array<i64: 4, 4>}, {transform_indices = @transform_3, window_bounds = array<i64: 4>}, {transform_indices = @transform_4, window_bounds = array<i64: 12, 8>}, {transform_indices = @transform_5, window_bounds = array<i64: 12>}, {transform_indices = @transform_6, window_bounds = array<i64: 12, 4, 2>}]} {
    %c0 = arith.constant 0 : index
    %c0_0 = arith.constant 0 : index
    %0 = memref.load %arg2[%c0, %c0_0] : memref<4x4xf32, #tpu.memory_space<smem>>
    %c0_1 = arith.constant 0 : index
    %c1 = arith.constant 1 : index
    %1 = memref.load %arg2[%c0_1, %c1] : memref<4x4xf32, #tpu.memory_space<smem>>
    %c0_2 = arith.constant 0 : index
    %c2 = arith.constant 2 : index
    %2 = memref.load %arg2[%c0_2, %c2] : memref<4x4xf32, #tpu.memory_space<smem>>
    %c0_3 = arith.constant 0 : index
    %c3 = arith.constant 3 : index
    %3 = memref.load %arg2[%c0_3, %c3] : memref<4x4xf32, #tpu.memory_space<smem>>
    %c1_4 = arith.constant 1 : index
    %c0_5 = arith.constant 0 : index
    %4 = memref.load %arg2[%c1_4, %c0_5] : memref<4x4xf32, #tpu.memory_space<smem>>
    %c1_6 = arith.constant 1 : index
    %c1_7 = arith.constant 1 : index
    %5 = memref.load %arg2[%c1_6, %c1_7] : memref<4x4xf32, #tpu.memory_space<smem>>
    %c1_8 = arith.constant 1 : index
    %c2_9 = arith.constant 2 : index
    %6 = memref.load %arg2[%c1_8, %c2_9] : memref<4x4xf32, #tpu.memory_space<smem>>
    %c1_10 = arith.constant 1 : index
    %c3_11 = arith.constant 3 : index
    %7 = memref.load %arg2[%c1_10, %c3_11] : memref<4x4xf32, #tpu.memory_space<smem>>
    %c2_12 = arith.constant 2 : index
    %c0_13 = arith.constant 0 : index
    %8 = memref.load %arg2[%c2_12, %c0_13] : memref<4x4xf32, #tpu.memory_space<smem>>
    %c2_14 = arith.constant 2 : index
    %c1_15 = arith.constant 1 : index
    %9 = memref.load %arg2[%c2_14, %c1_15] : memref<4x4xf32, #tpu.memory_space<smem>>
    %c2_16 = arith.constant 2 : index
    %c2_17 = arith.constant 2 : index
    %10 = memref.load %arg2[%c2_16, %c2_17] : memref<4x4xf32, #tpu.memory_space<smem>>
    %c2_18 = arith.constant 2 : index
    %c3_19 = arith.constant 3 : index
    %11 = memref.load %arg2[%c2_18, %c3_19] : memref<4x4xf32, #tpu.memory_space<smem>>
    %c3_20 = arith.constant 3 : index
    %c0_21 = arith.constant 0 : index
    %12 = memref.load %arg2[%c3_20, %c0_21] : memref<4x4xf32, #tpu.memory_space<smem>>
    %c3_22 = arith.constant 3 : index
    %c1_23 = arith.constant 1 : index
    %13 = memref.load %arg2[%c3_22, %c1_23] : memref<4x4xf32, #tpu.memory_space<smem>>
    %c3_24 = arith.constant 3 : index
    %c2_25 = arith.constant 2 : index
    %14 = memref.load %arg2[%c3_24, %c2_25] : memref<4x4xf32, #tpu.memory_space<smem>>
    %c3_26 = arith.constant 3 : index
    %c3_27 = arith.constant 3 : index
    %15 = memref.load %arg2[%c3_26, %c3_27] : memref<4x4xf32, #tpu.memory_space<smem>>
    %c0_28 = arith.constant 0 : index
    %c0_29 = arith.constant 0 : index
    %16 = memref.load %arg3[%c0_28, %c0_29] : memref<4x4xf32, #tpu.memory_space<smem>>
    %c0_30 = arith.constant 0 : index
    %c1_31 = arith.constant 1 : index
    %17 = memref.load %arg3[%c0_30, %c1_31] : memref<4x4xf32, #tpu.memory_space<smem>>
    %c0_32 = arith.constant 0 : index
    %c2_33 = arith.constant 2 : index
    %18 = memref.load %arg3[%c0_32, %c2_33] : memref<4x4xf32, #tpu.memory_space<smem>>
    %c0_34 = arith.constant 0 : index
    %c3_35 = arith.constant 3 : index
    %19 = memref.load %arg3[%c0_34, %c3_35] : memref<4x4xf32, #tpu.memory_space<smem>>
    %c1_36 = arith.constant 1 : index
    %c0_37 = arith.constant 0 : index
    %20 = memref.load %arg3[%c1_36, %c0_37] : memref<4x4xf32, #tpu.memory_space<smem>>
    %c1_38 = arith.constant 1 : index
    %c1_39 = arith.constant 1 : index
    %21 = memref.load %arg3[%c1_38, %c1_39] : memref<4x4xf32, #tpu.memory_space<smem>>
    %c1_40 = arith.constant 1 : index
    %c2_41 = arith.constant 2 : index
    %22 = memref.load %arg3[%c1_40, %c2_41] : memref<4x4xf32, #tpu.memory_space<smem>>
    %c1_42 = arith.constant 1 : index
    %c3_43 = arith.constant 3 : index
    %23 = memref.load %arg3[%c1_42, %c3_43] : memref<4x4xf32, #tpu.memory_space<smem>>
    %c2_44 = arith.constant 2 : index
    %c0_45 = arith.constant 0 : index
    %24 = memref.load %arg3[%c2_44, %c0_45] : memref<4x4xf32, #tpu.memory_space<smem>>
    %c2_46 = arith.constant 2 : index
    %c1_47 = arith.constant 1 : index
    %25 = memref.load %arg3[%c2_46, %c1_47] : memref<4x4xf32, #tpu.memory_space<smem>>
    %c2_48 = arith.constant 2 : index
    %c2_49 = arith.constant 2 : index
    %26 = memref.load %arg3[%c2_48, %c2_49] : memref<4x4xf32, #tpu.memory_space<smem>>
    %c2_50 = arith.constant 2 : index
    %c3_51 = arith.constant 3 : index
    %27 = memref.load %arg3[%c2_50, %c3_51] : memref<4x4xf32, #tpu.memory_space<smem>>
    %c3_52 = arith.constant 3 : index
    %c0_53 = arith.constant 0 : index
    %28 = memref.load %arg3[%c3_52, %c0_53] : memref<4x4xf32, #tpu.memory_space<smem>>
    %c3_54 = arith.constant 3 : index
    %c1_55 = arith.constant 1 : index
    %29 = memref.load %arg3[%c3_54, %c1_55] : memref<4x4xf32, #tpu.memory_space<smem>>
    %c3_56 = arith.constant 3 : index
    %c2_57 = arith.constant 2 : index
    %30 = memref.load %arg3[%c3_56, %c2_57] : memref<4x4xf32, #tpu.memory_space<smem>>
    %c3_58 = arith.constant 3 : index
    %c3_59 = arith.constant 3 : index
    %31 = memref.load %arg3[%c3_58, %c3_59] : memref<4x4xf32, #tpu.memory_space<smem>>
    %c0_60 = arith.constant 0 : index
    %c0_61 = arith.constant 0 : index
    %c0_62 = arith.constant 0 : index
    %32 = vector.load %arg1[%c0_60, %c0_61, %c0_62] : memref<8x4x2xf32, #tpu.memory_space<vmem>>, vector<8x1x2xf32>
    %33 = vector.shape_cast %32 : vector<8x1x2xf32> to vector<8x2xf32>
    %c0_63 = arith.constant 0 : index
    %c1_64 = arith.constant 1 : index
    %c0_65 = arith.constant 0 : index
    %34 = vector.load %arg1[%c0_63, %c1_64, %c0_65] : memref<8x4x2xf32, #tpu.memory_space<vmem>>, vector<8x1x2xf32>
    %35 = vector.shape_cast %34 : vector<8x1x2xf32> to vector<8x2xf32>
    %c0_66 = arith.constant 0 : index
    %c2_67 = arith.constant 2 : index
    %c0_68 = arith.constant 0 : index
    %36 = vector.load %arg1[%c0_66, %c2_67, %c0_68] : memref<8x4x2xf32, #tpu.memory_space<vmem>>, vector<8x1x2xf32>
    %37 = vector.shape_cast %36 : vector<8x1x2xf32> to vector<8x2xf32>
    %c0_69 = arith.constant 0 : index
    %c3_70 = arith.constant 3 : index
    %c0_71 = arith.constant 0 : index
    %38 = vector.load %arg1[%c0_69, %c3_70, %c0_71] : memref<8x4x2xf32, #tpu.memory_space<vmem>>, vector<8x1x2xf32>
    %39 = vector.shape_cast %38 : vector<8x1x2xf32> to vector<8x2xf32>
    %c0_72 = arith.constant 0 : index
    %40 = memref.load %arg4[%c0_72] : memref<4xf32, #tpu.memory_space<smem>>
    %cst = arith.constant 0.000000e+00 : f32
    %41 = vector.broadcast %cst : f32 to vector<8x2xf32>
    %42 = vector.broadcast %40 : f32 to vector<8x2xf32>
    %43 = arith.addf %42, %41 : vector<8x2xf32>
    %44 = vector.broadcast %0 : f32 to vector<8x2xf32>
    %45 = arith.mulf %44, %33 : vector<8x2xf32>
    %46 = arith.addf %43, %45 : vector<8x2xf32>
    %47 = vector.broadcast %1 : f32 to vector<8x2xf32>
    %48 = arith.mulf %47, %35 : vector<8x2xf32>
    %49 = arith.addf %46, %48 : vector<8x2xf32>
    %50 = vector.broadcast %2 : f32 to vector<8x2xf32>
    %51 = arith.mulf %50, %37 : vector<8x2xf32>
    %52 = arith.addf %49, %51 : vector<8x2xf32>
    %53 = vector.broadcast %3 : f32 to vector<8x2xf32>
    %54 = arith.mulf %53, %39 : vector<8x2xf32>
    %55 = arith.addf %52, %54 : vector<8x2xf32>
    %c1_73 = arith.constant 1 : index
    %56 = memref.load %arg4[%c1_73] : memref<4xf32, #tpu.memory_space<smem>>
    %cst_74 = arith.constant 0.000000e+00 : f32
    %57 = vector.broadcast %cst_74 : f32 to vector<8x2xf32>
    %58 = vector.broadcast %56 : f32 to vector<8x2xf32>
    %59 = arith.addf %58, %57 : vector<8x2xf32>
    %60 = vector.broadcast %4 : f32 to vector<8x2xf32>
    %61 = arith.mulf %60, %33 : vector<8x2xf32>
    %62 = arith.addf %59, %61 : vector<8x2xf32>
    %63 = vector.broadcast %5 : f32 to vector<8x2xf32>
    %64 = arith.mulf %63, %35 : vector<8x2xf32>
    %65 = arith.addf %62, %64 : vector<8x2xf32>
    %66 = vector.broadcast %6 : f32 to vector<8x2xf32>
    %67 = arith.mulf %66, %37 : vector<8x2xf32>
    %68 = arith.addf %65, %67 : vector<8x2xf32>
    %69 = vector.broadcast %7 : f32 to vector<8x2xf32>
    %70 = arith.mulf %69, %39 : vector<8x2xf32>
    %71 = arith.addf %68, %70 : vector<8x2xf32>
    %c2_75 = arith.constant 2 : index
    %72 = memref.load %arg4[%c2_75] : memref<4xf32, #tpu.memory_space<smem>>
    %cst_76 = arith.constant 0.000000e+00 : f32
    %73 = vector.broadcast %cst_76 : f32 to vector<8x2xf32>
    %74 = vector.broadcast %72 : f32 to vector<8x2xf32>
    %75 = arith.addf %74, %73 : vector<8x2xf32>
    %76 = vector.broadcast %8 : f32 to vector<8x2xf32>
    %77 = arith.mulf %76, %33 : vector<8x2xf32>
    %78 = arith.addf %75, %77 : vector<8x2xf32>
    %79 = vector.broadcast %9 : f32 to vector<8x2xf32>
    %80 = arith.mulf %79, %35 : vector<8x2xf32>
    %81 = arith.addf %78, %80 : vector<8x2xf32>
    %82 = vector.broadcast %10 : f32 to vector<8x2xf32>
    %83 = arith.mulf %82, %37 : vector<8x2xf32>
    %84 = arith.addf %81, %83 : vector<8x2xf32>
    %85 = vector.broadcast %11 : f32 to vector<8x2xf32>
    %86 = arith.mulf %85, %39 : vector<8x2xf32>
    %87 = arith.addf %84, %86 : vector<8x2xf32>
    %c3_77 = arith.constant 3 : index
    %88 = memref.load %arg4[%c3_77] : memref<4xf32, #tpu.memory_space<smem>>
    %cst_78 = arith.constant 0.000000e+00 : f32
    %89 = vector.broadcast %cst_78 : f32 to vector<8x2xf32>
    %90 = vector.broadcast %88 : f32 to vector<8x2xf32>
    %91 = arith.addf %90, %89 : vector<8x2xf32>
    %92 = vector.broadcast %12 : f32 to vector<8x2xf32>
    %93 = arith.mulf %92, %33 : vector<8x2xf32>
    %94 = arith.addf %91, %93 : vector<8x2xf32>
    %95 = vector.broadcast %13 : f32 to vector<8x2xf32>
    %96 = arith.mulf %95, %35 : vector<8x2xf32>
    %97 = arith.addf %94, %96 : vector<8x2xf32>
    %98 = vector.broadcast %14 : f32 to vector<8x2xf32>
    %99 = arith.mulf %98, %37 : vector<8x2xf32>
    %100 = arith.addf %97, %99 : vector<8x2xf32>
    %101 = vector.broadcast %15 : f32 to vector<8x2xf32>
    %102 = arith.mulf %101, %39 : vector<8x2xf32>
    %103 = arith.addf %100, %102 : vector<8x2xf32>
    %c0_79 = arith.constant 0 : index
    %104 = memref.load %arg6[%c0_79] : memref<12xf32, #tpu.memory_space<smem>>
    %cst_80 = arith.constant 0.000000e+00 : f32
    %105 = vector.broadcast %cst_80 : f32 to vector<4x2xf32>
    %106 = vector.broadcast %104 : f32 to vector<4x2xf32>
    %107 = arith.addf %106, %105 : vector<4x2xf32>
    %c1_81 = arith.constant 1 : index
    %108 = memref.load %arg6[%c1_81] : memref<12xf32, #tpu.memory_space<smem>>
    %cst_82 = arith.constant 0.000000e+00 : f32
    %109 = vector.broadcast %cst_82 : f32 to vector<4x2xf32>
    %110 = vector.broadcast %108 : f32 to vector<4x2xf32>
    %111 = arith.addf %110, %109 : vector<4x2xf32>
    %c2_83 = arith.constant 2 : index
    %112 = memref.load %arg6[%c2_83] : memref<12xf32, #tpu.memory_space<smem>>
    %cst_84 = arith.constant 0.000000e+00 : f32
    %113 = vector.broadcast %cst_84 : f32 to vector<4x2xf32>
    %114 = vector.broadcast %112 : f32 to vector<4x2xf32>
    %115 = arith.addf %114, %113 : vector<4x2xf32>
    %c3_85 = arith.constant 3 : index
    %116 = memref.load %arg6[%c3_85] : memref<12xf32, #tpu.memory_space<smem>>
    %cst_86 = arith.constant 0.000000e+00 : f32
    %117 = vector.broadcast %cst_86 : f32 to vector<4x2xf32>
    %118 = vector.broadcast %116 : f32 to vector<4x2xf32>
    %119 = arith.addf %118, %117 : vector<4x2xf32>
    %c4 = arith.constant 4 : index
    %120 = memref.load %arg6[%c4] : memref<12xf32, #tpu.memory_space<smem>>
    %cst_87 = arith.constant 0.000000e+00 : f32
    %121 = vector.broadcast %cst_87 : f32 to vector<4x2xf32>
    %122 = vector.broadcast %120 : f32 to vector<4x2xf32>
    %123 = arith.addf %122, %121 : vector<4x2xf32>
    %c5 = arith.constant 5 : index
    %124 = memref.load %arg6[%c5] : memref<12xf32, #tpu.memory_space<smem>>
    %cst_88 = arith.constant 0.000000e+00 : f32
    %125 = vector.broadcast %cst_88 : f32 to vector<4x2xf32>
    %126 = vector.broadcast %124 : f32 to vector<4x2xf32>
    %127 = arith.addf %126, %125 : vector<4x2xf32>
    %c6 = arith.constant 6 : index
    %128 = memref.load %arg6[%c6] : memref<12xf32, #tpu.memory_space<smem>>
    %cst_89 = arith.constant 0.000000e+00 : f32
    %129 = vector.broadcast %cst_89 : f32 to vector<4x2xf32>
    %130 = vector.broadcast %128 : f32 to vector<4x2xf32>
    %131 = arith.addf %130, %129 : vector<4x2xf32>
    %c7 = arith.constant 7 : index
    %132 = memref.load %arg6[%c7] : memref<12xf32, #tpu.memory_space<smem>>
    %cst_90 = arith.constant 0.000000e+00 : f32
    %133 = vector.broadcast %cst_90 : f32 to vector<4x2xf32>
    %134 = vector.broadcast %132 : f32 to vector<4x2xf32>
    %135 = arith.addf %134, %133 : vector<4x2xf32>
    %c8 = arith.constant 8 : index
    %136 = memref.load %arg6[%c8] : memref<12xf32, #tpu.memory_space<smem>>
    %cst_91 = arith.constant 0.000000e+00 : f32
    %137 = vector.broadcast %cst_91 : f32 to vector<4x2xf32>
    %138 = vector.broadcast %136 : f32 to vector<4x2xf32>
    %139 = arith.addf %138, %137 : vector<4x2xf32>
    %c9 = arith.constant 9 : index
    %140 = memref.load %arg6[%c9] : memref<12xf32, #tpu.memory_space<smem>>
    %cst_92 = arith.constant 0.000000e+00 : f32
    %141 = vector.broadcast %cst_92 : f32 to vector<4x2xf32>
    %142 = vector.broadcast %140 : f32 to vector<4x2xf32>
    %143 = arith.addf %142, %141 : vector<4x2xf32>
    %c10 = arith.constant 10 : index
    %144 = memref.load %arg6[%c10] : memref<12xf32, #tpu.memory_space<smem>>
    %cst_93 = arith.constant 0.000000e+00 : f32
    %145 = vector.broadcast %cst_93 : f32 to vector<4x2xf32>
    %146 = vector.broadcast %144 : f32 to vector<4x2xf32>
    %147 = arith.addf %146, %145 : vector<4x2xf32>
    %c11 = arith.constant 11 : index
    %148 = memref.load %arg6[%c11] : memref<12xf32, #tpu.memory_space<smem>>
    %cst_94 = arith.constant 0.000000e+00 : f32
    %149 = vector.broadcast %cst_94 : f32 to vector<4x2xf32>
    %150 = vector.broadcast %148 : f32 to vector<4x2xf32>
    %151 = arith.addf %150, %149 : vector<4x2xf32>
    %152 = vector.extract_strided_slice %55 {offsets = [0, 0], sizes = [1, 2], strides = [1, 1]} : vector<8x2xf32> to vector<1x2xf32>
    %153 = math.tanh %152 : vector<1x2xf32>
    %154 = vector.extract_strided_slice %71 {offsets = [0, 0], sizes = [1, 2], strides = [1, 1]} : vector<8x2xf32> to vector<1x2xf32>
    %155 = math.tanh %154 : vector<1x2xf32>
    %156 = vector.extract_strided_slice %87 {offsets = [0, 0], sizes = [1, 2], strides = [1, 1]} : vector<8x2xf32> to vector<1x2xf32>
    %157 = math.tanh %156 : vector<1x2xf32>
    %158 = vector.extract_strided_slice %103 {offsets = [0, 0], sizes = [1, 2], strides = [1, 1]} : vector<8x2xf32> to vector<1x2xf32>
    %159 = math.tanh %158 : vector<1x2xf32>
    %160 = tpu.concatenate %153, %155, %157, %159 in 0 : vector<1x2xf32>, vector<1x2xf32>, vector<1x2xf32>, vector<1x2xf32> -> vector<4x2xf32>
    %c0_95 = arith.constant 0 : index
    %c0_96 = arith.constant 0 : index
    %161 = memref.load %arg5[%c0_95, %c0_96] : memref<12x8xf32, #tpu.memory_space<smem>>
    %162 = vector.broadcast %161 : f32 to vector<4x2xf32>
    %163 = arith.mulf %162, %160 : vector<4x2xf32>
    %164 = arith.addf %107, %163 : vector<4x2xf32>
    %c1_97 = arith.constant 1 : index
    %c0_98 = arith.constant 0 : index
    %165 = memref.load %arg5[%c1_97, %c0_98] : memref<12x8xf32, #tpu.memory_space<smem>>
    %166 = vector.broadcast %165 : f32 to vector<4x2xf32>
    %167 = arith.mulf %166, %160 : vector<4x2xf32>
    %168 = arith.addf %111, %167 : vector<4x2xf32>
    %c2_99 = arith.constant 2 : index
    %c0_100 = arith.constant 0 : index
    %169 = memref.load %arg5[%c2_99, %c0_100] : memref<12x8xf32, #tpu.memory_space<smem>>
    %170 = vector.broadcast %169 : f32 to vector<4x2xf32>
    %171 = arith.mulf %170, %160 : vector<4x2xf32>
    %172 = arith.addf %115, %171 : vector<4x2xf32>
    %c3_101 = arith.constant 3 : index
    %c0_102 = arith.constant 0 : index
    %173 = memref.load %arg5[%c3_101, %c0_102] : memref<12x8xf32, #tpu.memory_space<smem>>
    %174 = vector.broadcast %173 : f32 to vector<4x2xf32>
    %175 = arith.mulf %174, %160 : vector<4x2xf32>
    %176 = arith.addf %119, %175 : vector<4x2xf32>
    %c4_103 = arith.constant 4 : index
    %c0_104 = arith.constant 0 : index
    %177 = memref.load %arg5[%c4_103, %c0_104] : memref<12x8xf32, #tpu.memory_space<smem>>
    %178 = vector.broadcast %177 : f32 to vector<4x2xf32>
    %179 = arith.mulf %178, %160 : vector<4x2xf32>
    %180 = arith.addf %123, %179 : vector<4x2xf32>
    %c5_105 = arith.constant 5 : index
    %c0_106 = arith.constant 0 : index
    %181 = memref.load %arg5[%c5_105, %c0_106] : memref<12x8xf32, #tpu.memory_space<smem>>
    %182 = vector.broadcast %181 : f32 to vector<4x2xf32>
    %183 = arith.mulf %182, %160 : vector<4x2xf32>
    %184 = arith.addf %127, %183 : vector<4x2xf32>
    %c6_107 = arith.constant 6 : index
    %c0_108 = arith.constant 0 : index
    %185 = memref.load %arg5[%c6_107, %c0_108] : memref<12x8xf32, #tpu.memory_space<smem>>
    %186 = vector.broadcast %185 : f32 to vector<4x2xf32>
    %187 = arith.mulf %186, %160 : vector<4x2xf32>
    %188 = arith.addf %131, %187 : vector<4x2xf32>
    %c7_109 = arith.constant 7 : index
    %c0_110 = arith.constant 0 : index
    %189 = memref.load %arg5[%c7_109, %c0_110] : memref<12x8xf32, #tpu.memory_space<smem>>
    %190 = vector.broadcast %189 : f32 to vector<4x2xf32>
    %191 = arith.mulf %190, %160 : vector<4x2xf32>
    %192 = arith.addf %135, %191 : vector<4x2xf32>
    %c8_111 = arith.constant 8 : index
    %c0_112 = arith.constant 0 : index
    %193 = memref.load %arg5[%c8_111, %c0_112] : memref<12x8xf32, #tpu.memory_space<smem>>
    %194 = vector.broadcast %193 : f32 to vector<4x2xf32>
    %195 = arith.mulf %194, %160 : vector<4x2xf32>
    %196 = arith.addf %139, %195 : vector<4x2xf32>
    %c9_113 = arith.constant 9 : index
    %c0_114 = arith.constant 0 : index
    %197 = memref.load %arg5[%c9_113, %c0_114] : memref<12x8xf32, #tpu.memory_space<smem>>
    %198 = vector.broadcast %197 : f32 to vector<4x2xf32>
    %199 = arith.mulf %198, %160 : vector<4x2xf32>
    %200 = arith.addf %143, %199 : vector<4x2xf32>
    %c10_115 = arith.constant 10 : index
    %c0_116 = arith.constant 0 : index
    %201 = memref.load %arg5[%c10_115, %c0_116] : memref<12x8xf32, #tpu.memory_space<smem>>
    %202 = vector.broadcast %201 : f32 to vector<4x2xf32>
    %203 = arith.mulf %202, %160 : vector<4x2xf32>
    %204 = arith.addf %147, %203 : vector<4x2xf32>
    %c11_117 = arith.constant 11 : index
    %c0_118 = arith.constant 0 : index
    %205 = memref.load %arg5[%c11_117, %c0_118] : memref<12x8xf32, #tpu.memory_space<smem>>
    %206 = vector.broadcast %205 : f32 to vector<4x2xf32>
    %207 = arith.mulf %206, %160 : vector<4x2xf32>
    %208 = arith.addf %151, %207 : vector<4x2xf32>
    %209 = vector.extract_strided_slice %55 {offsets = [1, 0], sizes = [1, 2], strides = [1, 1]} : vector<8x2xf32> to vector<1x2xf32>
    %210 = vector.broadcast %16 : f32 to vector<1x2xf32>
    %211 = arith.mulf %210, %153 : vector<1x2xf32>
    %212 = arith.addf %209, %211 : vector<1x2xf32>
    %213 = vector.broadcast %17 : f32 to vector<1x2xf32>
    %214 = arith.mulf %213, %155 : vector<1x2xf32>
    %215 = arith.addf %212, %214 : vector<1x2xf32>
    %216 = vector.broadcast %18 : f32 to vector<1x2xf32>
    %217 = arith.mulf %216, %157 : vector<1x2xf32>
    %218 = arith.addf %215, %217 : vector<1x2xf32>
    %219 = vector.broadcast %19 : f32 to vector<1x2xf32>
    %220 = arith.mulf %219, %159 : vector<1x2xf32>
    %221 = arith.addf %218, %220 : vector<1x2xf32>
    %222 = math.tanh %221 : vector<1x2xf32>
    %223 = vector.extract_strided_slice %71 {offsets = [1, 0], sizes = [1, 2], strides = [1, 1]} : vector<8x2xf32> to vector<1x2xf32>
    %224 = vector.broadcast %20 : f32 to vector<1x2xf32>
    %225 = arith.mulf %224, %153 : vector<1x2xf32>
    %226 = arith.addf %223, %225 : vector<1x2xf32>
    %227 = vector.broadcast %21 : f32 to vector<1x2xf32>
    %228 = arith.mulf %227, %155 : vector<1x2xf32>
    %229 = arith.addf %226, %228 : vector<1x2xf32>
    %230 = vector.broadcast %22 : f32 to vector<1x2xf32>
    %231 = arith.mulf %230, %157 : vector<1x2xf32>
    %232 = arith.addf %229, %231 : vector<1x2xf32>
    %233 = vector.broadcast %23 : f32 to vector<1x2xf32>
    %234 = arith.mulf %233, %159 : vector<1x2xf32>
    %235 = arith.addf %232, %234 : vector<1x2xf32>
    %236 = math.tanh %235 : vector<1x2xf32>
    %237 = vector.extract_strided_slice %87 {offsets = [1, 0], sizes = [1, 2], strides = [1, 1]} : vector<8x2xf32> to vector<1x2xf32>
    %238 = vector.broadcast %24 : f32 to vector<1x2xf32>
    %239 = arith.mulf %238, %153 : vector<1x2xf32>
    %240 = arith.addf %237, %239 : vector<1x2xf32>
    %241 = vector.broadcast %25 : f32 to vector<1x2xf32>
    %242 = arith.mulf %241, %155 : vector<1x2xf32>
    %243 = arith.addf %240, %242 : vector<1x2xf32>
    %244 = vector.broadcast %26 : f32 to vector<1x2xf32>
    %245 = arith.mulf %244, %157 : vector<1x2xf32>
    %246 = arith.addf %243, %245 : vector<1x2xf32>
    %247 = vector.broadcast %27 : f32 to vector<1x2xf32>
    %248 = arith.mulf %247, %159 : vector<1x2xf32>
    %249 = arith.addf %246, %248 : vector<1x2xf32>
    %250 = math.tanh %249 : vector<1x2xf32>
    %251 = vector.extract_strided_slice %103 {offsets = [1, 0], sizes = [1, 2], strides = [1, 1]} : vector<8x2xf32> to vector<1x2xf32>
    %252 = vector.broadcast %28 : f32 to vector<1x2xf32>
    %253 = arith.mulf %252, %153 : vector<1x2xf32>
    %254 = arith.addf %251, %253 : vector<1x2xf32>
    %255 = vector.broadcast %29 : f32 to vector<1x2xf32>
    %256 = arith.mulf %255, %155 : vector<1x2xf32>
    %257 = arith.addf %254, %256 : vector<1x2xf32>
    %258 = vector.broadcast %30 : f32 to vector<1x2xf32>
    %259 = arith.mulf %258, %157 : vector<1x2xf32>
    %260 = arith.addf %257, %259 : vector<1x2xf32>
    %261 = vector.broadcast %31 : f32 to vector<1x2xf32>
    %262 = arith.mulf %261, %159 : vector<1x2xf32>
    %263 = arith.addf %260, %262 : vector<1x2xf32>
    %264 = math.tanh %263 : vector<1x2xf32>
    %265 = tpu.concatenate %222, %236, %250, %264 in 0 : vector<1x2xf32>, vector<1x2xf32>, vector<1x2xf32>, vector<1x2xf32> -> vector<4x2xf32>
    %c0_119 = arith.constant 0 : index
    %c1_120 = arith.constant 1 : index
    %266 = memref.load %arg5[%c0_119, %c1_120] : memref<12x8xf32, #tpu.memory_space<smem>>
    %267 = vector.broadcast %266 : f32 to vector<4x2xf32>
    %268 = arith.mulf %267, %265 : vector<4x2xf32>
    %269 = arith.addf %164, %268 : vector<4x2xf32>
    %c1_121 = arith.constant 1 : index
    %c1_122 = arith.constant 1 : index
    %270 = memref.load %arg5[%c1_121, %c1_122] : memref<12x8xf32, #tpu.memory_space<smem>>
    %271 = vector.broadcast %270 : f32 to vector<4x2xf32>
    %272 = arith.mulf %271, %265 : vector<4x2xf32>
    %273 = arith.addf %168, %272 : vector<4x2xf32>
    %c2_123 = arith.constant 2 : index
    %c1_124 = arith.constant 1 : index
    %274 = memref.load %arg5[%c2_123, %c1_124] : memref<12x8xf32, #tpu.memory_space<smem>>
    %275 = vector.broadcast %274 : f32 to vector<4x2xf32>
    %276 = arith.mulf %275, %265 : vector<4x2xf32>
    %277 = arith.addf %172, %276 : vector<4x2xf32>
    %c3_125 = arith.constant 3 : index
    %c1_126 = arith.constant 1 : index
    %278 = memref.load %arg5[%c3_125, %c1_126] : memref<12x8xf32, #tpu.memory_space<smem>>
    %279 = vector.broadcast %278 : f32 to vector<4x2xf32>
    %280 = arith.mulf %279, %265 : vector<4x2xf32>
    %281 = arith.addf %176, %280 : vector<4x2xf32>
    %c4_127 = arith.constant 4 : index
    %c1_128 = arith.constant 1 : index
    %282 = memref.load %arg5[%c4_127, %c1_128] : memref<12x8xf32, #tpu.memory_space<smem>>
    %283 = vector.broadcast %282 : f32 to vector<4x2xf32>
    %284 = arith.mulf %283, %265 : vector<4x2xf32>
    %285 = arith.addf %180, %284 : vector<4x2xf32>
    %c5_129 = arith.constant 5 : index
    %c1_130 = arith.constant 1 : index
    %286 = memref.load %arg5[%c5_129, %c1_130] : memref<12x8xf32, #tpu.memory_space<smem>>
    %287 = vector.broadcast %286 : f32 to vector<4x2xf32>
    %288 = arith.mulf %287, %265 : vector<4x2xf32>
    %289 = arith.addf %184, %288 : vector<4x2xf32>
    %c6_131 = arith.constant 6 : index
    %c1_132 = arith.constant 1 : index
    %290 = memref.load %arg5[%c6_131, %c1_132] : memref<12x8xf32, #tpu.memory_space<smem>>
    %291 = vector.broadcast %290 : f32 to vector<4x2xf32>
    %292 = arith.mulf %291, %265 : vector<4x2xf32>
    %293 = arith.addf %188, %292 : vector<4x2xf32>
    %c7_133 = arith.constant 7 : index
    %c1_134 = arith.constant 1 : index
    %294 = memref.load %arg5[%c7_133, %c1_134] : memref<12x8xf32, #tpu.memory_space<smem>>
    %295 = vector.broadcast %294 : f32 to vector<4x2xf32>
    %296 = arith.mulf %295, %265 : vector<4x2xf32>
    %297 = arith.addf %192, %296 : vector<4x2xf32>
    %c8_135 = arith.constant 8 : index
    %c1_136 = arith.constant 1 : index
    %298 = memref.load %arg5[%c8_135, %c1_136] : memref<12x8xf32, #tpu.memory_space<smem>>
    %299 = vector.broadcast %298 : f32 to vector<4x2xf32>
    %300 = arith.mulf %299, %265 : vector<4x2xf32>
    %301 = arith.addf %196, %300 : vector<4x2xf32>
    %c9_137 = arith.constant 9 : index
    %c1_138 = arith.constant 1 : index
    %302 = memref.load %arg5[%c9_137, %c1_138] : memref<12x8xf32, #tpu.memory_space<smem>>
    %303 = vector.broadcast %302 : f32 to vector<4x2xf32>
    %304 = arith.mulf %303, %265 : vector<4x2xf32>
    %305 = arith.addf %200, %304 : vector<4x2xf32>
    %c10_139 = arith.constant 10 : index
    %c1_140 = arith.constant 1 : index
    %306 = memref.load %arg5[%c10_139, %c1_140] : memref<12x8xf32, #tpu.memory_space<smem>>
    %307 = vector.broadcast %306 : f32 to vector<4x2xf32>
    %308 = arith.mulf %307, %265 : vector<4x2xf32>
    %309 = arith.addf %204, %308 : vector<4x2xf32>
    %c11_141 = arith.constant 11 : index
    %c1_142 = arith.constant 1 : index
    %310 = memref.load %arg5[%c11_141, %c1_142] : memref<12x8xf32, #tpu.memory_space<smem>>
    %311 = vector.broadcast %310 : f32 to vector<4x2xf32>
    %312 = arith.mulf %311, %265 : vector<4x2xf32>
    %313 = arith.addf %208, %312 : vector<4x2xf32>
    %314 = vector.extract_strided_slice %55 {offsets = [2, 0], sizes = [1, 2], strides = [1, 1]} : vector<8x2xf32> to vector<1x2xf32>
    %315 = vector.broadcast %16 : f32 to vector<1x2xf32>
    %316 = arith.mulf %315, %222 : vector<1x2xf32>
    %317 = arith.addf %314, %316 : vector<1x2xf32>
    %318 = vector.broadcast %17 : f32 to vector<1x2xf32>
    %319 = arith.mulf %318, %236 : vector<1x2xf32>
    %320 = arith.addf %317, %319 : vector<1x2xf32>
    %321 = vector.broadcast %18 : f32 to vector<1x2xf32>
    %322 = arith.mulf %321, %250 : vector<1x2xf32>
    %323 = arith.addf %320, %322 : vector<1x2xf32>
    %324 = vector.broadcast %19 : f32 to vector<1x2xf32>
    %325 = arith.mulf %324, %264 : vector<1x2xf32>
    %326 = arith.addf %323, %325 : vector<1x2xf32>
    %327 = math.tanh %326 : vector<1x2xf32>
    %328 = vector.extract_strided_slice %71 {offsets = [2, 0], sizes = [1, 2], strides = [1, 1]} : vector<8x2xf32> to vector<1x2xf32>
    %329 = vector.broadcast %20 : f32 to vector<1x2xf32>
    %330 = arith.mulf %329, %222 : vector<1x2xf32>
    %331 = arith.addf %328, %330 : vector<1x2xf32>
    %332 = vector.broadcast %21 : f32 to vector<1x2xf32>
    %333 = arith.mulf %332, %236 : vector<1x2xf32>
    %334 = arith.addf %331, %333 : vector<1x2xf32>
    %335 = vector.broadcast %22 : f32 to vector<1x2xf32>
    %336 = arith.mulf %335, %250 : vector<1x2xf32>
    %337 = arith.addf %334, %336 : vector<1x2xf32>
    %338 = vector.broadcast %23 : f32 to vector<1x2xf32>
    %339 = arith.mulf %338, %264 : vector<1x2xf32>
    %340 = arith.addf %337, %339 : vector<1x2xf32>
    %341 = math.tanh %340 : vector<1x2xf32>
    %342 = vector.extract_strided_slice %87 {offsets = [2, 0], sizes = [1, 2], strides = [1, 1]} : vector<8x2xf32> to vector<1x2xf32>
    %343 = vector.broadcast %24 : f32 to vector<1x2xf32>
    %344 = arith.mulf %343, %222 : vector<1x2xf32>
    %345 = arith.addf %342, %344 : vector<1x2xf32>
    %346 = vector.broadcast %25 : f32 to vector<1x2xf32>
    %347 = arith.mulf %346, %236 : vector<1x2xf32>
    %348 = arith.addf %345, %347 : vector<1x2xf32>
    %349 = vector.broadcast %26 : f32 to vector<1x2xf32>
    %350 = arith.mulf %349, %250 : vector<1x2xf32>
    %351 = arith.addf %348, %350 : vector<1x2xf32>
    %352 = vector.broadcast %27 : f32 to vector<1x2xf32>
    %353 = arith.mulf %352, %264 : vector<1x2xf32>
    %354 = arith.addf %351, %353 : vector<1x2xf32>
    %355 = math.tanh %354 : vector<1x2xf32>
    %356 = vector.extract_strided_slice %103 {offsets = [2, 0], sizes = [1, 2], strides = [1, 1]} : vector<8x2xf32> to vector<1x2xf32>
    %357 = vector.broadcast %28 : f32 to vector<1x2xf32>
    %358 = arith.mulf %357, %222 : vector<1x2xf32>
    %359 = arith.addf %356, %358 : vector<1x2xf32>
    %360 = vector.broadcast %29 : f32 to vector<1x2xf32>
    %361 = arith.mulf %360, %236 : vector<1x2xf32>
    %362 = arith.addf %359, %361 : vector<1x2xf32>
    %363 = vector.broadcast %30 : f32 to vector<1x2xf32>
    %364 = arith.mulf %363, %250 : vector<1x2xf32>
    %365 = arith.addf %362, %364 : vector<1x2xf32>
    %366 = vector.broadcast %31 : f32 to vector<1x2xf32>
    %367 = arith.mulf %366, %264 : vector<1x2xf32>
    %368 = arith.addf %365, %367 : vector<1x2xf32>
    %369 = math.tanh %368 : vector<1x2xf32>
    %370 = tpu.concatenate %327, %341, %355, %369 in 0 : vector<1x2xf32>, vector<1x2xf32>, vector<1x2xf32>, vector<1x2xf32> -> vector<4x2xf32>
    %c0_143 = arith.constant 0 : index
    %c2_144 = arith.constant 2 : index
    %371 = memref.load %arg5[%c0_143, %c2_144] : memref<12x8xf32, #tpu.memory_space<smem>>
    %372 = vector.broadcast %371 : f32 to vector<4x2xf32>
    %373 = arith.mulf %372, %370 : vector<4x2xf32>
    %374 = arith.addf %269, %373 : vector<4x2xf32>
    %c1_145 = arith.constant 1 : index
    %c2_146 = arith.constant 2 : index
    %375 = memref.load %arg5[%c1_145, %c2_146] : memref<12x8xf32, #tpu.memory_space<smem>>
    %376 = vector.broadcast %375 : f32 to vector<4x2xf32>
    %377 = arith.mulf %376, %370 : vector<4x2xf32>
    %378 = arith.addf %273, %377 : vector<4x2xf32>
    %c2_147 = arith.constant 2 : index
    %c2_148 = arith.constant 2 : index
    %379 = memref.load %arg5[%c2_147, %c2_148] : memref<12x8xf32, #tpu.memory_space<smem>>
    %380 = vector.broadcast %379 : f32 to vector<4x2xf32>
    %381 = arith.mulf %380, %370 : vector<4x2xf32>
    %382 = arith.addf %277, %381 : vector<4x2xf32>
    %c3_149 = arith.constant 3 : index
    %c2_150 = arith.constant 2 : index
    %383 = memref.load %arg5[%c3_149, %c2_150] : memref<12x8xf32, #tpu.memory_space<smem>>
    %384 = vector.broadcast %383 : f32 to vector<4x2xf32>
    %385 = arith.mulf %384, %370 : vector<4x2xf32>
    %386 = arith.addf %281, %385 : vector<4x2xf32>
    %c4_151 = arith.constant 4 : index
    %c2_152 = arith.constant 2 : index
    %387 = memref.load %arg5[%c4_151, %c2_152] : memref<12x8xf32, #tpu.memory_space<smem>>
    %388 = vector.broadcast %387 : f32 to vector<4x2xf32>
    %389 = arith.mulf %388, %370 : vector<4x2xf32>
    %390 = arith.addf %285, %389 : vector<4x2xf32>
    %c5_153 = arith.constant 5 : index
    %c2_154 = arith.constant 2 : index
    %391 = memref.load %arg5[%c5_153, %c2_154] : memref<12x8xf32, #tpu.memory_space<smem>>
    %392 = vector.broadcast %391 : f32 to vector<4x2xf32>
    %393 = arith.mulf %392, %370 : vector<4x2xf32>
    %394 = arith.addf %289, %393 : vector<4x2xf32>
    %c6_155 = arith.constant 6 : index
    %c2_156 = arith.constant 2 : index
    %395 = memref.load %arg5[%c6_155, %c2_156] : memref<12x8xf32, #tpu.memory_space<smem>>
    %396 = vector.broadcast %395 : f32 to vector<4x2xf32>
    %397 = arith.mulf %396, %370 : vector<4x2xf32>
    %398 = arith.addf %293, %397 : vector<4x2xf32>
    %c7_157 = arith.constant 7 : index
    %c2_158 = arith.constant 2 : index
    %399 = memref.load %arg5[%c7_157, %c2_158] : memref<12x8xf32, #tpu.memory_space<smem>>
    %400 = vector.broadcast %399 : f32 to vector<4x2xf32>
    %401 = arith.mulf %400, %370 : vector<4x2xf32>
    %402 = arith.addf %297, %401 : vector<4x2xf32>
    %c8_159 = arith.constant 8 : index
    %c2_160 = arith.constant 2 : index
    %403 = memref.load %arg5[%c8_159, %c2_160] : memref<12x8xf32, #tpu.memory_space<smem>>
    %404 = vector.broadcast %403 : f32 to vector<4x2xf32>
    %405 = arith.mulf %404, %370 : vector<4x2xf32>
    %406 = arith.addf %301, %405 : vector<4x2xf32>
    %c9_161 = arith.constant 9 : index
    %c2_162 = arith.constant 2 : index
    %407 = memref.load %arg5[%c9_161, %c2_162] : memref<12x8xf32, #tpu.memory_space<smem>>
    %408 = vector.broadcast %407 : f32 to vector<4x2xf32>
    %409 = arith.mulf %408, %370 : vector<4x2xf32>
    %410 = arith.addf %305, %409 : vector<4x2xf32>
    %c10_163 = arith.constant 10 : index
    %c2_164 = arith.constant 2 : index
    %411 = memref.load %arg5[%c10_163, %c2_164] : memref<12x8xf32, #tpu.memory_space<smem>>
    %412 = vector.broadcast %411 : f32 to vector<4x2xf32>
    %413 = arith.mulf %412, %370 : vector<4x2xf32>
    %414 = arith.addf %309, %413 : vector<4x2xf32>
    %c11_165 = arith.constant 11 : index
    %c2_166 = arith.constant 2 : index
    %415 = memref.load %arg5[%c11_165, %c2_166] : memref<12x8xf32, #tpu.memory_space<smem>>
    %416 = vector.broadcast %415 : f32 to vector<4x2xf32>
    %417 = arith.mulf %416, %370 : vector<4x2xf32>
    %418 = arith.addf %313, %417 : vector<4x2xf32>
    %419 = vector.extract_strided_slice %55 {offsets = [3, 0], sizes = [1, 2], strides = [1, 1]} : vector<8x2xf32> to vector<1x2xf32>
    %420 = vector.broadcast %16 : f32 to vector<1x2xf32>
    %421 = arith.mulf %420, %327 : vector<1x2xf32>
    %422 = arith.addf %419, %421 : vector<1x2xf32>
    %423 = vector.broadcast %17 : f32 to vector<1x2xf32>
    %424 = arith.mulf %423, %341 : vector<1x2xf32>
    %425 = arith.addf %422, %424 : vector<1x2xf32>
    %426 = vector.broadcast %18 : f32 to vector<1x2xf32>
    %427 = arith.mulf %426, %355 : vector<1x2xf32>
    %428 = arith.addf %425, %427 : vector<1x2xf32>
    %429 = vector.broadcast %19 : f32 to vector<1x2xf32>
    %430 = arith.mulf %429, %369 : vector<1x2xf32>
    %431 = arith.addf %428, %430 : vector<1x2xf32>
    %432 = math.tanh %431 : vector<1x2xf32>
    %433 = vector.extract_strided_slice %71 {offsets = [3, 0], sizes = [1, 2], strides = [1, 1]} : vector<8x2xf32> to vector<1x2xf32>
    %434 = vector.broadcast %20 : f32 to vector<1x2xf32>
    %435 = arith.mulf %434, %327 : vector<1x2xf32>
    %436 = arith.addf %433, %435 : vector<1x2xf32>
    %437 = vector.broadcast %21 : f32 to vector<1x2xf32>
    %438 = arith.mulf %437, %341 : vector<1x2xf32>
    %439 = arith.addf %436, %438 : vector<1x2xf32>
    %440 = vector.broadcast %22 : f32 to vector<1x2xf32>
    %441 = arith.mulf %440, %355 : vector<1x2xf32>
    %442 = arith.addf %439, %441 : vector<1x2xf32>
    %443 = vector.broadcast %23 : f32 to vector<1x2xf32>
    %444 = arith.mulf %443, %369 : vector<1x2xf32>
    %445 = arith.addf %442, %444 : vector<1x2xf32>
    %446 = math.tanh %445 : vector<1x2xf32>
    %447 = vector.extract_strided_slice %87 {offsets = [3, 0], sizes = [1, 2], strides = [1, 1]} : vector<8x2xf32> to vector<1x2xf32>
    %448 = vector.broadcast %24 : f32 to vector<1x2xf32>
    %449 = arith.mulf %448, %327 : vector<1x2xf32>
    %450 = arith.addf %447, %449 : vector<1x2xf32>
    %451 = vector.broadcast %25 : f32 to vector<1x2xf32>
    %452 = arith.mulf %451, %341 : vector<1x2xf32>
    %453 = arith.addf %450, %452 : vector<1x2xf32>
    %454 = vector.broadcast %26 : f32 to vector<1x2xf32>
    %455 = arith.mulf %454, %355 : vector<1x2xf32>
    %456 = arith.addf %453, %455 : vector<1x2xf32>
    %457 = vector.broadcast %27 : f32 to vector<1x2xf32>
    %458 = arith.mulf %457, %369 : vector<1x2xf32>
    %459 = arith.addf %456, %458 : vector<1x2xf32>
    %460 = math.tanh %459 : vector<1x2xf32>
    %461 = vector.extract_strided_slice %103 {offsets = [3, 0], sizes = [1, 2], strides = [1, 1]} : vector<8x2xf32> to vector<1x2xf32>
    %462 = vector.broadcast %28 : f32 to vector<1x2xf32>
    %463 = arith.mulf %462, %327 : vector<1x2xf32>
    %464 = arith.addf %461, %463 : vector<1x2xf32>
    %465 = vector.broadcast %29 : f32 to vector<1x2xf32>
    %466 = arith.mulf %465, %341 : vector<1x2xf32>
    %467 = arith.addf %464, %466 : vector<1x2xf32>
    %468 = vector.broadcast %30 : f32 to vector<1x2xf32>
    %469 = arith.mulf %468, %355 : vector<1x2xf32>
    %470 = arith.addf %467, %469 : vector<1x2xf32>
    %471 = vector.broadcast %31 : f32 to vector<1x2xf32>
    %472 = arith.mulf %471, %369 : vector<1x2xf32>
    %473 = arith.addf %470, %472 : vector<1x2xf32>
    %474 = math.tanh %473 : vector<1x2xf32>
    %475 = tpu.concatenate %432, %446, %460, %474 in 0 : vector<1x2xf32>, vector<1x2xf32>, vector<1x2xf32>, vector<1x2xf32> -> vector<4x2xf32>
    %c0_167 = arith.constant 0 : index
    %c3_168 = arith.constant 3 : index
    %476 = memref.load %arg5[%c0_167, %c3_168] : memref<12x8xf32, #tpu.memory_space<smem>>
    %477 = vector.broadcast %476 : f32 to vector<4x2xf32>
    %478 = arith.mulf %477, %475 : vector<4x2xf32>
    %479 = arith.addf %374, %478 : vector<4x2xf32>
    %c1_169 = arith.constant 1 : index
    %c3_170 = arith.constant 3 : index
    %480 = memref.load %arg5[%c1_169, %c3_170] : memref<12x8xf32, #tpu.memory_space<smem>>
    %481 = vector.broadcast %480 : f32 to vector<4x2xf32>
    %482 = arith.mulf %481, %475 : vector<4x2xf32>
    %483 = arith.addf %378, %482 : vector<4x2xf32>
    %c2_171 = arith.constant 2 : index
    %c3_172 = arith.constant 3 : index
    %484 = memref.load %arg5[%c2_171, %c3_172] : memref<12x8xf32, #tpu.memory_space<smem>>
    %485 = vector.broadcast %484 : f32 to vector<4x2xf32>
    %486 = arith.mulf %485, %475 : vector<4x2xf32>
    %487 = arith.addf %382, %486 : vector<4x2xf32>
    %c3_173 = arith.constant 3 : index
    %c3_174 = arith.constant 3 : index
    %488 = memref.load %arg5[%c3_173, %c3_174] : memref<12x8xf32, #tpu.memory_space<smem>>
    %489 = vector.broadcast %488 : f32 to vector<4x2xf32>
    %490 = arith.mulf %489, %475 : vector<4x2xf32>
    %491 = arith.addf %386, %490 : vector<4x2xf32>
    %c4_175 = arith.constant 4 : index
    %c3_176 = arith.constant 3 : index
    %492 = memref.load %arg5[%c4_175, %c3_176] : memref<12x8xf32, #tpu.memory_space<smem>>
    %493 = vector.broadcast %492 : f32 to vector<4x2xf32>
    %494 = arith.mulf %493, %475 : vector<4x2xf32>
    %495 = arith.addf %390, %494 : vector<4x2xf32>
    %c5_177 = arith.constant 5 : index
    %c3_178 = arith.constant 3 : index
    %496 = memref.load %arg5[%c5_177, %c3_178] : memref<12x8xf32, #tpu.memory_space<smem>>
    %497 = vector.broadcast %496 : f32 to vector<4x2xf32>
    %498 = arith.mulf %497, %475 : vector<4x2xf32>
    %499 = arith.addf %394, %498 : vector<4x2xf32>
    %c6_179 = arith.constant 6 : index
    %c3_180 = arith.constant 3 : index
    %500 = memref.load %arg5[%c6_179, %c3_180] : memref<12x8xf32, #tpu.memory_space<smem>>
    %501 = vector.broadcast %500 : f32 to vector<4x2xf32>
    %502 = arith.mulf %501, %475 : vector<4x2xf32>
    %503 = arith.addf %398, %502 : vector<4x2xf32>
    %c7_181 = arith.constant 7 : index
    %c3_182 = arith.constant 3 : index
    %504 = memref.load %arg5[%c7_181, %c3_182] : memref<12x8xf32, #tpu.memory_space<smem>>
    %505 = vector.broadcast %504 : f32 to vector<4x2xf32>
    %506 = arith.mulf %505, %475 : vector<4x2xf32>
    %507 = arith.addf %402, %506 : vector<4x2xf32>
    %c8_183 = arith.constant 8 : index
    %c3_184 = arith.constant 3 : index
    %508 = memref.load %arg5[%c8_183, %c3_184] : memref<12x8xf32, #tpu.memory_space<smem>>
    %509 = vector.broadcast %508 : f32 to vector<4x2xf32>
    %510 = arith.mulf %509, %475 : vector<4x2xf32>
    %511 = arith.addf %406, %510 : vector<4x2xf32>
    %c9_185 = arith.constant 9 : index
    %c3_186 = arith.constant 3 : index
    %512 = memref.load %arg5[%c9_185, %c3_186] : memref<12x8xf32, #tpu.memory_space<smem>>
    %513 = vector.broadcast %512 : f32 to vector<4x2xf32>
    %514 = arith.mulf %513, %475 : vector<4x2xf32>
    %515 = arith.addf %410, %514 : vector<4x2xf32>
    %c10_187 = arith.constant 10 : index
    %c3_188 = arith.constant 3 : index
    %516 = memref.load %arg5[%c10_187, %c3_188] : memref<12x8xf32, #tpu.memory_space<smem>>
    %517 = vector.broadcast %516 : f32 to vector<4x2xf32>
    %518 = arith.mulf %517, %475 : vector<4x2xf32>
    %519 = arith.addf %414, %518 : vector<4x2xf32>
    %c11_189 = arith.constant 11 : index
    %c3_190 = arith.constant 3 : index
    %520 = memref.load %arg5[%c11_189, %c3_190] : memref<12x8xf32, #tpu.memory_space<smem>>
    %521 = vector.broadcast %520 : f32 to vector<4x2xf32>
    %522 = arith.mulf %521, %475 : vector<4x2xf32>
    %523 = arith.addf %418, %522 : vector<4x2xf32>
    %524 = vector.extract_strided_slice %55 {offsets = [4, 0], sizes = [1, 2], strides = [1, 1]} : vector<8x2xf32> to vector<1x2xf32>
    %525 = vector.broadcast %16 : f32 to vector<1x2xf32>
    %526 = arith.mulf %525, %432 : vector<1x2xf32>
    %527 = arith.addf %524, %526 : vector<1x2xf32>
    %528 = vector.broadcast %17 : f32 to vector<1x2xf32>
    %529 = arith.mulf %528, %446 : vector<1x2xf32>
    %530 = arith.addf %527, %529 : vector<1x2xf32>
    %531 = vector.broadcast %18 : f32 to vector<1x2xf32>
    %532 = arith.mulf %531, %460 : vector<1x2xf32>
    %533 = arith.addf %530, %532 : vector<1x2xf32>
    %534 = vector.broadcast %19 : f32 to vector<1x2xf32>
    %535 = arith.mulf %534, %474 : vector<1x2xf32>
    %536 = arith.addf %533, %535 : vector<1x2xf32>
    %537 = math.tanh %536 : vector<1x2xf32>
    %538 = vector.extract_strided_slice %71 {offsets = [4, 0], sizes = [1, 2], strides = [1, 1]} : vector<8x2xf32> to vector<1x2xf32>
    %539 = vector.broadcast %20 : f32 to vector<1x2xf32>
    %540 = arith.mulf %539, %432 : vector<1x2xf32>
    %541 = arith.addf %538, %540 : vector<1x2xf32>
    %542 = vector.broadcast %21 : f32 to vector<1x2xf32>
    %543 = arith.mulf %542, %446 : vector<1x2xf32>
    %544 = arith.addf %541, %543 : vector<1x2xf32>
    %545 = vector.broadcast %22 : f32 to vector<1x2xf32>
    %546 = arith.mulf %545, %460 : vector<1x2xf32>
    %547 = arith.addf %544, %546 : vector<1x2xf32>
    %548 = vector.broadcast %23 : f32 to vector<1x2xf32>
    %549 = arith.mulf %548, %474 : vector<1x2xf32>
    %550 = arith.addf %547, %549 : vector<1x2xf32>
    %551 = math.tanh %550 : vector<1x2xf32>
    %552 = vector.extract_strided_slice %87 {offsets = [4, 0], sizes = [1, 2], strides = [1, 1]} : vector<8x2xf32> to vector<1x2xf32>
    %553 = vector.broadcast %24 : f32 to vector<1x2xf32>
    %554 = arith.mulf %553, %432 : vector<1x2xf32>
    %555 = arith.addf %552, %554 : vector<1x2xf32>
    %556 = vector.broadcast %25 : f32 to vector<1x2xf32>
    %557 = arith.mulf %556, %446 : vector<1x2xf32>
    %558 = arith.addf %555, %557 : vector<1x2xf32>
    %559 = vector.broadcast %26 : f32 to vector<1x2xf32>
    %560 = arith.mulf %559, %460 : vector<1x2xf32>
    %561 = arith.addf %558, %560 : vector<1x2xf32>
    %562 = vector.broadcast %27 : f32 to vector<1x2xf32>
    %563 = arith.mulf %562, %474 : vector<1x2xf32>
    %564 = arith.addf %561, %563 : vector<1x2xf32>
    %565 = math.tanh %564 : vector<1x2xf32>
    %566 = vector.extract_strided_slice %103 {offsets = [4, 0], sizes = [1, 2], strides = [1, 1]} : vector<8x2xf32> to vector<1x2xf32>
    %567 = vector.broadcast %28 : f32 to vector<1x2xf32>
    %568 = arith.mulf %567, %432 : vector<1x2xf32>
    %569 = arith.addf %566, %568 : vector<1x2xf32>
    %570 = vector.broadcast %29 : f32 to vector<1x2xf32>
    %571 = arith.mulf %570, %446 : vector<1x2xf32>
    %572 = arith.addf %569, %571 : vector<1x2xf32>
    %573 = vector.broadcast %30 : f32 to vector<1x2xf32>
    %574 = arith.mulf %573, %460 : vector<1x2xf32>
    %575 = arith.addf %572, %574 : vector<1x2xf32>
    %576 = vector.broadcast %31 : f32 to vector<1x2xf32>
    %577 = arith.mulf %576, %474 : vector<1x2xf32>
    %578 = arith.addf %575, %577 : vector<1x2xf32>
    %579 = math.tanh %578 : vector<1x2xf32>
    %580 = tpu.concatenate %537, %551, %565, %579 in 0 : vector<1x2xf32>, vector<1x2xf32>, vector<1x2xf32>, vector<1x2xf32> -> vector<4x2xf32>
    %c0_191 = arith.constant 0 : index
    %c4_192 = arith.constant 4 : index
    %581 = memref.load %arg5[%c0_191, %c4_192] : memref<12x8xf32, #tpu.memory_space<smem>>
    %582 = vector.broadcast %581 : f32 to vector<4x2xf32>
    %583 = arith.mulf %582, %580 : vector<4x2xf32>
    %584 = arith.addf %479, %583 : vector<4x2xf32>
    %c1_193 = arith.constant 1 : index
    %c4_194 = arith.constant 4 : index
    %585 = memref.load %arg5[%c1_193, %c4_194] : memref<12x8xf32, #tpu.memory_space<smem>>
    %586 = vector.broadcast %585 : f32 to vector<4x2xf32>
    %587 = arith.mulf %586, %580 : vector<4x2xf32>
    %588 = arith.addf %483, %587 : vector<4x2xf32>
    %c2_195 = arith.constant 2 : index
    %c4_196 = arith.constant 4 : index
    %589 = memref.load %arg5[%c2_195, %c4_196] : memref<12x8xf32, #tpu.memory_space<smem>>
    %590 = vector.broadcast %589 : f32 to vector<4x2xf32>
    %591 = arith.mulf %590, %580 : vector<4x2xf32>
    %592 = arith.addf %487, %591 : vector<4x2xf32>
    %c3_197 = arith.constant 3 : index
    %c4_198 = arith.constant 4 : index
    %593 = memref.load %arg5[%c3_197, %c4_198] : memref<12x8xf32, #tpu.memory_space<smem>>
    %594 = vector.broadcast %593 : f32 to vector<4x2xf32>
    %595 = arith.mulf %594, %580 : vector<4x2xf32>
    %596 = arith.addf %491, %595 : vector<4x2xf32>
    %c4_199 = arith.constant 4 : index
    %c4_200 = arith.constant 4 : index
    %597 = memref.load %arg5[%c4_199, %c4_200] : memref<12x8xf32, #tpu.memory_space<smem>>
    %598 = vector.broadcast %597 : f32 to vector<4x2xf32>
    %599 = arith.mulf %598, %580 : vector<4x2xf32>
    %600 = arith.addf %495, %599 : vector<4x2xf32>
    %c5_201 = arith.constant 5 : index
    %c4_202 = arith.constant 4 : index
    %601 = memref.load %arg5[%c5_201, %c4_202] : memref<12x8xf32, #tpu.memory_space<smem>>
    %602 = vector.broadcast %601 : f32 to vector<4x2xf32>
    %603 = arith.mulf %602, %580 : vector<4x2xf32>
    %604 = arith.addf %499, %603 : vector<4x2xf32>
    %c6_203 = arith.constant 6 : index
    %c4_204 = arith.constant 4 : index
    %605 = memref.load %arg5[%c6_203, %c4_204] : memref<12x8xf32, #tpu.memory_space<smem>>
    %606 = vector.broadcast %605 : f32 to vector<4x2xf32>
    %607 = arith.mulf %606, %580 : vector<4x2xf32>
    %608 = arith.addf %503, %607 : vector<4x2xf32>
    %c7_205 = arith.constant 7 : index
    %c4_206 = arith.constant 4 : index
    %609 = memref.load %arg5[%c7_205, %c4_206] : memref<12x8xf32, #tpu.memory_space<smem>>
    %610 = vector.broadcast %609 : f32 to vector<4x2xf32>
    %611 = arith.mulf %610, %580 : vector<4x2xf32>
    %612 = arith.addf %507, %611 : vector<4x2xf32>
    %c8_207 = arith.constant 8 : index
    %c4_208 = arith.constant 4 : index
    %613 = memref.load %arg5[%c8_207, %c4_208] : memref<12x8xf32, #tpu.memory_space<smem>>
    %614 = vector.broadcast %613 : f32 to vector<4x2xf32>
    %615 = arith.mulf %614, %580 : vector<4x2xf32>
    %616 = arith.addf %511, %615 : vector<4x2xf32>
    %c9_209 = arith.constant 9 : index
    %c4_210 = arith.constant 4 : index
    %617 = memref.load %arg5[%c9_209, %c4_210] : memref<12x8xf32, #tpu.memory_space<smem>>
    %618 = vector.broadcast %617 : f32 to vector<4x2xf32>
    %619 = arith.mulf %618, %580 : vector<4x2xf32>
    %620 = arith.addf %515, %619 : vector<4x2xf32>
    %c10_211 = arith.constant 10 : index
    %c4_212 = arith.constant 4 : index
    %621 = memref.load %arg5[%c10_211, %c4_212] : memref<12x8xf32, #tpu.memory_space<smem>>
    %622 = vector.broadcast %621 : f32 to vector<4x2xf32>
    %623 = arith.mulf %622, %580 : vector<4x2xf32>
    %624 = arith.addf %519, %623 : vector<4x2xf32>
    %c11_213 = arith.constant 11 : index
    %c4_214 = arith.constant 4 : index
    %625 = memref.load %arg5[%c11_213, %c4_214] : memref<12x8xf32, #tpu.memory_space<smem>>
    %626 = vector.broadcast %625 : f32 to vector<4x2xf32>
    %627 = arith.mulf %626, %580 : vector<4x2xf32>
    %628 = arith.addf %523, %627 : vector<4x2xf32>
    %629 = vector.extract_strided_slice %55 {offsets = [5, 0], sizes = [1, 2], strides = [1, 1]} : vector<8x2xf32> to vector<1x2xf32>
    %630 = vector.broadcast %16 : f32 to vector<1x2xf32>
    %631 = arith.mulf %630, %537 : vector<1x2xf32>
    %632 = arith.addf %629, %631 : vector<1x2xf32>
    %633 = vector.broadcast %17 : f32 to vector<1x2xf32>
    %634 = arith.mulf %633, %551 : vector<1x2xf32>
    %635 = arith.addf %632, %634 : vector<1x2xf32>
    %636 = vector.broadcast %18 : f32 to vector<1x2xf32>
    %637 = arith.mulf %636, %565 : vector<1x2xf32>
    %638 = arith.addf %635, %637 : vector<1x2xf32>
    %639 = vector.broadcast %19 : f32 to vector<1x2xf32>
    %640 = arith.mulf %639, %579 : vector<1x2xf32>
    %641 = arith.addf %638, %640 : vector<1x2xf32>
    %642 = math.tanh %641 : vector<1x2xf32>
    %643 = vector.extract_strided_slice %71 {offsets = [5, 0], sizes = [1, 2], strides = [1, 1]} : vector<8x2xf32> to vector<1x2xf32>
    %644 = vector.broadcast %20 : f32 to vector<1x2xf32>
    %645 = arith.mulf %644, %537 : vector<1x2xf32>
    %646 = arith.addf %643, %645 : vector<1x2xf32>
    %647 = vector.broadcast %21 : f32 to vector<1x2xf32>
    %648 = arith.mulf %647, %551 : vector<1x2xf32>
    %649 = arith.addf %646, %648 : vector<1x2xf32>
    %650 = vector.broadcast %22 : f32 to vector<1x2xf32>
    %651 = arith.mulf %650, %565 : vector<1x2xf32>
    %652 = arith.addf %649, %651 : vector<1x2xf32>
    %653 = vector.broadcast %23 : f32 to vector<1x2xf32>
    %654 = arith.mulf %653, %579 : vector<1x2xf32>
    %655 = arith.addf %652, %654 : vector<1x2xf32>
    %656 = math.tanh %655 : vector<1x2xf32>
    %657 = vector.extract_strided_slice %87 {offsets = [5, 0], sizes = [1, 2], strides = [1, 1]} : vector<8x2xf32> to vector<1x2xf32>
    %658 = vector.broadcast %24 : f32 to vector<1x2xf32>
    %659 = arith.mulf %658, %537 : vector<1x2xf32>
    %660 = arith.addf %657, %659 : vector<1x2xf32>
    %661 = vector.broadcast %25 : f32 to vector<1x2xf32>
    %662 = arith.mulf %661, %551 : vector<1x2xf32>
    %663 = arith.addf %660, %662 : vector<1x2xf32>
    %664 = vector.broadcast %26 : f32 to vector<1x2xf32>
    %665 = arith.mulf %664, %565 : vector<1x2xf32>
    %666 = arith.addf %663, %665 : vector<1x2xf32>
    %667 = vector.broadcast %27 : f32 to vector<1x2xf32>
    %668 = arith.mulf %667, %579 : vector<1x2xf32>
    %669 = arith.addf %666, %668 : vector<1x2xf32>
    %670 = math.tanh %669 : vector<1x2xf32>
    %671 = vector.extract_strided_slice %103 {offsets = [5, 0], sizes = [1, 2], strides = [1, 1]} : vector<8x2xf32> to vector<1x2xf32>
    %672 = vector.broadcast %28 : f32 to vector<1x2xf32>
    %673 = arith.mulf %672, %537 : vector<1x2xf32>
    %674 = arith.addf %671, %673 : vector<1x2xf32>
    %675 = vector.broadcast %29 : f32 to vector<1x2xf32>
    %676 = arith.mulf %675, %551 : vector<1x2xf32>
    %677 = arith.addf %674, %676 : vector<1x2xf32>
    %678 = vector.broadcast %30 : f32 to vector<1x2xf32>
    %679 = arith.mulf %678, %565 : vector<1x2xf32>
    %680 = arith.addf %677, %679 : vector<1x2xf32>
    %681 = vector.broadcast %31 : f32 to vector<1x2xf32>
    %682 = arith.mulf %681, %579 : vector<1x2xf32>
    %683 = arith.addf %680, %682 : vector<1x2xf32>
    %684 = math.tanh %683 : vector<1x2xf32>
    %685 = tpu.concatenate %642, %656, %670, %684 in 0 : vector<1x2xf32>, vector<1x2xf32>, vector<1x2xf32>, vector<1x2xf32> -> vector<4x2xf32>
    %c0_215 = arith.constant 0 : index
    %c5_216 = arith.constant 5 : index
    %686 = memref.load %arg5[%c0_215, %c5_216] : memref<12x8xf32, #tpu.memory_space<smem>>
    %687 = vector.broadcast %686 : f32 to vector<4x2xf32>
    %688 = arith.mulf %687, %685 : vector<4x2xf32>
    %689 = arith.addf %584, %688 : vector<4x2xf32>
    %c1_217 = arith.constant 1 : index
    %c5_218 = arith.constant 5 : index
    %690 = memref.load %arg5[%c1_217, %c5_218] : memref<12x8xf32, #tpu.memory_space<smem>>
    %691 = vector.broadcast %690 : f32 to vector<4x2xf32>
    %692 = arith.mulf %691, %685 : vector<4x2xf32>
    %693 = arith.addf %588, %692 : vector<4x2xf32>
    %c2_219 = arith.constant 2 : index
    %c5_220 = arith.constant 5 : index
    %694 = memref.load %arg5[%c2_219, %c5_220] : memref<12x8xf32, #tpu.memory_space<smem>>
    %695 = vector.broadcast %694 : f32 to vector<4x2xf32>
    %696 = arith.mulf %695, %685 : vector<4x2xf32>
    %697 = arith.addf %592, %696 : vector<4x2xf32>
    %c3_221 = arith.constant 3 : index
    %c5_222 = arith.constant 5 : index
    %698 = memref.load %arg5[%c3_221, %c5_222] : memref<12x8xf32, #tpu.memory_space<smem>>
    %699 = vector.broadcast %698 : f32 to vector<4x2xf32>
    %700 = arith.mulf %699, %685 : vector<4x2xf32>
    %701 = arith.addf %596, %700 : vector<4x2xf32>
    %c4_223 = arith.constant 4 : index
    %c5_224 = arith.constant 5 : index
    %702 = memref.load %arg5[%c4_223, %c5_224] : memref<12x8xf32, #tpu.memory_space<smem>>
    %703 = vector.broadcast %702 : f32 to vector<4x2xf32>
    %704 = arith.mulf %703, %685 : vector<4x2xf32>
    %705 = arith.addf %600, %704 : vector<4x2xf32>
    %c5_225 = arith.constant 5 : index
    %c5_226 = arith.constant 5 : index
    %706 = memref.load %arg5[%c5_225, %c5_226] : memref<12x8xf32, #tpu.memory_space<smem>>
    %707 = vector.broadcast %706 : f32 to vector<4x2xf32>
    %708 = arith.mulf %707, %685 : vector<4x2xf32>
    %709 = arith.addf %604, %708 : vector<4x2xf32>
    %c6_227 = arith.constant 6 : index
    %c5_228 = arith.constant 5 : index
    %710 = memref.load %arg5[%c6_227, %c5_228] : memref<12x8xf32, #tpu.memory_space<smem>>
    %711 = vector.broadcast %710 : f32 to vector<4x2xf32>
    %712 = arith.mulf %711, %685 : vector<4x2xf32>
    %713 = arith.addf %608, %712 : vector<4x2xf32>
    %c7_229 = arith.constant 7 : index
    %c5_230 = arith.constant 5 : index
    %714 = memref.load %arg5[%c7_229, %c5_230] : memref<12x8xf32, #tpu.memory_space<smem>>
    %715 = vector.broadcast %714 : f32 to vector<4x2xf32>
    %716 = arith.mulf %715, %685 : vector<4x2xf32>
    %717 = arith.addf %612, %716 : vector<4x2xf32>
    %c8_231 = arith.constant 8 : index
    %c5_232 = arith.constant 5 : index
    %718 = memref.load %arg5[%c8_231, %c5_232] : memref<12x8xf32, #tpu.memory_space<smem>>
    %719 = vector.broadcast %718 : f32 to vector<4x2xf32>
    %720 = arith.mulf %719, %685 : vector<4x2xf32>
    %721 = arith.addf %616, %720 : vector<4x2xf32>
    %c9_233 = arith.constant 9 : index
    %c5_234 = arith.constant 5 : index
    %722 = memref.load %arg5[%c9_233, %c5_234] : memref<12x8xf32, #tpu.memory_space<smem>>
    %723 = vector.broadcast %722 : f32 to vector<4x2xf32>
    %724 = arith.mulf %723, %685 : vector<4x2xf32>
    %725 = arith.addf %620, %724 : vector<4x2xf32>
    %c10_235 = arith.constant 10 : index
    %c5_236 = arith.constant 5 : index
    %726 = memref.load %arg5[%c10_235, %c5_236] : memref<12x8xf32, #tpu.memory_space<smem>>
    %727 = vector.broadcast %726 : f32 to vector<4x2xf32>
    %728 = arith.mulf %727, %685 : vector<4x2xf32>
    %729 = arith.addf %624, %728 : vector<4x2xf32>
    %c11_237 = arith.constant 11 : index
    %c5_238 = arith.constant 5 : index
    %730 = memref.load %arg5[%c11_237, %c5_238] : memref<12x8xf32, #tpu.memory_space<smem>>
    %731 = vector.broadcast %730 : f32 to vector<4x2xf32>
    %732 = arith.mulf %731, %685 : vector<4x2xf32>
    %733 = arith.addf %628, %732 : vector<4x2xf32>
    %734 = vector.extract_strided_slice %55 {offsets = [6, 0], sizes = [1, 2], strides = [1, 1]} : vector<8x2xf32> to vector<1x2xf32>
    %735 = vector.broadcast %16 : f32 to vector<1x2xf32>
    %736 = arith.mulf %735, %642 : vector<1x2xf32>
    %737 = arith.addf %734, %736 : vector<1x2xf32>
    %738 = vector.broadcast %17 : f32 to vector<1x2xf32>
    %739 = arith.mulf %738, %656 : vector<1x2xf32>
    %740 = arith.addf %737, %739 : vector<1x2xf32>
    %741 = vector.broadcast %18 : f32 to vector<1x2xf32>
    %742 = arith.mulf %741, %670 : vector<1x2xf32>
    %743 = arith.addf %740, %742 : vector<1x2xf32>
    %744 = vector.broadcast %19 : f32 to vector<1x2xf32>
    %745 = arith.mulf %744, %684 : vector<1x2xf32>
    %746 = arith.addf %743, %745 : vector<1x2xf32>
    %747 = math.tanh %746 : vector<1x2xf32>
    %748 = vector.extract_strided_slice %71 {offsets = [6, 0], sizes = [1, 2], strides = [1, 1]} : vector<8x2xf32> to vector<1x2xf32>
    %749 = vector.broadcast %20 : f32 to vector<1x2xf32>
    %750 = arith.mulf %749, %642 : vector<1x2xf32>
    %751 = arith.addf %748, %750 : vector<1x2xf32>
    %752 = vector.broadcast %21 : f32 to vector<1x2xf32>
    %753 = arith.mulf %752, %656 : vector<1x2xf32>
    %754 = arith.addf %751, %753 : vector<1x2xf32>
    %755 = vector.broadcast %22 : f32 to vector<1x2xf32>
    %756 = arith.mulf %755, %670 : vector<1x2xf32>
    %757 = arith.addf %754, %756 : vector<1x2xf32>
    %758 = vector.broadcast %23 : f32 to vector<1x2xf32>
    %759 = arith.mulf %758, %684 : vector<1x2xf32>
    %760 = arith.addf %757, %759 : vector<1x2xf32>
    %761 = math.tanh %760 : vector<1x2xf32>
    %762 = vector.extract_strided_slice %87 {offsets = [6, 0], sizes = [1, 2], strides = [1, 1]} : vector<8x2xf32> to vector<1x2xf32>
    %763 = vector.broadcast %24 : f32 to vector<1x2xf32>
    %764 = arith.mulf %763, %642 : vector<1x2xf32>
    %765 = arith.addf %762, %764 : vector<1x2xf32>
    %766 = vector.broadcast %25 : f32 to vector<1x2xf32>
    %767 = arith.mulf %766, %656 : vector<1x2xf32>
    %768 = arith.addf %765, %767 : vector<1x2xf32>
    %769 = vector.broadcast %26 : f32 to vector<1x2xf32>
    %770 = arith.mulf %769, %670 : vector<1x2xf32>
    %771 = arith.addf %768, %770 : vector<1x2xf32>
    %772 = vector.broadcast %27 : f32 to vector<1x2xf32>
    %773 = arith.mulf %772, %684 : vector<1x2xf32>
    %774 = arith.addf %771, %773 : vector<1x2xf32>
    %775 = math.tanh %774 : vector<1x2xf32>
    %776 = vector.extract_strided_slice %103 {offsets = [6, 0], sizes = [1, 2], strides = [1, 1]} : vector<8x2xf32> to vector<1x2xf32>
    %777 = vector.broadcast %28 : f32 to vector<1x2xf32>
    %778 = arith.mulf %777, %642 : vector<1x2xf32>
    %779 = arith.addf %776, %778 : vector<1x2xf32>
    %780 = vector.broadcast %29 : f32 to vector<1x2xf32>
    %781 = arith.mulf %780, %656 : vector<1x2xf32>
    %782 = arith.addf %779, %781 : vector<1x2xf32>
    %783 = vector.broadcast %30 : f32 to vector<1x2xf32>
    %784 = arith.mulf %783, %670 : vector<1x2xf32>
    %785 = arith.addf %782, %784 : vector<1x2xf32>
    %786 = vector.broadcast %31 : f32 to vector<1x2xf32>
    %787 = arith.mulf %786, %684 : vector<1x2xf32>
    %788 = arith.addf %785, %787 : vector<1x2xf32>
    %789 = math.tanh %788 : vector<1x2xf32>
    %790 = tpu.concatenate %747, %761, %775, %789 in 0 : vector<1x2xf32>, vector<1x2xf32>, vector<1x2xf32>, vector<1x2xf32> -> vector<4x2xf32>
    %c0_239 = arith.constant 0 : index
    %c6_240 = arith.constant 6 : index
    %791 = memref.load %arg5[%c0_239, %c6_240] : memref<12x8xf32, #tpu.memory_space<smem>>
    %792 = vector.broadcast %791 : f32 to vector<4x2xf32>
    %793 = arith.mulf %792, %790 : vector<4x2xf32>
    %794 = arith.addf %689, %793 : vector<4x2xf32>
    %c1_241 = arith.constant 1 : index
    %c6_242 = arith.constant 6 : index
    %795 = memref.load %arg5[%c1_241, %c6_242] : memref<12x8xf32, #tpu.memory_space<smem>>
    %796 = vector.broadcast %795 : f32 to vector<4x2xf32>
    %797 = arith.mulf %796, %790 : vector<4x2xf32>
    %798 = arith.addf %693, %797 : vector<4x2xf32>
    %c2_243 = arith.constant 2 : index
    %c6_244 = arith.constant 6 : index
    %799 = memref.load %arg5[%c2_243, %c6_244] : memref<12x8xf32, #tpu.memory_space<smem>>
    %800 = vector.broadcast %799 : f32 to vector<4x2xf32>
    %801 = arith.mulf %800, %790 : vector<4x2xf32>
    %802 = arith.addf %697, %801 : vector<4x2xf32>
    %c3_245 = arith.constant 3 : index
    %c6_246 = arith.constant 6 : index
    %803 = memref.load %arg5[%c3_245, %c6_246] : memref<12x8xf32, #tpu.memory_space<smem>>
    %804 = vector.broadcast %803 : f32 to vector<4x2xf32>
    %805 = arith.mulf %804, %790 : vector<4x2xf32>
    %806 = arith.addf %701, %805 : vector<4x2xf32>
    %c4_247 = arith.constant 4 : index
    %c6_248 = arith.constant 6 : index
    %807 = memref.load %arg5[%c4_247, %c6_248] : memref<12x8xf32, #tpu.memory_space<smem>>
    %808 = vector.broadcast %807 : f32 to vector<4x2xf32>
    %809 = arith.mulf %808, %790 : vector<4x2xf32>
    %810 = arith.addf %705, %809 : vector<4x2xf32>
    %c5_249 = arith.constant 5 : index
    %c6_250 = arith.constant 6 : index
    %811 = memref.load %arg5[%c5_249, %c6_250] : memref<12x8xf32, #tpu.memory_space<smem>>
    %812 = vector.broadcast %811 : f32 to vector<4x2xf32>
    %813 = arith.mulf %812, %790 : vector<4x2xf32>
    %814 = arith.addf %709, %813 : vector<4x2xf32>
    %c6_251 = arith.constant 6 : index
    %c6_252 = arith.constant 6 : index
    %815 = memref.load %arg5[%c6_251, %c6_252] : memref<12x8xf32, #tpu.memory_space<smem>>
    %816 = vector.broadcast %815 : f32 to vector<4x2xf32>
    %817 = arith.mulf %816, %790 : vector<4x2xf32>
    %818 = arith.addf %713, %817 : vector<4x2xf32>
    %c7_253 = arith.constant 7 : index
    %c6_254 = arith.constant 6 : index
    %819 = memref.load %arg5[%c7_253, %c6_254] : memref<12x8xf32, #tpu.memory_space<smem>>
    %820 = vector.broadcast %819 : f32 to vector<4x2xf32>
    %821 = arith.mulf %820, %790 : vector<4x2xf32>
    %822 = arith.addf %717, %821 : vector<4x2xf32>
    %c8_255 = arith.constant 8 : index
    %c6_256 = arith.constant 6 : index
    %823 = memref.load %arg5[%c8_255, %c6_256] : memref<12x8xf32, #tpu.memory_space<smem>>
    %824 = vector.broadcast %823 : f32 to vector<4x2xf32>
    %825 = arith.mulf %824, %790 : vector<4x2xf32>
    %826 = arith.addf %721, %825 : vector<4x2xf32>
    %c9_257 = arith.constant 9 : index
    %c6_258 = arith.constant 6 : index
    %827 = memref.load %arg5[%c9_257, %c6_258] : memref<12x8xf32, #tpu.memory_space<smem>>
    %828 = vector.broadcast %827 : f32 to vector<4x2xf32>
    %829 = arith.mulf %828, %790 : vector<4x2xf32>
    %830 = arith.addf %725, %829 : vector<4x2xf32>
    %c10_259 = arith.constant 10 : index
    %c6_260 = arith.constant 6 : index
    %831 = memref.load %arg5[%c10_259, %c6_260] : memref<12x8xf32, #tpu.memory_space<smem>>
    %832 = vector.broadcast %831 : f32 to vector<4x2xf32>
    %833 = arith.mulf %832, %790 : vector<4x2xf32>
    %834 = arith.addf %729, %833 : vector<4x2xf32>
    %c11_261 = arith.constant 11 : index
    %c6_262 = arith.constant 6 : index
    %835 = memref.load %arg5[%c11_261, %c6_262] : memref<12x8xf32, #tpu.memory_space<smem>>
    %836 = vector.broadcast %835 : f32 to vector<4x2xf32>
    %837 = arith.mulf %836, %790 : vector<4x2xf32>
    %838 = arith.addf %733, %837 : vector<4x2xf32>
    %839 = vector.extract_strided_slice %55 {offsets = [7, 0], sizes = [1, 2], strides = [1, 1]} : vector<8x2xf32> to vector<1x2xf32>
    %840 = vector.broadcast %16 : f32 to vector<1x2xf32>
    %841 = arith.mulf %840, %747 : vector<1x2xf32>
    %842 = arith.addf %839, %841 : vector<1x2xf32>
    %843 = vector.broadcast %17 : f32 to vector<1x2xf32>
    %844 = arith.mulf %843, %761 : vector<1x2xf32>
    %845 = arith.addf %842, %844 : vector<1x2xf32>
    %846 = vector.broadcast %18 : f32 to vector<1x2xf32>
    %847 = arith.mulf %846, %775 : vector<1x2xf32>
    %848 = arith.addf %845, %847 : vector<1x2xf32>
    %849 = vector.broadcast %19 : f32 to vector<1x2xf32>
    %850 = arith.mulf %849, %789 : vector<1x2xf32>
    %851 = arith.addf %848, %850 : vector<1x2xf32>
    %852 = math.tanh %851 : vector<1x2xf32>
    %853 = vector.extract_strided_slice %71 {offsets = [7, 0], sizes = [1, 2], strides = [1, 1]} : vector<8x2xf32> to vector<1x2xf32>
    %854 = vector.broadcast %20 : f32 to vector<1x2xf32>
    %855 = arith.mulf %854, %747 : vector<1x2xf32>
    %856 = arith.addf %853, %855 : vector<1x2xf32>
    %857 = vector.broadcast %21 : f32 to vector<1x2xf32>
    %858 = arith.mulf %857, %761 : vector<1x2xf32>
    %859 = arith.addf %856, %858 : vector<1x2xf32>
    %860 = vector.broadcast %22 : f32 to vector<1x2xf32>
    %861 = arith.mulf %860, %775 : vector<1x2xf32>
    %862 = arith.addf %859, %861 : vector<1x2xf32>
    %863 = vector.broadcast %23 : f32 to vector<1x2xf32>
    %864 = arith.mulf %863, %789 : vector<1x2xf32>
    %865 = arith.addf %862, %864 : vector<1x2xf32>
    %866 = math.tanh %865 : vector<1x2xf32>
    %867 = vector.extract_strided_slice %87 {offsets = [7, 0], sizes = [1, 2], strides = [1, 1]} : vector<8x2xf32> to vector<1x2xf32>
    %868 = vector.broadcast %24 : f32 to vector<1x2xf32>
    %869 = arith.mulf %868, %747 : vector<1x2xf32>
    %870 = arith.addf %867, %869 : vector<1x2xf32>
    %871 = vector.broadcast %25 : f32 to vector<1x2xf32>
    %872 = arith.mulf %871, %761 : vector<1x2xf32>
    %873 = arith.addf %870, %872 : vector<1x2xf32>
    %874 = vector.broadcast %26 : f32 to vector<1x2xf32>
    %875 = arith.mulf %874, %775 : vector<1x2xf32>
    %876 = arith.addf %873, %875 : vector<1x2xf32>
    %877 = vector.broadcast %27 : f32 to vector<1x2xf32>
    %878 = arith.mulf %877, %789 : vector<1x2xf32>
    %879 = arith.addf %876, %878 : vector<1x2xf32>
    %880 = math.tanh %879 : vector<1x2xf32>
    %881 = vector.extract_strided_slice %103 {offsets = [7, 0], sizes = [1, 2], strides = [1, 1]} : vector<8x2xf32> to vector<1x2xf32>
    %882 = vector.broadcast %28 : f32 to vector<1x2xf32>
    %883 = arith.mulf %882, %747 : vector<1x2xf32>
    %884 = arith.addf %881, %883 : vector<1x2xf32>
    %885 = vector.broadcast %29 : f32 to vector<1x2xf32>
    %886 = arith.mulf %885, %761 : vector<1x2xf32>
    %887 = arith.addf %884, %886 : vector<1x2xf32>
    %888 = vector.broadcast %30 : f32 to vector<1x2xf32>
    %889 = arith.mulf %888, %775 : vector<1x2xf32>
    %890 = arith.addf %887, %889 : vector<1x2xf32>
    %891 = vector.broadcast %31 : f32 to vector<1x2xf32>
    %892 = arith.mulf %891, %789 : vector<1x2xf32>
    %893 = arith.addf %890, %892 : vector<1x2xf32>
    %894 = math.tanh %893 : vector<1x2xf32>
    %895 = tpu.concatenate %852, %866, %880, %894 in 0 : vector<1x2xf32>, vector<1x2xf32>, vector<1x2xf32>, vector<1x2xf32> -> vector<4x2xf32>
    %c0_263 = arith.constant 0 : index
    %c7_264 = arith.constant 7 : index
    %896 = memref.load %arg5[%c0_263, %c7_264] : memref<12x8xf32, #tpu.memory_space<smem>>
    %897 = vector.broadcast %896 : f32 to vector<4x2xf32>
    %898 = arith.mulf %897, %895 : vector<4x2xf32>
    %899 = arith.addf %794, %898 : vector<4x2xf32>
    %c1_265 = arith.constant 1 : index
    %c7_266 = arith.constant 7 : index
    %900 = memref.load %arg5[%c1_265, %c7_266] : memref<12x8xf32, #tpu.memory_space<smem>>
    %901 = vector.broadcast %900 : f32 to vector<4x2xf32>
    %902 = arith.mulf %901, %895 : vector<4x2xf32>
    %903 = arith.addf %798, %902 : vector<4x2xf32>
    %c2_267 = arith.constant 2 : index
    %c7_268 = arith.constant 7 : index
    %904 = memref.load %arg5[%c2_267, %c7_268] : memref<12x8xf32, #tpu.memory_space<smem>>
    %905 = vector.broadcast %904 : f32 to vector<4x2xf32>
    %906 = arith.mulf %905, %895 : vector<4x2xf32>
    %907 = arith.addf %802, %906 : vector<4x2xf32>
    %c3_269 = arith.constant 3 : index
    %c7_270 = arith.constant 7 : index
    %908 = memref.load %arg5[%c3_269, %c7_270] : memref<12x8xf32, #tpu.memory_space<smem>>
    %909 = vector.broadcast %908 : f32 to vector<4x2xf32>
    %910 = arith.mulf %909, %895 : vector<4x2xf32>
    %911 = arith.addf %806, %910 : vector<4x2xf32>
    %c4_271 = arith.constant 4 : index
    %c7_272 = arith.constant 7 : index
    %912 = memref.load %arg5[%c4_271, %c7_272] : memref<12x8xf32, #tpu.memory_space<smem>>
    %913 = vector.broadcast %912 : f32 to vector<4x2xf32>
    %914 = arith.mulf %913, %895 : vector<4x2xf32>
    %915 = arith.addf %810, %914 : vector<4x2xf32>
    %c5_273 = arith.constant 5 : index
    %c7_274 = arith.constant 7 : index
    %916 = memref.load %arg5[%c5_273, %c7_274] : memref<12x8xf32, #tpu.memory_space<smem>>
    %917 = vector.broadcast %916 : f32 to vector<4x2xf32>
    %918 = arith.mulf %917, %895 : vector<4x2xf32>
    %919 = arith.addf %814, %918 : vector<4x2xf32>
    %c6_275 = arith.constant 6 : index
    %c7_276 = arith.constant 7 : index
    %920 = memref.load %arg5[%c6_275, %c7_276] : memref<12x8xf32, #tpu.memory_space<smem>>
    %921 = vector.broadcast %920 : f32 to vector<4x2xf32>
    %922 = arith.mulf %921, %895 : vector<4x2xf32>
    %923 = arith.addf %818, %922 : vector<4x2xf32>
    %c7_277 = arith.constant 7 : index
    %c7_278 = arith.constant 7 : index
    %924 = memref.load %arg5[%c7_277, %c7_278] : memref<12x8xf32, #tpu.memory_space<smem>>
    %925 = vector.broadcast %924 : f32 to vector<4x2xf32>
    %926 = arith.mulf %925, %895 : vector<4x2xf32>
    %927 = arith.addf %822, %926 : vector<4x2xf32>
    %c8_279 = arith.constant 8 : index
    %c7_280 = arith.constant 7 : index
    %928 = memref.load %arg5[%c8_279, %c7_280] : memref<12x8xf32, #tpu.memory_space<smem>>
    %929 = vector.broadcast %928 : f32 to vector<4x2xf32>
    %930 = arith.mulf %929, %895 : vector<4x2xf32>
    %931 = arith.addf %826, %930 : vector<4x2xf32>
    %c9_281 = arith.constant 9 : index
    %c7_282 = arith.constant 7 : index
    %932 = memref.load %arg5[%c9_281, %c7_282] : memref<12x8xf32, #tpu.memory_space<smem>>
    %933 = vector.broadcast %932 : f32 to vector<4x2xf32>
    %934 = arith.mulf %933, %895 : vector<4x2xf32>
    %935 = arith.addf %830, %934 : vector<4x2xf32>
    %c10_283 = arith.constant 10 : index
    %c7_284 = arith.constant 7 : index
    %936 = memref.load %arg5[%c10_283, %c7_284] : memref<12x8xf32, #tpu.memory_space<smem>>
    %937 = vector.broadcast %936 : f32 to vector<4x2xf32>
    %938 = arith.mulf %937, %895 : vector<4x2xf32>
    %939 = arith.addf %834, %938 : vector<4x2xf32>
    %c11_285 = arith.constant 11 : index
    %c7_286 = arith.constant 7 : index
    %940 = memref.load %arg5[%c11_285, %c7_286] : memref<12x8xf32, #tpu.memory_space<smem>>
    %941 = vector.broadcast %940 : f32 to vector<4x2xf32>
    %942 = arith.mulf %941, %895 : vector<4x2xf32>
    %943 = arith.addf %838, %942 : vector<4x2xf32>
    %c0_287 = arith.constant 0 : index
    %c0_288 = arith.constant 0 : index
    %c0_289 = arith.constant 0 : index
    %944 = vector.load %arg7[%c0_287, %c0_288, %c0_289] : memref<12x4x2xf32, #tpu.memory_space<vmem>>, vector<1x4x2xf32>
    %945 = vector.shape_cast %944 : vector<1x4x2xf32> to vector<4x2xf32>
    %946 = vector.shape_cast %899 : vector<4x2xf32> to vector<1x4x2xf32>
    tpu.vector_store %arg7[%c0_287, %c0_288, %c0_289], %946 {strides = array<i32>} : memref<12x4x2xf32, #tpu.memory_space<vmem>>, vector<1x4x2xf32>,
    %c1_290 = arith.constant 1 : index
    %c0_291 = arith.constant 0 : index
    %c0_292 = arith.constant 0 : index
    %947 = vector.load %arg7[%c1_290, %c0_291, %c0_292] : memref<12x4x2xf32, #tpu.memory_space<vmem>>, vector<1x4x2xf32>
    %948 = vector.shape_cast %947 : vector<1x4x2xf32> to vector<4x2xf32>
    %949 = vector.shape_cast %903 : vector<4x2xf32> to vector<1x4x2xf32>
    tpu.vector_store %arg7[%c1_290, %c0_291, %c0_292], %949 {strides = array<i32>} : memref<12x4x2xf32, #tpu.memory_space<vmem>>, vector<1x4x2xf32>,
    %c2_293 = arith.constant 2 : index
    %c0_294 = arith.constant 0 : index
    %c0_295 = arith.constant 0 : index
    %950 = vector.load %arg7[%c2_293, %c0_294, %c0_295] : memref<12x4x2xf32, #tpu.memory_space<vmem>>, vector<1x4x2xf32>
    %951 = vector.shape_cast %950 : vector<1x4x2xf32> to vector<4x2xf32>
    %952 = vector.shape_cast %907 : vector<4x2xf32> to vector<1x4x2xf32>
    tpu.vector_store %arg7[%c2_293, %c0_294, %c0_295], %952 {strides = array<i32>} : memref<12x4x2xf32, #tpu.memory_space<vmem>>, vector<1x4x2xf32>,
    %c3_296 = arith.constant 3 : index
    %c0_297 = arith.constant 0 : index
    %c0_298 = arith.constant 0 : index
    %953 = vector.load %arg7[%c3_296, %c0_297, %c0_298] : memref<12x4x2xf32, #tpu.memory_space<vmem>>, vector<1x4x2xf32>
    %954 = vector.shape_cast %953 : vector<1x4x2xf32> to vector<4x2xf32>
    %955 = vector.shape_cast %911 : vector<4x2xf32> to vector<1x4x2xf32>
    tpu.vector_store %arg7[%c3_296, %c0_297, %c0_298], %955 {strides = array<i32>} : memref<12x4x2xf32, #tpu.memory_space<vmem>>, vector<1x4x2xf32>,
    %c4_299 = arith.constant 4 : index
    %c0_300 = arith.constant 0 : index
    %c0_301 = arith.constant 0 : index
    %956 = vector.load %arg7[%c4_299, %c0_300, %c0_301] : memref<12x4x2xf32, #tpu.memory_space<vmem>>, vector<1x4x2xf32>
    %957 = vector.shape_cast %956 : vector<1x4x2xf32> to vector<4x2xf32>
    %958 = vector.shape_cast %915 : vector<4x2xf32> to vector<1x4x2xf32>
    tpu.vector_store %arg7[%c4_299, %c0_300, %c0_301], %958 {strides = array<i32>} : memref<12x4x2xf32, #tpu.memory_space<vmem>>, vector<1x4x2xf32>,
    %c5_302 = arith.constant 5 : index
    %c0_303 = arith.constant 0 : index
    %c0_304 = arith.constant 0 : index
    %959 = vector.load %arg7[%c5_302, %c0_303, %c0_304] : memref<12x4x2xf32, #tpu.memory_space<vmem>>, vector<1x4x2xf32>
    %960 = vector.shape_cast %959 : vector<1x4x2xf32> to vector<4x2xf32>
    %961 = vector.shape_cast %919 : vector<4x2xf32> to vector<1x4x2xf32>
    tpu.vector_store %arg7[%c5_302, %c0_303, %c0_304], %961 {strides = array<i32>} : memref<12x4x2xf32, #tpu.memory_space<vmem>>, vector<1x4x2xf32>,
    %c6_305 = arith.constant 6 : index
    %c0_306 = arith.constant 0 : index
    %c0_307 = arith.constant 0 : index
    %962 = vector.load %arg7[%c6_305, %c0_306, %c0_307] : memref<12x4x2xf32, #tpu.memory_space<vmem>>, vector<1x4x2xf32>
    %963 = vector.shape_cast %962 : vector<1x4x2xf32> to vector<4x2xf32>
    %964 = vector.shape_cast %923 : vector<4x2xf32> to vector<1x4x2xf32>
    tpu.vector_store %arg7[%c6_305, %c0_306, %c0_307], %964 {strides = array<i32>} : memref<12x4x2xf32, #tpu.memory_space<vmem>>, vector<1x4x2xf32>,
    %c7_308 = arith.constant 7 : index
    %c0_309 = arith.constant 0 : index
    %c0_310 = arith.constant 0 : index
    %965 = vector.load %arg7[%c7_308, %c0_309, %c0_310] : memref<12x4x2xf32, #tpu.memory_space<vmem>>, vector<1x4x2xf32>
    %966 = vector.shape_cast %965 : vector<1x4x2xf32> to vector<4x2xf32>
    %967 = vector.shape_cast %927 : vector<4x2xf32> to vector<1x4x2xf32>
    tpu.vector_store %arg7[%c7_308, %c0_309, %c0_310], %967 {strides = array<i32>} : memref<12x4x2xf32, #tpu.memory_space<vmem>>, vector<1x4x2xf32>,
    %c8_311 = arith.constant 8 : index
    %c0_312 = arith.constant 0 : index
    %c0_313 = arith.constant 0 : index
    %968 = vector.load %arg7[%c8_311, %c0_312, %c0_313] : memref<12x4x2xf32, #tpu.memory_space<vmem>>, vector<1x4x2xf32>
    %969 = vector.shape_cast %968 : vector<1x4x2xf32> to vector<4x2xf32>
    %970 = vector.shape_cast %931 : vector<4x2xf32> to vector<1x4x2xf32>
    tpu.vector_store %arg7[%c8_311, %c0_312, %c0_313], %970 {strides = array<i32>} : memref<12x4x2xf32, #tpu.memory_space<vmem>>, vector<1x4x2xf32>,
    %c9_314 = arith.constant 9 : index
    %c0_315 = arith.constant 0 : index
    %c0_316 = arith.constant 0 : index
    %971 = vector.load %arg7[%c9_314, %c0_315, %c0_316] : memref<12x4x2xf32, #tpu.memory_space<vmem>>, vector<1x4x2xf32>
    %972 = vector.shape_cast %971 : vector<1x4x2xf32> to vector<4x2xf32>
    %973 = vector.shape_cast %935 : vector<4x2xf32> to vector<1x4x2xf32>
    tpu.vector_store %arg7[%c9_314, %c0_315, %c0_316], %973 {strides = array<i32>} : memref<12x4x2xf32, #tpu.memory_space<vmem>>, vector<1x4x2xf32>,
    %c10_317 = arith.constant 10 : index
    %c0_318 = arith.constant 0 : index
    %c0_319 = arith.constant 0 : index
    %974 = vector.load %arg7[%c10_317, %c0_318, %c0_319] : memref<12x4x2xf32, #tpu.memory_space<vmem>>, vector<1x4x2xf32>
    %975 = vector.shape_cast %974 : vector<1x4x2xf32> to vector<4x2xf32>
    %976 = vector.shape_cast %939 : vector<4x2xf32> to vector<1x4x2xf32>
    tpu.vector_store %arg7[%c10_317, %c0_318, %c0_319], %976 {strides = array<i32>} : memref<12x4x2xf32, #tpu.memory_space<vmem>>, vector<1x4x2xf32>,
    %c11_320 = arith.constant 11 : index
    %c0_321 = arith.constant 0 : index
    %c0_322 = arith.constant 0 : index
    %977 = vector.load %arg7[%c11_320, %c0_321, %c0_322] : memref<12x4x2xf32, #tpu.memory_space<vmem>>, vector<1x4x2xf32>
    %978 = vector.shape_cast %977 : vector<1x4x2xf32> to vector<4x2xf32>
    %979 = vector.shape_cast %943 : vector<4x2xf32> to vector<1x4x2xf32>
    tpu.vector_store %arg7[%c11_320, %c0_321, %c0_322], %979 {strides = array<i32>} : memref<12x4x2xf32, #tpu.memory_space<vmem>>, vector<1x4x2xf32>,
    return
  }
  func.func @transform_0(%arg0: i32) -> (i32, i32, i32) {
    %c0_i32 = arith.constant 0 : i32
    %c0_i32_0 = arith.constant 0 : i32
    %c0_i32_1 = arith.constant 0 : i32
    return %c0_i32, %c0_i32_0, %arg0 : i32, i32, i32
  }
  func.func @transform_1(%arg0: i32) -> (i32, i32) {
    %c0_i32 = arith.constant 0 : i32
    %c0_i32_0 = arith.constant 0 : i32
    %c0_i32_1 = arith.constant 0 : i32
    return %c0_i32, %c0_i32_0 : i32, i32
  }
  func.func @transform_2(%arg0: i32) -> (i32, i32) {
    %c0_i32 = arith.constant 0 : i32
    %c0_i32_0 = arith.constant 0 : i32
    %c0_i32_1 = arith.constant 0 : i32
    return %c0_i32, %c0_i32_0 : i32, i32
  }
  func.func @transform_3(%arg0: i32) -> i32 {
    %c0_i32 = arith.constant 0 : i32
    %c0_i32_0 = arith.constant 0 : i32
    return %c0_i32 : i32
  }
  func.func @transform_4(%arg0: i32) -> (i32, i32) {
    %c0_i32 = arith.constant 0 : i32
    %c0_i32_0 = arith.constant 0 : i32
    %c0_i32_1 = arith.constant 0 : i32
    return %c0_i32, %c0_i32_0 : i32, i32
  }
  func.func @transform_5(%arg0: i32) -> i32 {
    %c0_i32 = arith.constant 0 : i32
    %c0_i32_0 = arith.constant 0 : i32
    return %c0_i32 : i32
  }
  func.func @transform_6(%arg0: i32) -> (i32, i32, i32) {
    %c0_i32 = arith.constant 0 : i32
    %c0_i32_0 = arith.constant 0 : i32
    %c0_i32_1 = arith.constant 0 : i32
    return %c0_i32, %c0_i32_0, %arg0 : i32, i32, i32
  }
}

</mosaic_0001>

<bundles_post_ra>
// kernel: tpu_custom_call.1
= control target key start
LH: loop header
LB: loop body
LE: loop exit
PB: predicated region body
PF: predicated region fallthrough
CT: control target
= control target key end

     0   :  { %s3406_s0 = inlined_call_operand.vmem [shape: f32[8,4,2], index: 0, kind: input, shape index: {}]   ;;  %s3407_s1 = inlined_call_operand.vmem [shape: f32[4,4], index: 1, kind: input, shape index: {}]   ;;  %s3408_s2 = inlined_call_operand.vmem [shape: f32[4,4], index: 2, kind: input, shape index: {}]   ;;  %s3409_s3 = inlined_call_operand.vmem [shape: f32[4], index: 3, kind: input, shape index: {}]   ;;  %s3410_s4 = inlined_call_operand.vmem [shape: f32[12,8], index: 4, kind: input, shape index: {}]   ;;  %s3411_s5 = inlined_call_operand.vmem [shape: f32[12], index: 5, kind: input, shape index: {}]   ;;  %s3412_s6 = inlined_call_operand.vmem [shape: f32[12,4,2], index: 6, kind: output, shape index: {}]  }
   0x1   :  { %3457 = sst [smem:[#allocation87_spill]] %s3406_s0 }
   0x2   :  { %3458 = sst [smem:[#allocation88_spill]] %s3412_s6 }
   0x3   :  { %11 = vsyncpa [#allocation3], 0 }
   0x4   :  { %12 = vsyncpa [#allocation5], 0  ;;  %s30_s23 = sshll.u32 %s3408_s2, 4  ;;  %s31_s23 = int_to_ptr.vmem [resolvable:$true] %s30_s23 }
   0x5   :  { %13 = vsyncpa [#allocation8], 0  ;;  %s47_s26 = sshll.u32 %s3410_s4, 4  ;;  %s1543_s27 = smov [#allocation4]   ;;  %s48_s26 = int_to_ptr.vmem [resolvable:$true] %s47_s26 }
   0x6   :  { %33 = dma.vmem_to_smem %s31_s23, 64, %s1543_s27, [#allocation5]  }
   0x7   :  { %s1544_s28 = smov [#allocation7]   ;;  %s1545_s29 = smov 128  }
   0x8   :  { %s1546_s30 = smov 8   ;;  %s21_s9 = sshll.u32 %s3407_s1, 4  ;;  %s22_s9 = int_to_ptr.vmem [resolvable:$true] %s21_s9 }
   0x9   :  { %53 = dma.vmem_to_smem %s48_s26, 256, %s1544_s28, [#allocation8], %s1545_s29, %s1545_s29, %s1546_s30  }
   0xa   :  { %s39_s11 = sshll.u32 %s3409_s3, 4  ;;  %s1547_s12 = smov [#allocation2]   ;;  %s40_s11 = int_to_ptr.vmem [resolvable:$true] %s39_s11 }
   0xb   :  { %24 = dma.vmem_to_smem %s22_s9, 64, %s1547_s12, [#allocation3]  }
   0xc   :  { %s1548_s4 = smov [#allocation6]   ;;  %s59_s15 = sshll.u32 %s3411_s5, 4  ;;  %s60_s15 = int_to_ptr.vmem [resolvable:$true] %s59_s15 }
   0xd   :  { %42 = dma.vmem_to_smem %s40_s11, 16, %s1548_s4, [#allocation5]  }
   0xe   :  { %s1549_s16 = smov [#allocation9]  }
   0xf   :  { %62 = dma.vmem_to_smem %s60_s15, 16, %s1549_s16, [#allocation8]  }
  0x10   :  { %1537 = dma.done.wait [#allocation3], 64  }
  0x11   :  { %1538 = vsyncadd [#allocation3], 4294967232 }
  0x12   :  { %1539 = dma.done.wait [#allocation5], 80  }
  0x13   :  { %1540 = vsyncadd [#allocation5], 4294967216 }
  0x14   :  { %1541 = dma.done.wait [#allocation8], 272  }
  0x15   :  { %1542 = vsyncadd [#allocation8], 4294967024 }
  0x16   :  { %83 = sfence }
  0x17   :  { %s84_s1 = sld [smem:[#allocation2]]  ;;  %v1605_v0 = vld [vmem:[%s3406_s0] sm:$0x1]  ;;  %v1612_v1 = vld [vmem:[%s3406_s0 + $0x4] sm:$0x1]  ;;  %vm481_vm0 = vcmask 1040384  }
  0x18   :  { %s1254_s3 = sld [smem:[#allocation2 + $0x1]]  ;;  %v1617_v2 = vld [vmem:[%s3406_s0 + $0x8] sm:$0x1]  ;;  %v1622_v3 = vld [vmem:[%s3406_s0 + $0xc] sm:$0x1]  ;;  %vm483_vm1 = vcmask 1041408  }
  0x19   :  { %s1600_s17 = sld [smem:[#allocation2 + $0x2]]  ;;  %v1627_v4 = vld [vmem:[%s3406_s0 + $0x10] sm:$0x1]  ;;  %v1634_v5 = vld [vmem:[%s3406_s0 + $0x14] sm:$0x1]  ;;  %vm485_vm2 = vcmask 1042432  }
  0x1a   :  { %s1607_s5 = sld [smem:[#allocation2 + $0x3]]  ;;  %v1639_v6 = vld [vmem:[%s3406_s0 + $0x18] sm:$0x1]  ;;  %v1646_v8 = vld [vmem:[%s3406_s0 + $0x1] sm:$0x1]  ;;  %vm1223_vm3 = vcmask 11264  }
  0x1b   :  { %s1629_s28 = sld [smem:[#allocation2 + $0x80]]  ;;  %v1651_v9 = vld [vmem:[%s3406_s0 + $0x5] sm:$0x1]  ;;  %v1658_v10 = vld [vmem:[%s3406_s0 + $0x1c] sm:$0x1] }
  0x1c   :  { %s1641_s9 = sld [smem:[#allocation2 + $0x81]]  ;;  %3459 = vst [vmem:[#allocation13_spill] sm:$0xff] %v1651_v9  ;;  %v1663_v11 = vld [vmem:[%s3406_s0 + $0x9] sm:$0x1]  ;;  %v1668_v12 = vld [vmem:[%s3406_s0 + $0xd] sm:$0x1] }
  0x1d   :  { %v151_v7 = vstv %s84_s1  ;;  %s1653_s4 = sld [smem:[#allocation2 + $0x82]]  ;;  %3460 = vst [vmem:[#allocation14_spill] sm:$0xff] %v1663_v11  ;;  %v1675_v13 = vld [vmem:[%s3406_s0 + $0x11] sm:$0x1]  ;;  %v1680_v14 = vld [vmem:[%s3406_s0 + $0x15] sm:$0x1] }
  0x1e   :  { %s1670_s19 = sld [smem:[#allocation2 + $0x83]]  ;;  %3461 = vst [vmem:[#allocation15_spill] sm:$0xff] %v1675_v13  ;;  %v1683_v15 = vmul.f32 %v151_v7, %v1605_v0  ;;  %v168_v16 = vstv %s1254_s3  ;;  %v1690_v17 = vld [vmem:[%s3406_s0 + $0x19] sm:$0x1]  ;;  %v1695_v18 = vld [vmem:[%s3406_s0 + $0x2] sm:$0x1]  ;;  %v1698_v19 = vmul.f32 %v151_v7, %v1612_v1  ;;  %v1701_v20 = vmul.f32 %v151_v7, %v1617_v2 }
  0x1f   :  { %s1685_s24 = sld [smem:[#allocation2 + $0x100]]  ;;  %3462 = vst [vmem:[#allocation16_spill] sm:$0xff] %v1690_v17  ;;  %v1704_v21 = vmul.f32 %v151_v7, %v1622_v3  ;;  %v1707_v22 = vmul.f32 %v151_v7, %v1627_v4  ;;  %v1712_v23 = vld [vmem:[%s3406_s0 + $0x1d] sm:$0x1]  ;;  %v1717_v24 = vld [vmem:[%s3406_s0 + $0x6] sm:$0x1]  ;;  %v1730_v27 = vmul.f32 %v151_v7, %v1634_v5  ;;  %v1733_v28 = vmul.f32 %v151_v7, %v1639_v6 }
  0x20   :  { %3463 = vst [vmem:[#allocation17_spill] sm:$0xff] %v1695_v18  ;;  %v1722_v25 = vld [vmem:[%s3406_s0 + $0xa] sm:$0x1]  ;;  %v1727_v26 = vld [vmem:[%s3406_s0 + $0xe] sm:$0x1]  ;;  %v1736_v29 = vmul.f32 %v151_v7, %v1658_v10  ;;  %v185_v30 = vstv %s1600_s17  ;;  %v1755_v34 = vmul.f32 %v168_v16, %v1646_v8  ;;  %v1758_v35 = vmul.f32 %v168_v16, %v1651_v9  ;;  %s1891_s13 = sld [smem:[#allocation2 + $0x102]] }
  0x21   :  { %3464 = vst [vmem:[#allocation18_spill] sm:$0xff] %v1707_v22  ;;  %v1742_v31 = vld [vmem:[%s3406_s0 + $0x12] sm:$0x1]  ;;  %v1747_v32 = vld [vmem:[%s3406_s0 + $0x16] sm:$0x1]  ;;  %v1761_v36 = vmul.f32 %v168_v16, %v1663_v11  ;;  %v1764_v37 = vmul.f32 %v168_v16, %v1668_v12  ;;  %v1782_v41 = vmul.f32 %v168_v16, %v1675_v13  ;;  %v1785_v42 = vmul.f32 %v168_v16, %v1680_v14  ;;  %s1913_s14 = sld [smem:[#allocation2 + $0x180]] }
  0x22   :  { %3465 = vst [vmem:[#allocation19_spill] sm:$0xff] %v1717_v24  ;;  %v1752_v33 = vld [vmem:[%s3406_s0 + $0x1a] sm:$0x1]  ;;  %v1769_v38 = vld [vmem:[%s3406_s0 + $0x3] sm:$0x1]  ;;  %v1788_v43 = vmul.f32 %v168_v16, %v1690_v17  ;;  %v202_v44 = vstv %s1607_s5  ;;  %v1807_v48 = vmul.f32 %v168_v16, %v1712_v23  ;;  %v1810_v49 = vmul.f32 %v185_v30, %v1695_v18  ;;  %s2089_s15 = sld [smem:[#allocation2 + $0x182]] }
  0x23   :  { %3466 = vst [vmem:[#allocation20_spill] sm:$0xff] %v1727_v26  ;;  %v1774_v39 = vld [vmem:[%s3406_s0 + $0x7] sm:$0x1]  ;;  %v1779_v40 = vld [vmem:[%s3406_s0 + $0xb] sm:$0x1]  ;;  %v1813_v50 = vmul.f32 %v185_v30, %v1717_v24  ;;  %v1816_v51 = vmul.f32 %v185_v30, %v1722_v25  ;;  %v1829_v54 = vmul.f32 %v185_v30, %v1727_v26  ;;  %v1832_v55 = vmul.f32 %v185_v30, %v1742_v31  ;;  %s2125_s16 = sld [smem:[#allocation6 + $0x2]] }
  0x24   :  { %3467 = vst [vmem:[#allocation21_spill] sm:$0xff] %v1755_v34  ;;  %v1794_v45 = vld [vmem:[%s3406_s0 + $0xf] sm:$0x1]  ;;  %v1799_v46 = vld [vmem:[%s3406_s0 + $0x13] sm:$0x1]  ;;  %v1835_v56 = vmul.f32 %v185_v30, %v1747_v32  ;;  %v222_v57 = vstv %s1629_s28  ;;  %v1839_v58 = vmul.f32 %v185_v30, %v1752_v33  ;;  %v1845_v60 = vmul.f32 %v202_v44, %v1769_v38  ;;  %s1877_s28 = sld [smem:[#allocation2 + $0x101]] }
  0x25   :  { %3468 = vst [vmem:[#allocation22_spill] sm:$0xff] %v1758_v35  ;;  %v1804_v47 = vld [vmem:[%s3406_s0 + $0x17] sm:$0x1]  ;;  %v1821_v52 = vld [vmem:[%s3406_s0 + $0x1e] sm:$0x1]  ;;  %v1848_v61 = vmul.f32 %v202_v44, %v1774_v39  ;;  %v1856_v63 = vmul.f32 %v202_v44, %v1779_v40  ;;  %v1859_v7 = vmul.f32 %v202_v44, %v1794_v45  ;;  %v1862_v16 = vmul.f32 %v202_v44, %v1799_v46  ;;  %s2167_s1 = sld [smem:[#allocation6 + $0x3]] }
  0x26   :  { %3469 = vst [vmem:[#allocation23_spill] sm:$0xff] %v1761_v36  ;;  %v1826_v53 = vld [vmem:[%s3406_s0 + $0x1b] sm:$0x1]  ;;  %v1842_v59 = vmul.f32 %v185_v30, %v1821_v52  ;;  %v1853_v62 = vld [vmem:[%s3406_s0 + $0x1f] sm:$0x1]  ;;  %v1865_v30 = vmul.f32 %v202_v44, %v1804_v47  ;;  %s2171_s18 = sld [smem:[#allocation2 + $0x183]] }
  0x27   :  { %3470 = vst [vmem:[#allocation24_spill] sm:$0xff] %v1764_v37  ;;  %s2184_s17 = sld [smem:[#allocation4]] }
  0x28   :  { %3471 = vst [vmem:[#allocation25_spill] sm:$0xff] %v1782_v41  ;;  %v1897_v41 = vmul.f32 %v222_v57, %v1639_v6  ;;  %s2196_s20 = sld [smem:[#allocation4 + $0x1]] }
  0x29   :  { %3472 = vst [vmem:[#allocation26_spill] sm:$0xff] %v1794_v45  ;;  %s2204_s21 = sld [smem:[#allocation4 + $0x2]] }
  0x2a   :  { %3473 = vst [vmem:[#allocation27_spill] sm:$0xff] %v1810_v49  ;;  %s2216_s22 = sld [smem:[#allocation4 + $0x3]] }
  0x2b   :  { %3474 = vst [vmem:[#allocation28_spill] sm:$0xff] %v1813_v50  ;;  %v293_v50 = vstv %s1685_s24  ;;  %s2051_s24 = sld [smem:[#allocation2 + $0x181]] }
  0x2c   :  { %3475 = vst [vmem:[#allocation29_spill] sm:$0xff] %v1816_v51  ;;  %v1900_v51 = vmul.f32 %v222_v57, %v1658_v10  ;;  %s2229_s23 = sld [smem:[#allocation4 + $0x80]] }
  0x2d   :  { %3476 = vst [vmem:[#allocation30_spill] sm:$0xff] %v1829_v54  ;;  %v1886_v54 = vmul.f32 %v222_v57, %v1622_v3  ;;  %s2237_s25 = sld [smem:[#allocation4 + $0x81]] }
  0x2e   :  { %3477 = vst [vmem:[#allocation31_spill] sm:$0xff] %v1832_v55  ;;  %v1868_v55 = vmul.f32 %v202_v44, %v1826_v53  ;;  %s2250_s26 = sld [smem:[#allocation4 + $0x82]] }
  0x2f   :  { %3478 = vst [vmem:[#allocation32_spill] sm:$0xff] %v1845_v60  ;;  %v1874_v60 = vmul.f32 %v222_v57, %v1605_v0  ;;  %s2258_s27 = sld [smem:[#allocation4 + $0x83]] }
  0x30   :  { %3479 = vst [vmem:[#allocation33_spill] sm:$0xff] %v1848_v61  ;;  %v1871_v61 = vmul.f32 %v202_v44, %v1853_v62  ;;  %v1889_v44 = vmul.f32 %v222_v57, %v1627_v4  ;;  %s2268_s29 = sld [smem:[#allocation4 + $0x100]] }
  0x31   :  { %3480 = vst [vmem:[#allocation34_spill] sm:$0xff] %v1856_v63  ;;  %v239_v63 = vstv %s1641_s9  ;;  %s1903_s9 = sld [smem:[#allocation2 + $0x103]] }
  0x32   :  { %3481 = vst [vmem:[#allocation35_spill] sm:$0xff] %v1859_v7  ;;  %v1880_v7 = vmul.f32 %v222_v57, %v1612_v1  ;;  %v1916_v49 = vmul.f32 %v239_v63, %v1663_v11  ;;  %v1919_v37 = vmul.f32 %v239_v63, %v1668_v12  ;;  %v1925_v22 = vmul.f32 %v239_v63, %v1680_v14  ;;  %s2281_s3 = sld [smem:[#allocation4 + $0x101]] }
  0x33   :  { %3482 = vst [vmem:[#allocation36_spill] sm:$0xff] %v1862_v16  ;;  %v1883_v16 = vmul.f32 %v222_v57, %v1617_v2  ;;  %s2292_s30 = sld [smem:[#allocation4 + $0x102]] }
  0x34   :  { %3483 = vst [vmem:[#allocation37_spill] sm:$0xff] %v1874_v60  ;;  %v1894_v60 = vmul.f32 %v222_v57, %v1634_v5  ;;  %v1922_v57 = vmul.f32 %v239_v63, %v1675_v13  ;;  %s2307_s7 = sld [smem:[#allocation9]] }
  0x35   :  { %3484 = vst [vmem:[#allocation38_spill] sm:$0xff] %v1880_v7  ;;  %v256_v7 = vstv %s1653_s4  ;;  %s148_s4 = sld [smem:[#allocation6]] }
  0x36   :  { %3485 = vst [vmem:[#allocation39_spill] sm:$0xff] %v1883_v16  ;;  %v1906_v16 = vmul.f32 %v239_v63, %v1646_v8  ;;  %v1934_v36 = vmul.f32 %v256_v7, %v1695_v18  ;;  %v1946_v35 = vmul.f32 %v256_v7, %v1742_v31  ;;  %v1952_v34 = vmul.f32 %v256_v7, %v1752_v33  ;;  %s2314_s5 = sld [smem:[#allocation9 + $0x1]] }
  0x37   :  { %3486 = vst [vmem:[#allocation40_spill] sm:$0xff] %v1886_v54  ;;  %v1909_v54 = vmul.f32 %v239_v63, %v1651_v9  ;;  %s2317_s8 = sld [smem:[#allocation9 + $0x2]] }
  0x38   :  { %3487 = vst [vmem:[#allocation41_spill] sm:$0xff] %v1889_v44  ;;  %v273_v44 = vstv %s1670_s19  ;;  %s2034_s19 = sld [smem:[#allocation6 + $0x1]] }
  0x39   :  { %3488 = vst [vmem:[#allocation42_spill] sm:$0xff] %v1906_v16  ;;  %v1928_v16 = vmul.f32 %v239_v63, %v1690_v17  ;;  %s2325_s10 = sld [smem:[#allocation9 + $0x3]] }
  0x3a   :  { %3489 = vst [vmem:[#allocation43_spill] sm:$0xff] %v1909_v54  ;;  %v1931_v54 = vmul.f32 %v239_v63, %v1712_v23  ;;  %v1949_v63 = vmul.f32 %v256_v7, %v1747_v32  ;;  %s2335_s2 = sld [smem:[#allocation9 + $0x4]] }
  0x3b   :  { %3490 = vst [vmem:[#allocation44_spill] sm:$0xff] %v1916_v49  ;;  %v1937_v49 = vmul.f32 %v256_v7, %v1717_v24  ;;  %s2343_s11 = sld [smem:[#allocation9 + $0x5]] }
  0x3c   :  { %3491 = vst [vmem:[#allocation45_spill] sm:$0xff] %v1919_v37  ;;  %v1940_v37 = vmul.f32 %v256_v7, %v1722_v25  ;;  %s2346_s12 = sld [smem:[#allocation9 + $0x6]] }
  0x3d   :  { %3492 = vst [vmem:[#allocation46_spill] sm:$0xff] %v1922_v57  ;;  %v1943_v57 = vmul.f32 %v256_v7, %v1727_v26  ;;  %s2451_s6 = sld [smem:[#allocation7 + $0x300]] }
  0x3e   :  { %3493 = vst [vmem:[#allocation47_spill] sm:$0xff] %v1931_v54  ;;  %v2015_v54 = vstv %s1913_s14  ;;  %s2385_s14 = sld [smem:[#allocation9 + $0xa]] }
  0x3f   :  { %3494 = vst [vmem:[#allocation48_spill] sm:$0xff] %v1934_v36  ;;  %v1955_v36 = vmul.f32 %v256_v7, %v1821_v52  ;;  %v1973_v7 = vmul.f32 %v273_v44, %v1804_v47  ;;  %s2455_s0 = sld [smem:[#allocation7 + $0x380]] }
  0x40   :  { %3495 = vst [vmem:[#allocation49_spill] sm:$0xff] %v1937_v49  ;;  %v1958_v49 = vmul.f32 %v273_v44, %v1769_v38 }
  0x41   :  { %3496 = vst [vmem:[#allocation50_spill] sm:$0xff] %v1940_v37  ;;  %v1961_v37 = vmul.f32 %v273_v44, %v1774_v39 }
  0x42   :  { %3497 = vst [vmem:[#allocation51_spill] sm:$0xff] %v1943_v57  ;;  %v1964_v57 = vmul.f32 %v273_v44, %v1779_v40  ;;  %3586 = sst [smem:[#allocation85_spill]] %s2346_s12 }
  0x43   :  { %3498 = vst [vmem:[#allocation52_spill] sm:$0xff] %v1946_v35  ;;  %v1967_v35 = vmul.f32 %v273_v44, %v1794_v45  ;;  %s2462_s12 = sld [smem:[#allocation7 + $0x400]] }
  0x44   :  { %3499 = vst [vmem:[#allocation53_spill] sm:$0xff] %v1949_v63  ;;  %v1970_v63 = vmul.f32 %v273_v44, %v1799_v46 }
  0x45   :  { %3500 = vst [vmem:[#allocation54_spill] sm:$0xff] %v1952_v34  ;;  %v1992_v34 = vmul.f32 %v293_v50, %v1622_v3 }
  0x46   :  { %3501 = vst [vmem:[#allocation55_spill] sm:$0xff] %v1955_v36  ;;  %v1982_v36 = vmul.f32 %v293_v50, %v1605_v0 }
  0x47   :  { %3502 = vst [vmem:[#allocation56_spill] sm:$0xff] %v1958_v49  ;;  %v1976_v49 = vmul.f32 %v273_v44, %v1826_v53 }
  0x48   :  { %3503 = vst [vmem:[#allocation57_spill] sm:$0xff] %v1961_v37  ;;  %v1979_v37 = vmul.f32 %v273_v44, %v1853_v62  ;;  %v2001_v44 = vmul.f32 %v293_v50, %v1639_v6 }
  0x49   :  { %3504 = vst [vmem:[#allocation58_spill] sm:$0xff] %v1964_v57  ;;  %v310_v57 = vstv %s1877_s28  ;;  %s2354_s28 = sld [smem:[#allocation9 + $0x7]] }
  0x4a   :  { %3505 = vst [vmem:[#allocation59_spill] sm:$0xff] %v1967_v35  ;;  %v1986_v35 = vmul.f32 %v293_v50, %v1612_v1 }
  0x4b   :  { %3506 = vst [vmem:[#allocation60_spill] sm:$0xff] %v1970_v63  ;;  %v1989_v63 = vmul.f32 %v293_v50, %v1617_v2 }
  0x4c   :  { %3507 = vst [vmem:[#allocation61_spill] sm:$0xff] %v1973_v7  ;;  %v1995_v7 = vmul.f32 %v293_v50, %v1627_v4 }
  0x4d   :  { %3508 = vst [vmem:[#allocation62_spill] sm:$0xff] %v1976_v49  ;;  %v1998_v49 = vmul.f32 %v293_v50, %v1634_v5 }
  0x4e   :  { %3509 = vst [vmem:[#allocation63_spill] sm:$0xff] %v1979_v37  ;;  %v327_v37 = vstv %s1891_s13  ;;  %s2361_s13 = sld [smem:[#allocation9 + $0x8]] }
  0x4f   :  { %3510 = vst [vmem:[#allocation64_spill] sm:$0xff] %v1982_v36  ;;  %v2004_v36 = vmul.f32 %v293_v50, %v1658_v10  ;;  %v2026_v50 = vmul.f32 %v310_v57, %v1675_v13  ;;  %v2043_v13 = vmul.f32 %v310_v57, %v1712_v23 }
  0x50   :  { %3511 = vst [vmem:[#allocation65_spill] sm:$0xff] %v1986_v35  ;;  %v2008_v35 = vmul.f32 %v310_v57, %v1646_v8 }
  0x51   :  { %3512 = vst [vmem:[#allocation66_spill] sm:$0xff] %v1989_v63  ;;  %v2011_v63 = vmul.f32 %v310_v57, %v1651_v9 }
  0x52   :  { %3513 = vst [vmem:[#allocation67_spill] sm:$0xff] %v1992_v34  ;;  %v344_v34 = vstv %s1903_s9  ;;  %s2371_s9 = sld [smem:[#allocation9 + $0x9]] }
  0x53   :  { %3514 = vst [vmem:[#allocation68_spill] sm:$0xff] %v1995_v7  ;;  %v2017_v7 = vstv %s148_s4  ;;  %s2394_s4 = sld [smem:[#allocation9 + $0xb]] }
  0x54   :  { %3515 = vst [vmem:[#allocation69_spill] sm:$0xff] %v1998_v49  ;;  %v2020_v49 = vmul.f32 %v310_v57, %v1663_v11  ;;  %v167_v9 = vadd.f32 %v1736_v29, %v2017_v7  ;;  %v2037_v11 = vmul.f32 %v310_v57, %v1680_v14 }
  0x55   :  { %3516 = vst [vmem:[#allocation70_spill] sm:$0xff] %v2001_v44  ;;  %v2023_v44 = vmul.f32 %v310_v57, %v1668_v12 }
  0x56   :  { %3517 = vst [vmem:[#allocation71_spill] sm:$0xff] %v2008_v35  ;;  %v165_v35 = vadd.f32 %v1730_v27, %v2017_v7  ;;  %v2049_v27 = vmul.f32 %v327_v37, %v1717_v24  ;;  %v2066_v24 = vmul.f32 %v327_v37, %v1747_v32 }
  0x57   :  { %3518 = vst [vmem:[#allocation72_spill] sm:$0xff] %v2011_v63  ;;  %v166_v63 = vadd.f32 %v1733_v28, %v2017_v7 }
  0x58   :  { %3519 = vst [vmem:[#allocation73_spill] sm:$0xff] %v2020_v49  ;;  %v2040_v49 = vmul.f32 %v310_v57, %v1690_v17  ;;  %v182_v28 = vadd.f32 %v1785_v42, %v165_v35  ;;  %v2057_v17 = vmul.f32 %v327_v37, %v1722_v25  ;;  %v2060_v57 = vmul.f32 %v327_v37, %v1727_v26  ;;  %v3535_v26 = vld [vmem:[#allocation53_spill] sm:$0xff] }
  0x59   :  { %3520 = vst [vmem:[#allocation74_spill] sm:$0xff] %v2023_v44  ;;  %v183_v29 = vadd.f32 %v1788_v43, %v166_v63  ;;  %v184_v44 = vadd.f32 %v1807_v48, %v167_v9  ;;  %v2075_v43 = vmul.f32 %v327_v37, %v1821_v52  ;;  %v2078_v48 = vmul.f32 %v344_v34, %v1769_v38  ;;  %3595 = sst [smem:[#allocation86_spill]] %s2394_s4 }
  0x5a   :  { %3521 = vst [vmem:[#allocation75_spill] sm:$0xff] %v2026_v50  ;;  %v2046_v50 = vmul.f32 %v327_v37, %v1695_v18  ;;  %v2063_v18 = vmul.f32 %v327_v37, %v1742_v31  ;;  %v199_v35 = vadd.f32 %v1835_v56, %v182_v28  ;;  %v2081_v31 = vmul.f32 %v344_v34, %v1774_v39  ;;  %s2475_s4 = sld [smem:[#allocation7 + $0x480]] }
  0x5b   :  { %3522 = vst [vmem:[#allocation76_spill] sm:$0xff] %v2049_v27  ;;  %v2069_v27 = vmul.f32 %v327_v37, %v1752_v33  ;;  %v200_v42 = vadd.f32 %v1839_v58, %v183_v29  ;;  %v201_v9 = vadd.f32 %v1842_v59, %v184_v44  ;;  %v2084_v63 = vmul.f32 %v344_v34, %v1779_v40 }
  0x5c   :  { %3523 = vst [vmem:[#allocation77_spill] sm:$0xff] %v2063_v18  ;;  %v2087_v18 = vmul.f32 %v344_v34, %v1794_v45  ;;  %v2092_v56 = vadd.f32 %v1865_v30, %v199_v35  ;;  %v2101_v59 = vmul.f32 %v344_v34, %v1799_v46  ;;  %v2104_v44 = vmul.f32 %v344_v34, %v1804_v47 }
  0x5d   :  { %3524 = vst [vmem:[#allocation78_spill] sm:$0xff] %v2084_v63  ;;  %v2095_v37 = vadd.f32 %v1868_v55, %v200_v42  ;;  %v2098_v58 = vadd.f32 %v1871_v61, %v201_v9  ;;  %v2107_v28 = vmul.f32 %v344_v34, %v1826_v53  ;;  %v2110_v29 = vmul.f32 %v344_v34, %v1853_v62 }
  0x5e   :  { %3525 = vst [vmem:[#allocation79_spill] sm:$0xff] %v2087_v18  ;;  %v2114_v55 = vmul.f32 %v2015_v54, %v1605_v0  ;;  %v160_v61 = vadd.f32 %v1683_v15, %v2017_v7  ;;  %v161_v46 = vadd.f32 %v1698_v19, %v2017_v7  ;;  %v162_v30 = vadd.f32 %v1701_v20, %v2017_v7  ;;  %v3534_v18 = vld [vmem:[#allocation23_spill] sm:$0xff] }
  0x5f   :  { %3526 = vst [vmem:[#allocation80_spill] sm:$0xff] %v2092_v56  ;;  %v2123_v35 = vstv %s2034_s19  ;;  %v2135_v15 = vmul.f32 %v2015_v54, %v1612_v1  ;;  %v2139_v19 = vmul.f32 %v2015_v54, %v1617_v2  ;;  %v2143_v20 = vmul.f32 %v2015_v54, %v1622_v3  ;;  %v3531_v2 = vld [vmem:[#allocation47_spill] sm:$0xff]  ;;  %v3533_v3 = vld [vmem:[#allocation22_spill] sm:$0xff]  ;;  %s2400_s19 = sld [smem:[#allocation7]] }
  0x60   :  { %3527 = vst [vmem:[#allocation81_spill] sm:$0xff] %v2095_v37  ;;  %v236_v34 = vadd.f32 %v1894_v60, %v2123_v35  ;;  %v237_v0 = vadd.f32 %v1897_v41, %v2123_v35  ;;  %v238_v42 = vadd.f32 %v1900_v51, %v2123_v35  ;;  %v2147_v60 = vmul.f32 %v2015_v54, %v1627_v4  ;;  %v3532_v37 = vld [vmem:[#allocation21_spill] sm:$0xff] }
  0x61   :  { %3528 = vst [vmem:[#allocation82_spill] sm:$0xff] %v2098_v58  ;;  %v2150_v41 = vstv %s2051_s24  ;;  %v163_v51 = vadd.f32 %v1704_v21, %v2017_v7  ;;  %v177_v56 = vadd.f32 %v3532_v37, %v160_v61  ;;  %v179_v45 = vadd.f32 %v3534_v18, %v162_v30  ;;  %v3536_v21 = vld [vmem:[#allocation54_spill] sm:$0xff]  ;;  %v3541_v30 = vld [vmem:[#allocation61_spill] sm:$0xff]  ;;  %s2411_s24 = sld [smem:[#allocation7 + $0x80]] }
  0x62   :  { %3529 = vst [vmem:[#allocation83_spill] sm:$0xff] %v2101_v59  ;;  %v253_v1 = vadd.f32 %v1925_v22, %v236_v34  ;;  %v254_v9 = vadd.f32 %v1928_v16, %v237_v0  ;;  %v255_v58 = vadd.f32 %v3531_v2, %v238_v42  ;;  %v178_v59 = vadd.f32 %v3533_v3, %v161_v46  ;;  %v3537_v22 = vld [vmem:[#allocation55_spill] sm:$0xff]  ;;  %v3538_v18 = vld [vmem:[#allocation18_spill] sm:$0xff]  ;;  %v3549_v2 = vld [vmem:[#allocation29_spill] sm:$0xff] }
  0x63   :  { %3530 = vst [vmem:[#allocation84_spill] sm:$0xff] %v2147_v60  ;;  %v2162_v4 = vmul.f32 %v2015_v54, %v1634_v5  ;;  %v371_v16 = vmul.f32 %v2015_v54, %v1639_v6  ;;  %v164_v37 = vadd.f32 %v3538_v18, %v2017_v7  ;;  %v372_v5 = vmul.f32 %v2015_v54, %v1658_v10  ;;  %v3543_v0 = vld [vmem:[#allocation62_spill] sm:$0xff]  ;;  %v3545_v7 = vld [vmem:[#allocation63_spill] sm:$0xff]  ;;  %v3548_v54 = vld [vmem:[#allocation28_spill] sm:$0xff] }
  0x64   :  { %v270_v60 = vadd.f32 %v3535_v26, %v253_v1  ;;  %v271_v63 = vadd.f32 %v3536_v21, %v254_v9  ;;  %v272_v34 = vadd.f32 %v3537_v22, %v255_v58  ;;  %v2179_v26 = vmul.f32 %v2150_v41, %v1646_v8  ;;  %v3540_v58 = vld [vmem:[#allocation24_spill] sm:$0xff]  ;;  %v3547_v10 = vld [vmem:[#allocation27_spill] sm:$0xff]  ;;  %v3552_v18 = vld [vmem:[#allocation13_spill] sm:$0xff] }
  0x65   :  { %v2182_v61 = vstv %s2089_s15  ;;  %v180_v46 = vadd.f32 %v3540_v58, %v163_v51  ;;  %v194_v8 = vadd.f32 %v3547_v10, %v177_v56  ;;  %v195_v9 = vadd.f32 %v3548_v54, %v178_v59  ;;  %v3554_v58 = vld [vmem:[#allocation37_spill] sm:$0xff]  ;;  %v3556_v10 = vld [vmem:[#allocation14_spill] sm:$0xff]  ;;  %s2425_s15 = sld [smem:[#allocation7 + $0x100]] }
  0x66   :  { %3539 = vst [vmem:[#allocation47_spill] sm:$0xff] %v2182_v61  ;;  %v2188_v6 = vadd.f32 %v3541_v30, %v270_v60  ;;  %v2191_v42 = vadd.f32 %v3543_v0, %v271_v63  ;;  %v2194_v1 = vadd.f32 %v3545_v7, %v272_v34  ;;  %v196_v3 = vadd.f32 %v3549_v2, %v179_v45  ;;  %v3550_v60 = vld [vmem:[#allocation69_spill] sm:$0xff]  ;;  %v3551_v63 = vld [vmem:[#allocation70_spill] sm:$0xff] }
  0x67   :  { %v2202_v21 = vstv %s2125_s16  ;;  %v2214_v56 = vmul.f32 %v2150_v41, %v3552_v18  ;;  %v3553_v45 = vld [vmem:[#allocation25_spill] sm:$0xff]  ;;  %v231_v30 = vadd.f32 %v3554_v58, %v2123_v35  ;;  %v3555_v0 = vld [vmem:[#allocation38_spill] sm:$0xff]  ;;  %v2227_v54 = vmul.f32 %v2150_v41, %v3556_v10  ;;  %v3558_v18 = vld [vmem:[#allocation32_spill] sm:$0xff]  ;;  %s2433_s16 = sld [smem:[#allocation7 + $0x180]] }
  0x68   :  { %3542 = vst [vmem:[#allocation21_spill] sm:$0xff] %v2188_v6  ;;  %v307_v51 = vadd.f32 %v3550_v60, %v2202_v21  ;;  %v308_v22 = vadd.f32 %v3551_v63, %v2202_v21  ;;  %v309_v34 = vadd.f32 %v2004_v36, %v2202_v21  ;;  %v2219_v59 = vadd.f32 %v3553_v45, %v164_v37  ;;  %v3557_v36 = vld [vmem:[#allocation30_spill] sm:$0xff]  ;;  %v3559_v58 = vld [vmem:[#allocation33_spill] sm:$0xff] }
  0x69   :  { %3544 = vst [vmem:[#allocation22_spill] sm:$0xff] %v2191_v42  ;;  %v232_v7 = vadd.f32 %v3555_v0, %v2123_v35  ;;  %v2232_v2 = vadd.f32 %v3557_v36, %v180_v46  ;;  %v2240_v45 = vadd.f32 %v3558_v18, %v194_v8  ;;  %v2243_v0 = vadd.f32 %v3559_v58, %v195_v9  ;;  %v3560_v10 = vld [vmem:[#allocation34_spill] sm:$0xff]  ;;  %v3561_v46 = vld [vmem:[#allocation39_spill] sm:$0xff]  ;;  %v3562_v8 = vld [vmem:[#allocation40_spill] sm:$0xff] }
  0x6a   :  { %3546 = vst [vmem:[#allocation23_spill] sm:$0xff] %v2194_v1  ;;  %v324_v60 = vadd.f32 %v2037_v11, %v307_v51  ;;  %v325_v37 = vadd.f32 %v2040_v49, %v308_v22  ;;  %v326_v63 = vadd.f32 %v2043_v13, %v309_v34  ;;  %v2246_v1 = vadd.f32 %v3560_v10, %v196_v3  ;;  %v3563_v3 = vld [vmem:[#allocation42_spill] sm:$0xff]  ;;  %v3564_v34 = vld [vmem:[#allocation43_spill] sm:$0xff]  ;;  %v3571_v10 = vld [vmem:[#allocation65_spill] sm:$0xff] }
  0x6b   :  { %v233_v36 = vadd.f32 %v3561_v46, %v2123_v35  ;;  %v2256_v51 = vstv %s2167_s1  ;;  %v234_v9 = vadd.f32 %v3562_v8, %v2123_v35  ;;  %v248_v22 = vadd.f32 %v3563_v3, %v231_v30  ;;  %v3569_v30 = vld [vmem:[#allocation41_spill] sm:$0xff]  ;;  %v3574_v3 = vld [vmem:[#allocation16_spill] sm:$0xff]  ;;  %s2440_s1 = sld [smem:[#allocation7 + $0x200]] }
  0x6c   :  { %v341_v11 = vadd.f32 %v2066_v24, %v324_v60  ;;  %v342_v13 = vadd.f32 %v2069_v27, %v325_v37  ;;  %v343_v49 = vadd.f32 %v2075_v43, %v326_v63  ;;  %v249_v18 = vadd.f32 %v3564_v34, %v232_v7  ;;  %v3565_v24 = vld [vmem:[#allocation64_spill] sm:$0xff] }
  0x6d   :  { %v2266_v58 = vmul.f32 %v2150_v41, %v1668_v12  ;;  %v302_v27 = vadd.f32 %v3565_v24, %v2202_v21  ;;  %v2285_v12 = vadd.f32 %v3569_v30, %v2123_v35  ;;  %v3570_v7 = vld [vmem:[#allocation44_spill] sm:$0xff]  ;;  %v303_v46 = vadd.f32 %v3571_v10, %v2202_v21  ;;  %v3578_v10 = vld [vmem:[#allocation71_spill] sm:$0xff] }
  0x6e   :  { %v2273_v43 = vadd.f32 %v2104_v44, %v341_v11  ;;  %v2276_v60 = vadd.f32 %v2107_v28, %v342_v13  ;;  %v2279_v37 = vadd.f32 %v2110_v29, %v343_v49  ;;  %v250_v63 = vadd.f32 %v3570_v7, %v233_v36  ;;  %v3572_v44 = vld [vmem:[#allocation66_spill] sm:$0xff]  ;;  %v3573_v49 = vld [vmem:[#allocation45_spill] sm:$0xff] }
  0x6f   :  { %v304_v11 = vadd.f32 %v3572_v44, %v2202_v21  ;;  %v373_v28 = vadd.f32 %v2114_v55, %v2256_v51  ;;  %v378_v29 = vadd.f32 %v2162_v4, %v2256_v51  ;;  %v379_v13 = vadd.f32 %v371_v16, %v2256_v51  ;;  %v3575_v55 = vld [vmem:[#allocation48_spill] sm:$0xff]  ;;  %v3576_v4 = vld [vmem:[#allocation49_spill] sm:$0xff]  ;;  %v3577_v16 = vld [vmem:[#allocation67_spill] sm:$0xff] }
  0x70   :  { %3566 = vst [vmem:[#allocation53_spill] sm:$0xff] %v2273_v43  ;;  %v380_v35 = vadd.f32 %v372_v5, %v2256_v51  ;;  %v251_v36 = vadd.f32 %v3573_v49, %v234_v9  ;;  %v387_v8 = vmul.f32 %v2150_v41, %v1680_v14  ;;  %v388_v34 = vmul.f32 %v2150_v41, %v3574_v3  ;;  %v3579_v14 = vld [vmem:[#allocation72_spill] sm:$0xff] }
  0x71   :  { %3567 = vst [vmem:[#allocation54_spill] sm:$0xff] %v2276_v60  ;;  %v389_v24 = vmul.f32 %v2150_v41, %v1712_v23  ;;  %v265_v30 = vadd.f32 %v3575_v55, %v248_v22  ;;  %v266_v7 = vadd.f32 %v3576_v4, %v249_v18  ;;  %v305_v5 = vadd.f32 %v3577_v16, %v2202_v21  ;;  %v3580_v23 = vld [vmem:[#allocation73_spill] sm:$0xff] }
  0x72   :  { %3568 = vst [vmem:[#allocation55_spill] sm:$0xff] %v2279_v37  ;;  %v319_v9 = vadd.f32 %v3578_v10, %v302_v27  ;;  %v320_v44 = vadd.f32 %v3579_v14, %v303_v46  ;;  %v395_v49 = vadd.f32 %v387_v8, %v378_v29  ;;  %v396_v3 = vadd.f32 %v388_v34, %v379_v13  ;;  %v3581_v27 = vld [vmem:[#allocation17_spill] sm:$0xff]  ;;  %v3585_v34 = vld [vmem:[#allocation74_spill] sm:$0xff] }
  0x73   :  { %v397_v37 = vadd.f32 %v389_v24, %v380_v35  ;;  %v321_v60 = vadd.f32 %v3580_v23, %v304_v11  ;;  %v374_v22 = vadd.f32 %v2135_v15, %v2256_v51  ;;  %v375_v18 = vadd.f32 %v2139_v19, %v2256_v51  ;;  %v3582_v19 = vld [vmem:[#allocation50_spill] sm:$0xff]  ;;  %v3584_v35 = vld [vmem:[#allocation56_spill] sm:$0xff] }
  0x74   :  { %v390_v55 = vadd.f32 %v2179_v26, %v373_v28  ;;  %v399_v46 = vmul.f32 %v2182_v61, %v3581_v27  ;;  %v404_v29 = vmul.f32 %v2182_v61, %v1747_v32  ;;  %v405_v13 = vmul.f32 %v2182_v61, %v1752_v33  ;;  %v3583_v26 = vld [vmem:[#allocation51_spill] sm:$0xff]  ;;  %v3591_v23 = vld [vmem:[#allocation68_spill] sm:$0xff] }
  0x75   :  { %v406_v15 = vmul.f32 %v2182_v61, %v1821_v52  ;;  %v267_v11 = vadd.f32 %v3582_v19, %v250_v63  ;;  %v2339_v28 = vadd.f32 %v3583_v26, %v251_v36  ;;  %v282_v8 = vadd.f32 %v3584_v35, %v265_v30  ;;  %v3587_v52 = vld [vmem:[#allocation76_spill] sm:$0xff] }
  0x76   :  { %v322_v24 = vadd.f32 %v3585_v34, %v305_v5  ;;  %v336_v32 = vadd.f32 %v2046_v50, %v319_v9  ;;  %v412_v33 = vadd.f32 %v404_v29, %v395_v49  ;;  %v413_v4 = vadd.f32 %v405_v13, %v396_v3  ;;  %v3588_v5 = vld [vmem:[#allocation19_spill] sm:$0xff]  ;;  %v3599_v19 = vld [vmem:[#allocation20_spill] sm:$0xff] }
  0x77   :  { %v414_v16 = vadd.f32 %v406_v15, %v397_v37  ;;  %v337_v10 = vadd.f32 %v3587_v52, %v320_v44  ;;  %v338_v63 = vadd.f32 %v2057_v17, %v321_v60  ;;  %v391_v36 = vadd.f32 %v2214_v56, %v374_v22  ;;  %v3589_v44 = vld [vmem:[#allocation57_spill] sm:$0xff] }
  0x78   :  { %v2352_v14 = vstv %s2171_s18  ;;  %v392_v30 = vadd.f32 %v2227_v54, %v375_v18  ;;  %v400_v50 = vmul.f32 %v2182_v61, %v3588_v5  ;;  %v401_v37 = vmul.f32 %v2182_v61, %v1722_v25  ;;  %v3590_v25 = vld [vmem:[#allocation58_spill] sm:$0xff]  ;;  %s2445_s18 = sld [smem:[#allocation7 + $0x280]] }
  0x79   :  { %v407_v9 = vadd.f32 %v399_v46, %v390_v55  ;;  %v416_v17 = vmul.f32 %v2352_v14, %v1769_v38  ;;  %v421_v56 = vmul.f32 %v2352_v14, %v1804_v47  ;;  %v422_v60 = vmul.f32 %v2352_v14, %v1826_v53  ;;  %v3596_v46 = vld [vmem:[#allocation78_spill] sm:$0xff] }
  0x7a   :  { %v423_v54 = vmul.f32 %v2352_v14, %v1853_v62  ;;  %v2374_v49 = vadd.f32 %v3589_v44, %v266_v7  ;;  %v2377_v3 = vadd.f32 %v3590_v25, %v267_v11  ;;  %v2381_v38 = vadd.f32 %v3591_v23, %v2202_v21 }
  0x7b   :  { %v376_v47 = vadd.f32 %v2143_v20, %v2256_v51  ;;  %v353_v53 = vadd.f32 %v2078_v48, %v336_v32  ;;  %v2388_v62 = vadd.f32 %v421_v56, %v412_v33  ;;  %v2390_v22 = vadd.f32 %v422_v60, %v413_v4 }
  0x7c   :  { %v2392_v7 = vadd.f32 %v423_v54, %v414_v16  ;;  %v408_v18 = vadd.f32 %v400_v50, %v391_v36  ;;  %v409_v55 = vadd.f32 %v401_v37, %v392_v30  ;;  %v417_v21 = vmul.f32 %v2352_v14, %v1774_v39  ;;  %v3597_v39 = vld [vmem:[#allocation84_spill] sm:$0xff] }
  0x7d   :  { %3592 = vst [vmem:[#allocation18_spill] sm:$0xff] %v2388_v62  ;;  %v418_v20 = vmul.f32 %v2352_v14, %v1779_v40  ;;  %v2403_v48 = vadd.f32 %v2060_v57, %v322_v24  ;;  %v2406_v27 = vadd.f32 %v2081_v31, %v337_v10  ;;  %v2409_v29 = vadd.f32 %v3596_v46, %v338_v63  ;;  %v3598_v40 = vld [vmem:[#allocation15_spill] sm:$0xff] }
  0x7e   :  { %3593 = vst [vmem:[#allocation24_spill] sm:$0xff] %v2390_v22  ;;  %v424_v13 = vadd.f32 %v416_v17, %v407_v9  ;;  %v2415_v15 = vadd.f32 %v3597_v39, %v2256_v51  ;;  %v2419_v57 = vmul.f32 %v2150_v41, %v3598_v40  ;;  %v2422_v31 = vadd.f32 %v2266_v58, %v376_v47 }
  0x7f   :  { %3594 = vst [vmem:[#allocation61_spill] sm:$0xff] %v2392_v7  ;;  %1411 = vtanh.f32 %v2240_v45  ;;  %v2429_v11 = vmul.f32 %v2182_v61, %v3599_v19  ;;  %v2435_v41 = vadd.f32 %v417_v21, %v408_v18  ;;  %v2437_v45 = vadd.f32 %v418_v20, %v409_v55 }
  0x80   :  { %1413 = vtanh.f32 %v282_v8  ;;  %v2458_v10 = vstv %s2184_s17  ;;  %v2465_v36 = vstv %s2196_s20  ;;  %v2468_v30 = vstv %s2229_s23  ;;  %s2488_s17 = sld [smem:[#allocation7 + $0x500]] }
  0x81   :  { %1415 = vtanh.f32 %v353_v53  ;;  %3600 = vst [vmem:[#allocation62_spill] sm:$0xff] %v2465_v36  ;;  %v2471_v5 = vstv %s2237_s25  ;;  %v2482_v17 = vstv %s2268_s29  ;;  %v488_v54 = vstv %s2400_s19  ;;  %s2499_s20 = sld [smem:[#allocation7 + $0x580]] }
  0x82   :  { %1417 = vtanh.f32 %v424_v13  ;;  %3601 = vst [vmem:[#allocation63_spill] sm:$0xff] %v2468_v30  ;;  %v2491_v44 = vstv %s2204_s21  ;;  %v2494_v25 = vstv %s2250_s26  ;;  %s2507_s21 = sld [smem:[#allocation4 + $0x103]]  ;;  %v492_v40 = vstv %s2411_s24 }
  0x83   :  { %3602 = vst [vmem:[#allocation27_spill] sm:$0xff] %v2471_v5  ;;  %s2514_s23 = sld [smem:[#allocation4 + $0x180]]  ;;  %v496_v19 = vstv %s2425_s15  ;;  %v2520_v52 = vstv %s2281_s3  ;;  %v512_v32 = vstv %s2451_s6  ;;  %v516_v8 = vstv %s2455_s0 }
  0x84   :  { %3603 = vst [vmem:[#allocation28_spill] sm:$0xff] %v2482_v17  ;;  %s2522_s25 = sld [smem:[#allocation4 + $0x181]]  ;;  %v520_v24 = vstv %s2462_s12  ;;  %v2551_v34 = vstv %s2292_s30  ;;  %v524_v35 = vstv %s2475_s4 }
  0x85   :  { %v2460_v63 = vpop.eup %1411  ;;  %3604 = vst [vmem:[#allocation29_spill] sm:$0xff] %v2491_v44  ;;  %s2530_s26 = sld [smem:[#allocation4 + $0x182]] }
  0x86   :  { %v2473_v50 = vpop.eup %1413  ;;  %v536_v37 = vmul.f32 %v2460_v63, %v2458_v10  ;;  %v549_v9 = vmul.f32 %v2460_v63, %v2468_v30  ;;  %3605 = vst [vmem:[#allocation69_spill] sm:$0xff] %v2494_v25  ;;  %v562_v55 = vmul.f32 %v2460_v63, %v2482_v17  ;;  %s2545_s29 = sld [smem:[#allocation4 + $0x183]]  ;;  %v528_v58 = vstv %s2488_s17 }
  0x87   :  { %v2484_v56 = vpop.eup %1415  ;;  %v473_v60 = vrot.slane %v2473_v50, 7  ;;  %v539_v53 = vmul.f32 %v2473_v50, %v2465_v36  ;;  %v552_v18 = vmul.f32 %v2473_v50, %v2471_v5  ;;  %3606 = vst [vmem:[#allocation70_spill] sm:$0xff] %v2520_v52  ;;  %v565_v33 = vmul.f32 %v2473_v50, %v2520_v52  ;;  %s2583_s0 = sld [smem:[#allocation7 + $0x1]] }
  0x88   :  { %v2496_v23 = vpop.eup %1417  ;;  %v476_v47 = vrot.slane %v2484_v56, 6  ;;  %v537_v46 = vadd.f32 %v536_v37, %v2243_v0  ;;  %v550_v13 = vadd.f32 %v549_v9, %v2374_v49  ;;  %v500_v0 = vstv %s2433_s16  ;;  %3609 = vst [vmem:[#allocation37_spill] sm:$0xff] %v2551_v34  ;;  %s2590_s6 = sld [smem:[#allocation7 + $0x81]] }
  0x89   :  { %v479_v21 = vrot.slane %v2496_v23, 5  ;;  %v482_v20 = vsel %vm481_vm0, %v2460_v63, %v473_v60  ;;  %v504_v37 = vstv %s2440_s1  ;;  %v508_v49 = vstv %s2445_s18  ;;  %s2603_s3 = sld [smem:[#allocation7 + $0x181]] }
  0x8a   :  { %v484_v39 = vsel %vm483_vm1, %v482_v20, %v476_v47  ;;  %v542_v9 = vmul.f32 %v2484_v56, %v2491_v44  ;;  %v2535_v60 = vstv %s2216_s22  ;;  %v555_v47 = vmul.f32 %v2484_v56, %v2494_v25  ;;  %s2596_s22 = sld [smem:[#allocation7 + $0x101]] }
  0x8b   :  { %v2525_v16 = vsel %vm485_vm2, %v484_v39, %v479_v21  ;;  %3607 = vst [vmem:[#allocation13_spill] sm:$0xff] %v2535_v60  ;;  %v2540_v20 = vstv %s2258_s27  ;;  %v540_v21 = vadd.f32 %v539_v53, %v537_v46  ;;  %v553_v39 = vadd.f32 %v552_v18, %v550_v13  ;;  %s3614_s27 = sld [smem:[#allocation85_spill]] }
  0x8c   :  { %3608 = vst [vmem:[#allocation25_spill] sm:$0xff] %v2540_v20  ;;  %v563_v4 = vadd.f32 %v562_v55, %v2406_v27  ;;  %v545_v26 = vmul.f32 %v2496_v23, %v2535_v60  ;;  %v558_v53 = vmul.f32 %v2496_v23, %v2540_v20  ;;  %v489_v27 = vmul.f32 %v488_v54, %v2525_v16  ;;  %s2617_s30 = sld [smem:[#allocation7 + $0x201]] }
  0x8d   :  { %v493_v18 = vmul.f32 %v492_v40, %v2525_v16  ;;  %v497_v55 = vmul.f32 %v496_v19, %v2525_v16  ;;  %v532_v46 = vstv %s2499_s20  ;;  %v543_v13 = vadd.f32 %v542_v9, %v540_v21  ;;  %s3626_s12 = sld [smem:[#allocation86_spill]] }
  0x8e   :  { %v556_v51 = vadd.f32 %v555_v47, %v553_v39  ;;  %v566_v7 = vadd.f32 %v565_v33, %v563_v4  ;;  %v568_v22 = vmul.f32 %v2484_v56, %v2551_v34  ;;  %v501_v42 = vmul.f32 %v500_v0, %v2525_v16  ;;  %s2709_s4 = sld [smem:[#allocation7 + $0x182]] }
  0x8f   :  { %v505_v62 = vmul.f32 %v504_v37, %v2525_v16  ;;  %v509_v54 = vmul.f32 %v508_v49, %v2525_v16  ;;  %v513_v40 = vmul.f32 %v512_v32, %v2525_v16  ;;  %v546_v43 = vadd.f32 %v545_v26, %v543_v13  ;;  %s2714_s19 = sld [smem:[#allocation7 + $0x202]] }
  0x90   :  { %v559_v6 = vadd.f32 %v558_v53, %v556_v51  ;;  %v569_v19 = vadd.f32 %v568_v22, %v566_v7  ;;  %v2570_v61 = vstv %s2507_s21  ;;  %v2575_v4 = vstv %s2514_s23  ;;  %s2717_s24 = sld [smem:[#allocation7 + $0x282]] }
  0x91   :  { %3610 = vst [vmem:[#allocation38_spill] sm:$0xff] %v2570_v61  ;;  %v571_v33 = vmul.f32 %v2496_v23, %v2570_v61  ;;  %v2578_v9 = vstv %s2522_s25  ;;  %v2581_v0 = vstv %s2530_s26  ;;  %v517_v32 = vmul.f32 %v516_v8, %v2525_v16  ;;  %s2719_s15 = sld [smem:[#allocation7 + $0x302]] }
  0x92   :  { %3611 = vst [vmem:[#allocation14_spill] sm:$0xff] %v2575_v4  ;;  %1419 = vtanh.f32 %v546_v43  ;;  %v575_v22 = vmul.f32 %v2460_v63, %v2575_v4  ;;  %v578_v7 = vmul.f32 %v2473_v50, %v2578_v9  ;;  %v521_v51 = vmul.f32 %v520_v24, %v2525_v16  ;;  %s2721_s16 = sld [smem:[#allocation7 + $0x382]] }
  0x93   :  { %3612 = vst [vmem:[#allocation30_spill] sm:$0xff] %v2578_v9  ;;  %1421 = vtanh.f32 %v559_v6  ;;  %v572_v26 = vadd.f32 %v571_v33, %v569_v19  ;;  %v2594_v37 = vstv %s2545_s29  ;;  %v525_v43 = vmul.f32 %v524_v35, %v2525_v16  ;;  %s2735_s1 = sld [smem:[#allocation7 + $0x402]] }
  0x94   :  { %3613 = vst [vmem:[#allocation32_spill] sm:$0xff] %v2581_v0  ;;  %v529_v8 = vmul.f32 %v528_v58, %v2525_v16  ;;  %v576_v63 = vadd.f32 %v575_v22, %v2435_v41  ;;  %v581_v50 = vmul.f32 %v2484_v56, %v2581_v0  ;;  %v3615_v6 = vstv %s2307_s7  ;;  %s2629_s7 = sld [smem:[#allocation7 + $0x281]] }
  0x95   :  { %v2607_v24 = vadd.f32 %v489_v27, %v3615_v6  ;;  %v3616_v49 = vstv %s2314_s5  ;;  %v3617_v21 = vstv %s2317_s8  ;;  %1423 = vtanh.f32 %v572_v26  ;;  %s2644_s5 = sld [smem:[#allocation7 + $0x301]] }
  0x96   :  { %v2611_v47 = vadd.f32 %v493_v18, %v3616_v49  ;;  %v2615_v35 = vadd.f32 %v497_v55, %v3617_v21  ;;  %v3618_v41 = vstv %s2325_s10  ;;  %v3619_v56 = vstv %s2335_s2  ;;  %s2658_s8 = sld [smem:[#allocation7 + $0x381]] }
  0x97   :  { %v2621_v58 = vadd.f32 %v501_v42, %v3618_v41  ;;  %v2625_v39 = vadd.f32 %v505_v62, %v3619_v56  ;;  %v579_v53 = vadd.f32 %v578_v7, %v576_v63  ;;  %v584_v27 = vmul.f32 %v2496_v23, %v2594_v37  ;;  %s2660_s10 = sld [smem:[#allocation7 + $0x401]] }
  0x98   :  { %v3620_v18 = vstv %s2343_s11  ;;  %v3621_v55 = vstv %s3614_s27  ;;  %v3622_v33 = vstv %s2354_s28  ;;  %v533_v42 = vmul.f32 %v532_v46, %v2525_v16  ;;  %v1420_v62 = vpop.eup %1419  ;;  %s2666_s2 = sld [smem:[#allocation7 + $0x481]] }
  0x99   :  { %v2633_v13 = vadd.f32 %v509_v54, %v3620_v18  ;;  %v2637_v19 = vadd.f32 %v513_v40, %v3621_v55  ;;  %v2641_v22 = vadd.f32 %v517_v32, %v3622_v33  ;;  %v3623_v7 = vstv %s2361_s13  ;;  %v1422_v40 = vpop.eup %1421  ;;  %s2670_s11 = sld [smem:[#allocation7 + $0x501]] }
  0x9a   :  { %v2648_v26 = vadd.f32 %v521_v51, %v3623_v7  ;;  %v3624_v23 = vstv %s2371_s9  ;;  %v3625_v6 = vstv %s2385_s14  ;;  %v582_v49 = vadd.f32 %v581_v50, %v579_v53  ;;  %s2677_s28 = sld [smem:[#allocation7 + $0x581]] }
  0x9b   :  { %v2652_v63 = vadd.f32 %v525_v43, %v3624_v23  ;;  %v2656_v54 = vadd.f32 %v529_v8, %v3625_v6  ;;  %v647_v16 = vmul.f32 %v1420_v62, %v2458_v10  ;;  %v656_v46 = vmul.f32 %v1420_v62, %v2468_v30  ;;  %v1424_v41 = vpop.eup %1423  ;;  %s2695_s13 = sld [smem:[#allocation7 + $0x2]] }
  0x9c   :  { %v665_v32 = vmul.f32 %v1420_v62, %v2482_v17  ;;  %v674_v51 = vmul.f32 %v1420_v62, %v2575_v4  ;;  %v585_v21 = vadd.f32 %v584_v27, %v582_v49  ;;  %v588_v43 = vrot.slane %v1422_v40, 7  ;;  %s2698_s9 = sld [smem:[#allocation7 + $0x82]] }
  0x9d   :  { %v649_v8 = vmul.f32 %v1422_v40, %v2465_v36  ;;  %v658_v50 = vmul.f32 %v1422_v40, %v2471_v5  ;;  %v648_v56 = vadd.f32 %v647_v16, %v2246_v1  ;;  %v657_v53 = vadd.f32 %v656_v46, %v2377_v3  ;;  %s2704_s14 = sld [smem:[#allocation7 + $0x102]] }
  0x9e   :  { %v666_v18 = vadd.f32 %v665_v32, %v2409_v29  ;;  %v667_v27 = vmul.f32 %v1422_v40, %v2520_v52  ;;  %1425 = vtanh.f32 %v585_v21  ;;  %v591_v55 = vrot.slane %v1424_v41, 6  ;;  %s2749_s18 = sld [smem:[#allocation7 + $0x482]] }
  0x9f   :  { %v596_v33 = vsel %vm481_vm0, %v1420_v62, %v588_v43  ;;  %v651_v1 = vmul.f32 %v1424_v41, %v2491_v44  ;;  %v650_v7 = vadd.f32 %v649_v8, %v648_v56  ;;  %v659_v3 = vadd.f32 %v658_v50, %v657_v53  ;;  %s2751_s17 = sld [smem:[#allocation7 + $0x502]] }
  0xa0   :  { %v660_v29 = vmul.f32 %v1424_v41, %v2494_v25  ;;  %v668_v23 = vadd.f32 %v667_v27, %v666_v18  ;;  %v597_v6 = vsel %vm483_vm1, %v596_v33, %v591_v55  ;;  %v669_v49 = vmul.f32 %v1424_v41, %v2551_v34  ;;  %s2757_s20 = sld [smem:[#allocation7 + $0x582]] }
  0xa1   :  { %v675_v16 = vadd.f32 %v674_v51, %v2437_v45  ;;  %v676_v46 = vmul.f32 %v1422_v40, %v2578_v9  ;;  %v3627_v62 = vstv %s3626_s12  ;;  %v600_v21 = vstv %s2583_s0  ;;  %s3635_s25 = sld [smem:[#allocation87_spill]] }
  0xa2   :  { %v2687_v32 = vadd.f32 %v533_v42, %v3627_v62  ;;  %v604_v43 = vstv %s2590_s6  ;;  %v608_v8 = vstv %s2596_s22  ;;  %v612_v50 = vstv %s2603_s3  ;;  %s2857_s26 = sld [smem:[#allocation7 + $0x3]] }
  0xa3   :  { %v616_v56 = vstv %s2617_s30  ;;  %v677_v53 = vadd.f32 %v676_v46, %v675_v16  ;;  %v678_v18 = vmul.f32 %v1424_v41, %v2581_v0  ;;  %v620_v45 = vstv %s2629_s7  ;;  %s2871_s29 = sld [smem:[#allocation7 + $0x83]] }
  0xa4   :  { %v652_v40 = vadd.f32 %v651_v1, %v650_v7  ;;  %v661_v51 = vadd.f32 %v660_v29, %v659_v3  ;;  %v670_v42 = vadd.f32 %v669_v49, %v668_v23  ;;  %v1426_v27 = vpop.eup %1425  ;;  %v624_v55 = vstv %s2644_s5  ;;  %s2873_s0 = sld [smem:[#allocation7 + $0x103]] }
  0xa5   :  { %v628_v33 = vstv %s2658_s8  ;;  %v632_v62 = vstv %s2660_s10  ;;  %v636_v9 = vstv %s2666_s2  ;;  %v594_v16 = vrot.slane %v1426_v27, 5  ;;  %s2877_s6 = sld [smem:[#allocation7 + $0x183]] }
  0xa6   :  { %v653_v41 = vmul.f32 %v1426_v27, %v2535_v60  ;;  %v662_v46 = vmul.f32 %v1426_v27, %v2540_v20  ;;  %v671_v0 = vmul.f32 %v1426_v27, %v2570_v61  ;;  %v640_v1 = vstv %s2670_s11  ;;  %s2891_s22 = sld [smem:[#allocation7 + $0x203]] }
  0xa7   :  { %v644_v7 = vstv %s2677_s28  ;;  %v679_v3 = vadd.f32 %v678_v18, %v677_v53  ;;  %v680_v29 = vmul.f32 %v1426_v27, %v2594_v37  ;;  %v598_v23 = vsel %vm485_vm2, %v597_v6, %v594_v16  ;;  %s2894_s27 = sld [smem:[#allocation7 + $0x283]] }
  0xa8   :  { %v654_v49 = vadd.f32 %v653_v41, %v652_v40  ;;  %v663_v34 = vadd.f32 %v662_v46, %v661_v51  ;;  %v672_v52 = vadd.f32 %v671_v0, %v670_v42  ;;  %v601_v60 = vmul.f32 %v600_v21, %v598_v23  ;;  %s2912_s7 = sld [smem:[#allocation7 + $0x303]] }
  0xa9   :  { %v605_v20 = vmul.f32 %v604_v43, %v598_v23  ;;  %v609_v25 = vmul.f32 %v608_v8, %v598_v23  ;;  %v613_v61 = vmul.f32 %v612_v50, %v598_v23  ;;  %v617_v5 = vmul.f32 %v616_v56, %v598_v23  ;;  %v3633_v56 = vld [vmem:[#allocation75_spill] sm:$0xff]  ;;  %s2918_s5 = sld [smem:[#allocation7 + $0x383]] }
  0xaa   :  { %v621_v44 = vmul.f32 %v620_v45, %v598_v23  ;;  %v625_v53 = vmul.f32 %v624_v55, %v598_v23  ;;  %v629_v18 = vmul.f32 %v628_v33, %v598_v23  ;;  %v2724_v27 = vadd.f32 %v601_v60, %v2607_v24  ;;  %s2923_s8 = sld [smem:[#allocation7 + $0x403]] }
  0xab   :  { %v2727_v6 = vadd.f32 %v605_v20, %v2611_v47  ;;  %v2730_v0 = vadd.f32 %v609_v25, %v2615_v35  ;;  %v2733_v21 = vadd.f32 %v613_v61, %v2621_v58  ;;  %v2738_v43 = vadd.f32 %v617_v5, %v2625_v39  ;;  %v3628_v35 = vld [vmem:[#allocation26_spill] sm:$0xff]  ;;  %s2925_s10 = sld [smem:[#allocation7 + $0x483]] }
  0xac   :  { %v2741_v8 = vadd.f32 %v621_v44, %v2633_v13  ;;  %v2744_v60 = vadd.f32 %v625_v53, %v2637_v19  ;;  %v2747_v20 = vadd.f32 %v629_v18, %v2641_v22  ;;  %v633_v25 = vmul.f32 %v632_v62, %v598_v23  ;;  %v3630_v22 = vld [vmem:[#allocation35_spill] sm:$0xff]  ;;  %s2933_s2 = sld [smem:[#allocation7 + $0x503]] }
  0xad   :  { %v637_v24 = vmul.f32 %v636_v9, %v598_v23  ;;  %v641_v61 = vmul.f32 %v640_v1, %v598_v23  ;;  %v645_v47 = vmul.f32 %v644_v7, %v598_v23  ;;  %v410_v5 = vadd.f32 %v2429_v11, %v2422_v31  ;;  %v3629_v11 = vld [vmem:[#allocation31_spill] sm:$0xff]  ;;  %s2936_s11 = sld [smem:[#allocation7 + $0x583]] }
  0xae   :  { %v419_v44 = vmul.f32 %v2352_v14, %v3628_v35  ;;  %1427 = vtanh.f32 %v654_v49  ;;  %v681_v58 = vadd.f32 %v680_v29, %v679_v3  ;;  %v2760_v39 = vadd.f32 %v633_v25, %v2648_v26  ;;  %v3637_v35 = vld [vmem:[#allocation29_spill] sm:$0xff]  ;;  %s2971_s12 = sld [smem:[#allocation7 + $0x4]] }
  0xaf   :  { %v2763_v13 = vadd.f32 %v637_v24, %v2652_v63  ;;  %v2766_v9 = vadd.f32 %v641_v61, %v2656_v54  ;;  %v2769_v31 = vadd.f32 %v645_v47, %v2687_v32  ;;  %v2773_v19 = vadd.f32 %v3629_v11, %v2219_v59  ;;  %v3631_v63 = vld [vmem:[#allocation46_spill] sm:$0xff]  ;;  %v3632_v54 = vld [vmem:[#allocation59_spill] sm:$0xff]  ;;  %s2985_s28 = sld [smem:[#allocation7 + $0x84]] }
  0xb0   :  { %v214_v26 = vadd.f32 %v3630_v22, %v2232_v2  ;;  %v2779_v50 = vadd.f32 %v3631_v63, %v2285_v12  ;;  %1429 = vtanh.f32 %v663_v34  ;;  %v285_v32 = vadd.f32 %v3632_v54, %v2339_v28  ;;  %v3634_v59 = vld [vmem:[#allocation79_spill] sm:$0xff]  ;;  %v3639_v22 = vld [vmem:[#allocation69_spill] sm:$0xff]  ;;  %s3071_s21 = sld [smem:[#allocation7 + $0x105]] }
  0xb1   :  { %v2785_v45 = vadd.f32 %v3633_v56, %v2381_v38  ;;  %v356_v40 = vadd.f32 %v3634_v59, %v2403_v48  ;;  %1431 = vtanh.f32 %v672_v52  ;;  %v2791_v2 = vadd.f32 %v2419_v57, %v2415_v15  ;;  %v1475_v12 = vld [vmem:[%s3635_s25 + $0x12] sm:$0x1]  ;;  %v3640_v59 = vld [vmem:[#allocation13_spill] sm:$0xff]  ;;  %s3075_s23 = sld [smem:[#allocation7 + $0x185]] }
  0xb2   :  { %v3636_v28 = vld [vmem:[#allocation47_spill] sm:$0xff]  ;;  %v2799_v38 = vadd.f32 %v419_v44, %v410_v5  ;;  %1433 = vtanh.f32 %v681_v58  ;;  %v696_v48 = vstv %s2695_s13  ;;  %v700_v51 = vstv %s2698_s9  ;;  %s2987_s13 = sld [smem:[#allocation7 + $0x104]] }
  0xb3   :  { %v2797_v34 = vmul.f32 %v1475_v12, %v3636_v28  ;;  %v704_v52 = vstv %s2704_s14  ;;  %v708_v42 = vstv %s2709_s4  ;;  %v712_v33 = vstv %s2714_s19  ;;  %v3638_v58 = vld [vmem:[#allocation27_spill] sm:$0xff]  ;;  %s2989_s9 = sld [smem:[#allocation7 + $0x184]] }
  0xb4   :  { %v1428_v55 = vpop.eup %1427  ;;  %v716_v15 = vstv %s2717_s24  ;;  %v720_v57 = vstv %s2719_s15  ;;  %v724_v62 = vstv %s2721_s16  ;;  %v728_v16 = vstv %s2735_s1  ;;  %s3003_s14 = sld [smem:[#allocation7 + $0x204]] }
  0xb5   :  { %v732_v41 = vstv %s2749_s18  ;;  %v743_v46 = vmul.f32 %v1428_v55, %v2458_v10  ;;  %v752_v1 = vmul.f32 %v1428_v55, %v2468_v30  ;;  %v736_v3 = vstv %s2751_s17  ;;  %s3005_s4 = sld [smem:[#allocation7 + $0x284]] }
  0xb6   :  { %v2813_v7 = vpop.eup %1429  ;;  %v740_v29 = vstv %s2757_s20  ;;  %v761_v23 = vmul.f32 %v1428_v55, %v2482_v17  ;;  %v770_v49 = vmul.f32 %v1428_v55, %v2575_v4  ;;  %v3642_v4 = vld [vmem:[#allocation70_spill] sm:$0xff]  ;;  %v3643_v17 = vld [vmem:[#allocation37_spill] sm:$0xff]  ;;  %s3007_s19 = sld [smem:[#allocation7 + $0x304]] }
  0xb7   :  { %v2819_v53 = vpop.eup %1431  ;;  %v684_v18 = vrot.slane %v2813_v7, 7  ;;  %v744_v25 = vadd.f32 %v743_v46, %v214_v26  ;;  %v745_v24 = vmul.f32 %v2813_v7, %v2465_v36  ;;  %v753_v61 = vadd.f32 %v752_v1, %v285_v32  ;;  %v3641_v46 = vld [vmem:[#allocation25_spill] sm:$0xff]  ;;  %s3009_s24 = sld [smem:[#allocation7 + $0x384]] }
  0xb8   :  { %v2824_v47 = vpop.eup %1433  ;;  %v687_v5 = vrot.slane %v2819_v53, 6  ;;  %v747_v44 = vmul.f32 %v2819_v53, %v3637_v35  ;;  %v754_v11 = vmul.f32 %v2813_v7, %v3638_v58  ;;  %v756_v63 = vmul.f32 %v2819_v53, %v3639_v22  ;;  %s3011_s15 = sld [smem:[#allocation7 + $0x404]] }
  0xb9   :  { %v690_v54 = vrot.slane %v2824_v47, 5  ;;  %v692_v26 = vsel %vm481_vm0, %v1428_v55, %v684_v18  ;;  %v746_v56 = vadd.f32 %v745_v24, %v744_v25  ;;  %v749_v32 = vmul.f32 %v2824_v47, %v3640_v59  ;;  %s3013_s16 = sld [smem:[#allocation7 + $0x484]] }
  0xba   :  { %v693_v12 = vsel %vm483_vm1, %v692_v26, %v687_v5  ;;  %v755_v28 = vadd.f32 %v754_v11, %v753_v61  ;;  %v758_v1 = vmul.f32 %v2824_v47, %v3641_v46  ;;  %v762_v35 = vadd.f32 %v761_v23, %v356_v40  ;;  %s3015_s1 = sld [smem:[#allocation7 + $0x504]] }
  0xbb   :  { %v694_v58 = vsel %vm485_vm2, %v693_v12, %v690_v54  ;;  %v748_v36 = vadd.f32 %v747_v44, %v746_v56  ;;  %v763_v22 = vmul.f32 %v2813_v7, %v3642_v4  ;;  %v765_v55 = vmul.f32 %v2819_v53, %v3643_v17  ;;  %v3651_v54 = vld [vmem:[#allocation83_spill] sm:$0xff]  ;;  %s3022_s18 = sld [smem:[#allocation7 + $0x584]] }
  0xbc   :  { %v697_v18 = vmul.f32 %v696_v48, %v694_v58  ;;  %v701_v25 = vmul.f32 %v700_v51, %v694_v58  ;;  %v705_v24 = vmul.f32 %v704_v52, %v694_v58  ;;  %v709_v59 = vmul.f32 %v708_v42, %v694_v58  ;;  %s3031_s17 = sld [smem:[#allocation7 + $0x5]] }
  0xbd   :  { %v713_v30 = vmul.f32 %v712_v33, %v694_v58  ;;  %v717_v5 = vmul.f32 %v716_v15, %v694_v58  ;;  %v721_v61 = vmul.f32 %v720_v57, %v694_v58  ;;  %v725_v11 = vmul.f32 %v724_v62, %v694_v58  ;;  %v3644_v15 = vld [vmem:[#allocation38_spill] sm:$0xff]  ;;  %s3069_s20 = sld [smem:[#allocation7 + $0x85]] }
  0xbe   :  { %v2846_v26 = vadd.f32 %v697_v18, %v2724_v27  ;;  %v2849_v40 = vadd.f32 %v701_v25, %v2727_v6  ;;  %v2852_v23 = vadd.f32 %v705_v24, %v2730_v0  ;;  %v2855_v44 = vadd.f32 %v709_v59, %v2733_v21  ;;  %v3653_v25 = vld [vmem:[#allocation28_spill] sm:$0xff]  ;;  %s3143_s3 = sld [smem:[#allocation7 + $0x585]] }
  0xbf   :  { %v2860_v48 = vadd.f32 %v713_v30, %v2738_v43  ;;  %v2863_v51 = vadd.f32 %v717_v5, %v2741_v8  ;;  %v2866_v27 = vadd.f32 %v721_v61, %v2744_v60  ;;  %v2869_v6 = vadd.f32 %v725_v11, %v2747_v20  ;;  %s3158_s30 = sld [smem:[#allocation7 + $0x6]] }
  0xc0   :  { %v729_v0 = vmul.f32 %v728_v16, %v694_v58  ;;  %v733_v52 = vmul.f32 %v732_v41, %v694_v58  ;;  %v737_v21 = vmul.f32 %v736_v3, %v694_v58  ;;  %v741_v42 = vmul.f32 %v740_v29, %v694_v58 }
  0xc1   :  { %v750_v33 = vadd.f32 %v749_v32, %v748_v36  ;;  %v757_v30 = vadd.f32 %v756_v63, %v755_v28  ;;  %v764_v43 = vadd.f32 %v763_v22, %v762_v35  ;;  %v767_v8 = vmul.f32 %v2824_v47, %v3644_v15 }
  0xc2   :  { %v2880_v60 = vadd.f32 %v729_v0, %v2760_v39  ;;  %v2883_v20 = vadd.f32 %v733_v52, %v2763_v13  ;;  %v2886_v57 = vadd.f32 %v737_v21, %v2766_v9  ;;  %v2889_v62 = vadd.f32 %v741_v42, %v2769_v31  ;;  %v3645_v39 = vld [vmem:[#allocation52_spill] sm:$0xff]  ;;  %v3646_v13 = vld [vmem:[#allocation77_spill] sm:$0xff]  ;;  %v3647_v9 = vld [vmem:[#allocation30_spill] sm:$0xff] }
  0xc3   :  { %1435 = vtanh.f32 %v750_v33  ;;  %v759_v36 = vadd.f32 %v758_v1, %v757_v30  ;;  %v766_v16 = vadd.f32 %v765_v55, %v764_v43  ;;  %v771_v41 = vadd.f32 %v770_v49, %v2799_v38  ;;  %v3648_v31 = vld [vmem:[#allocation32_spill] sm:$0xff]  ;;  %v1476_v38 = vld [vmem:[%s3635_s25 + $0x13] sm:$0x1]  ;;  %v3654_v52 = vld [vmem:[#allocation14_spill] sm:$0xff]  ;;  %s3083_s25 = sld [smem:[#allocation7 + $0x205]] }
  0xc4   :  { %v269_v3 = vadd.f32 %v3645_v39, %v2779_v50  ;;  %v340_v29 = vadd.f32 %v3646_v13, %v2785_v45  ;;  %v772_v35 = vmul.f32 %v2813_v7, %v3647_v9  ;;  %v774_v58 = vmul.f32 %v2819_v53, %v3648_v31  ;;  %v3650_v53 = vld [vmem:[#allocation60_spill] sm:$0xff]  ;;  %v3652_v55 = vld [vmem:[#allocation63_spill] sm:$0xff]  ;;  %v3655_v30 = vld [vmem:[#allocation62_spill] sm:$0xff] }
  0xc5   :  { %v411_v22 = vadd.f32 %v2797_v34, %v2791_v2  ;;  %v420_v50 = vmul.f32 %v1476_v38, %v2352_v14  ;;  %1437 = vtanh.f32 %v759_v36  ;;  %v768_v45 = vadd.f32 %v767_v8, %v766_v16  ;;  %v3649_v2 = vld [vmem:[#allocation36_spill] sm:$0xff]  ;;  %v3656_v16 = vld [vmem:[#allocation27_spill] sm:$0xff] }
  0xc6   :  { %v773_v49 = vadd.f32 %v772_v35, %v771_v41  ;;  %v776_v7 = vmul.f32 %v2824_v47, %v2594_v37  ;;  %v215_v34 = vadd.f32 %v3649_v2, %v2773_v19  ;;  %v286_v63 = vadd.f32 %v3650_v53, %v269_v3 }
  0xc7   :  { %1439 = vtanh.f32 %v768_v45  ;;  %v357_v56 = vadd.f32 %v3651_v54, %v340_v29  ;;  %v428_v32 = vadd.f32 %v420_v50, %v411_v22  ;;  %v792_v12 = vstv %s2857_s26  ;;  %v3658_v50 = vld [vmem:[#allocation69_spill] sm:$0xff]  ;;  %s3086_s26 = sld [smem:[#allocation7 + $0x285]] }
  0xc8   :  { %v775_v14 = vadd.f32 %v774_v58, %v773_v49  ;;  %v796_v47 = vstv %s2871_s29  ;;  %v800_v28 = vstv %s2873_s0  ;;  %v804_v61 = vstv %s2877_s6  ;;  %v3657_v58 = vld [vmem:[#allocation29_spill] sm:$0xff]  ;;  %s3109_s29 = sld [smem:[#allocation7 + $0x305]] }
  0xc9   :  { %v1436_v59 = vpop.eup %1435  ;;  %v808_v11 = vstv %s2891_s22  ;;  %v812_v0 = vstv %s2894_s27  ;;  %v816_v2 = vstv %s2912_s7  ;;  %s3120_s0 = sld [smem:[#allocation7 + $0x385]] }
  0xca   :  { %v777_v1 = vadd.f32 %v776_v7, %v775_v14  ;;  %v839_v19 = vmul.f32 %v1436_v59, %v2458_v10  ;;  %v848_v18 = vmul.f32 %v1436_v59, %v3652_v55  ;;  %v857_v24 = vmul.f32 %v1436_v59, %v3653_v25  ;;  %s3130_s6 = sld [smem:[#allocation7 + $0x405]] }
  0xcb   :  { %v1438_v5 = vpop.eup %1437  ;;  %v866_v21 = vmul.f32 %v1436_v59, %v3654_v52  ;;  %s3132_s22 = sld [smem:[#allocation7 + $0x485]] }
  0xcc   :  { %1441 = vtanh.f32 %v777_v1  ;;  %v780_v42 = vrot.slane %v1438_v5, 7  ;;  %v840_v33 = vadd.f32 %v839_v19, %v215_v34  ;;  %v841_v43 = vmul.f32 %v1438_v5, %v3655_v30  ;;  %s3140_s27 = sld [smem:[#allocation7 + $0x505]] }
  0xcd   :  { %v1440_v8 = vpop.eup %1439  ;;  %v849_v36 = vadd.f32 %v848_v18, %v286_v63  ;;  %v850_v41 = vmul.f32 %v1438_v5, %v3656_v16  ;;  %v858_v39 = vadd.f32 %v857_v24, %v357_v56  ;;  %v859_v3 = vmul.f32 %v1438_v5, %v3642_v4  ;;  %s3162_s7 = sld [smem:[#allocation7 + $0x86]] }
  0xce   :  { %v783_v13 = vrot.slane %v1440_v8, 6  ;;  %v788_v29 = vsel %vm481_vm0, %v1436_v59, %v780_v42  ;;  %v842_v35 = vadd.f32 %v841_v43, %v840_v33  ;;  %v843_v22 = vmul.f32 %v1440_v8, %v3657_v58  ;;  %v3659_v43 = vld [vmem:[#allocation13_spill] sm:$0xff] }
  0xcf   :  { %v851_v38 = vadd.f32 %v850_v41, %v849_v36  ;;  %v852_v45 = vmul.f32 %v1440_v8, %v3658_v50  ;;  %v860_v49 = vadd.f32 %v859_v3, %v858_v39  ;;  %v861_v7 = vmul.f32 %v1440_v8, %v3643_v17 }
  0xd0   :  { %v820_v34 = vstv %s2918_s5  ;;  %v867_v53 = vadd.f32 %v866_v21, %v428_v32  ;;  %v868_v63 = vmul.f32 %v1438_v5, %v3647_v9  ;;  %v844_v54 = vadd.f32 %v843_v22, %v842_v35  ;;  %s3167_s5 = sld [smem:[#allocation7 + $0x106]] }
  0xd1   :  { %v853_v56 = vadd.f32 %v852_v45, %v851_v38  ;;  %v862_v14 = vadd.f32 %v861_v7, %v860_v49  ;;  %v870_v59 = vmul.f32 %v1440_v8, %v3648_v31  ;;  %v789_v19 = vsel %vm483_vm1, %v788_v29, %v783_v13 }
  0xd2   :  { %v1442_v1 = vpop.eup %1441  ;;  %v824_v18 = vstv %s2923_s8  ;;  %v828_v24 = vstv %s2925_s10  ;;  %v869_v42 = vadd.f32 %v868_v63, %v867_v53  ;;  %v832_v21 = vstv %s2933_s2  ;;  %s3172_s8 = sld [smem:[#allocation7 + $0x186]] }
  0xd3   :  { %v786_v33 = vrot.slane %v1442_v1, 5  ;;  %v845_v36 = vmul.f32 %v1442_v1, %v3659_v43  ;;  %v854_v41 = vmul.f32 %v1442_v1, %v3641_v46  ;;  %v863_v32 = vmul.f32 %v1442_v1, %v3644_v15  ;;  %s3177_s10 = sld [smem:[#allocation7 + $0x206]] }
  0xd4   :  { %v836_v5 = vstv %s2936_s11  ;;  %v871_v39 = vadd.f32 %v870_v59, %v869_v42  ;;  %v872_v3 = vmul.f32 %v1442_v1, %v2594_v37  ;;  %s3180_s2 = sld [smem:[#allocation7 + $0x286]] }
  0xd5   :  { %v790_v8 = vsel %vm485_vm2, %v789_v19, %v786_v33  ;;  %v846_v35 = vadd.f32 %v845_v36, %v844_v54  ;;  %v855_v22 = vadd.f32 %v854_v41, %v853_v56  ;;  %v864_v13 = vadd.f32 %v863_v32, %v862_v14  ;;  %v3660_v56 = vld [vmem:[#allocation80_spill] sm:$0xff]  ;;  %v3661_v33 = vld [vmem:[#allocation21_spill] sm:$0xff]  ;;  %s3188_s11 = sld [smem:[#allocation7 + $0x306]] }
  0xd6   :  { %v793_v29 = vmul.f32 %v792_v12, %v790_v8  ;;  %v797_v38 = vmul.f32 %v796_v47, %v790_v8  ;;  %v801_v45 = vmul.f32 %v800_v28, %v790_v8  ;;  %v805_v49 = vmul.f32 %v804_v61, %v790_v8 }
  0xd7   :  { %v809_v7 = vmul.f32 %v808_v11, %v790_v8  ;;  %v813_v53 = vmul.f32 %v812_v0, %v790_v8  ;;  %v817_v63 = vmul.f32 %v816_v2, %v790_v8  ;;  %v821_v31 = vmul.f32 %v820_v34, %v790_v8 }
  0xd8   :  { %v2960_v9 = vadd.f32 %v793_v29, %v2846_v26  ;;  %v2963_v59 = vadd.f32 %v797_v38, %v2849_v40  ;;  %v2966_v1 = vadd.f32 %v801_v45, %v2852_v23  ;;  %v2969_v54 = vadd.f32 %v805_v49, %v2855_v44 }
  0xd9   :  { %v2974_v12 = vadd.f32 %v809_v7, %v2860_v48  ;;  %v2977_v47 = vadd.f32 %v813_v53, %v2863_v51  ;;  %v2980_v26 = vadd.f32 %v817_v63, %v2866_v27  ;;  %v2983_v40 = vadd.f32 %v821_v31, %v2869_v6 }
  0xda   :  { %v825_v23 = vmul.f32 %v824_v18, %v790_v8  ;;  %v829_v28 = vmul.f32 %v828_v24, %v790_v8  ;;  %v833_v44 = vmul.f32 %v832_v21, %v790_v8  ;;  %v837_v61 = vmul.f32 %v836_v5, %v790_v8 }
  0xdb   :  { %1443 = vtanh.f32 %v846_v35  ;;  %v873_v48 = vadd.f32 %v872_v3, %v871_v39  ;;  %v888_v11 = vstv %s2971_s12  ;;  %v892_v34 = vstv %s2985_s28  ;;  %s3190_s12 = sld [smem:[#allocation7 + $0x386]] }
  0xdc   :  { %v2992_v51 = vadd.f32 %v825_v23, %v2880_v60  ;;  %v2995_v27 = vadd.f32 %v829_v28, %v2883_v20  ;;  %v2998_v6 = vadd.f32 %v833_v44, %v2886_v57  ;;  %v3001_v31 = vadd.f32 %v837_v61, %v2889_v62  ;;  %v3662_v44 = vld [vmem:[#allocation53_spill] sm:$0xff]  ;;  %s3204_s28 = sld [smem:[#allocation7 + $0x406]] }
  0xdd   :  { %1445 = vtanh.f32 %v855_v22  ;;  %v896_v8 = vstv %s2987_s13  ;;  %v900_v35 = vstv %s2989_s9  ;;  %v904_v22 = vstv %s3003_s14  ;;  %s3218_s13 = sld [smem:[#allocation7 + $0x486]] }
  0xde   :  { %1447 = vtanh.f32 %v864_v13  ;;  %v908_v29 = vstv %s3005_s4  ;;  %v912_v38 = vstv %s3007_s19  ;;  %v916_v45 = vstv %s3009_s24  ;;  %s3220_s9 = sld [smem:[#allocation7 + $0x506]] }
  0xdf   :  { %1449 = vtanh.f32 %v873_v48  ;;  %v920_v49 = vstv %s3011_s15  ;;  %v924_v7 = vstv %s3013_s16  ;;  %s3222_s14 = sld [smem:[#allocation7 + $0x586]] }
  0xe0   :  { %s3303_s4 = sld [smem:[#allocation7 + $0x7]] }
  0xe1   :  { %v1444_v60 = vpop.eup %1443  ;;  %s3306_s19 = sld [smem:[#allocation7 + $0x87]] }
  0xe2   :  { %v935_v20 = vmul.f32 %v1444_v60, %v2458_v10  ;;  %v944_v57 = vmul.f32 %v1444_v60, %v3652_v55  ;;  %v953_v41 = vmul.f32 %v1444_v60, %v3653_v25  ;;  %s3310_s24 = sld [smem:[#allocation7 + $0x107]] }
  0xe3   :  { %v3019_v62 = vpop.eup %1445  ;;  %s3312_s15 = sld [smem:[#allocation7 + $0x187]] }
  0xe4   :  { %v3024_v0 = vpop.eup %1447  ;;  %v876_v2 = vrot.slane %v3019_v62, 7  ;;  %v936_v14 = vadd.f32 %v935_v20, %v3660_v56  ;;  %v937_v19 = vmul.f32 %v3019_v62, %v3655_v30  ;;  %v945_v36 = vadd.f32 %v944_v57, %v3661_v33  ;;  %s3315_s16 = sld [smem:[#allocation7 + $0x207]] }
  0xe5   :  { %v3033_v18 = vpop.eup %1449  ;;  %v879_v24 = vrot.slane %v3024_v0, 6  ;;  %v939_v42 = vmul.f32 %v3024_v0, %v3657_v58  ;;  %v946_v39 = vmul.f32 %v3019_v62, %v3656_v16  ;;  %v948_v63 = vmul.f32 %v3024_v0, %v3658_v50 }
  0xe6   :  { %v882_v32 = vrot.slane %v3033_v18, 5  ;;  %v884_v21 = vsel %vm481_vm0, %v1444_v60, %v876_v2  ;;  %v938_v5 = vadd.f32 %v937_v19, %v936_v14  ;;  %v941_v53 = vmul.f32 %v3033_v18, %v3659_v43 }
  0xe7   :  { %v885_v3 = vsel %vm483_vm1, %v884_v21, %v879_v24  ;;  %v947_v28 = vadd.f32 %v946_v39, %v945_v36  ;;  %v954_v61 = vadd.f32 %v953_v41, %v3662_v44  ;;  %v955_v48 = vmul.f32 %v3019_v62, %v3642_v4  ;;  %v3665_v44 = vld [vmem:[#allocation32_spill] sm:$0xff] }
  0xe8   :  { %v886_v13 = vsel %vm485_vm2, %v885_v3, %v882_v32  ;;  %v940_v23 = vadd.f32 %v939_v42, %v938_v5  ;;  %v928_v2 = vstv %s3015_s1  ;;  %v932_v56 = vstv %s3022_s18  ;;  %s3317_s1 = sld [smem:[#allocation7 + $0x287]] }
  0xe9   :  { %v889_v20 = vmul.f32 %v888_v11, %v886_v13  ;;  %v893_v57 = vmul.f32 %v892_v34, %v886_v13  ;;  %v950_v14 = vmul.f32 %v3033_v18, %v3641_v46  ;;  %v957_v19 = vmul.f32 %v3024_v0, %v3643_v17  ;;  %s3319_s18 = sld [smem:[#allocation7 + $0x307]] }
  0xea   :  { %v962_v24 = vmul.f32 %v1444_v60, %v3654_v52  ;;  %v984_v33 = vstv %s3031_s17  ;;  %v897_v42 = vmul.f32 %v896_v8, %v886_v13  ;;  %v901_v36 = vmul.f32 %v900_v35, %v886_v13  ;;  %s3321_s17 = sld [smem:[#allocation7 + $0x387]] }
  0xeb   :  { %v905_v41 = vmul.f32 %v904_v22, %v886_v13  ;;  %v909_v32 = vmul.f32 %v908_v29, %v886_v13  ;;  %v942_v11 = vadd.f32 %v941_v53, %v940_v23  ;;  %v949_v34 = vadd.f32 %v948_v63, %v947_v28  ;;  %v3663_v29 = vld [vmem:[#allocation18_spill] sm:$0xff] }
  0xec   :  { %v956_v21 = vadd.f32 %v955_v48, %v954_v61  ;;  %v959_v5 = vmul.f32 %v3033_v18, %v3644_v15  ;;  %v3078_v39 = vadd.f32 %v889_v20, %v2960_v9  ;;  %v3081_v60 = vadd.f32 %v893_v57, %v2963_v59  ;;  %v3664_v28 = vld [vmem:[#allocation30_spill] sm:$0xff] }
  0xed   :  { %v913_v3 = vmul.f32 %v912_v38, %v886_v13  ;;  %v917_v8 = vmul.f32 %v916_v45, %v886_v13  ;;  %1451 = vtanh.f32 %v942_v11  ;;  %v951_v35 = vadd.f32 %v950_v14, %v949_v34 }
  0xee   :  { %v958_v22 = vadd.f32 %v957_v19, %v956_v21  ;;  %v963_v53 = vadd.f32 %v962_v24, %v3663_v29  ;;  %v921_v63 = vmul.f32 %v920_v49, %v886_v13  ;;  %v925_v23 = vmul.f32 %v924_v7, %v886_v13  ;;  %v3667_v21 = vld [vmem:[#allocation22_spill] sm:$0xff] }
  0xef   :  { %v964_v9 = vmul.f32 %v3019_v62, %v3664_v28  ;;  %v966_v59 = vmul.f32 %v3024_v0, %v3665_v44  ;;  %v929_v61 = vmul.f32 %v928_v2, %v886_v13  ;;  %v933_v38 = vmul.f32 %v932_v56, %v886_v13 }
  0xf0   :  { %1453 = vtanh.f32 %v951_v35  ;;  %v960_v45 = vadd.f32 %v959_v5, %v958_v22  ;;  %v3093_v48 = vadd.f32 %v897_v42, %v2966_v1  ;;  %v3096_v20 = vadd.f32 %v901_v36, %v2969_v54 }
  0xf1   :  { %v965_v57 = vadd.f32 %v964_v9, %v963_v53  ;;  %v968_v49 = vmul.f32 %v3033_v18, %v2594_v37  ;;  %v3101_v62 = vadd.f32 %v905_v41, %v2974_v12  ;;  %v3104_v0 = vadd.f32 %v909_v32, %v2977_v47  ;;  %v3666_v41 = vld [vmem:[#allocation81_spill] sm:$0xff] }
  0xf2   :  { %v3107_v13 = vadd.f32 %v913_v3, %v2980_v26  ;;  %1455 = vtanh.f32 %v960_v45  ;;  %v3112_v1 = vadd.f32 %v917_v8, %v2983_v40  ;;  %v3115_v54 = vadd.f32 %v921_v63, %v2992_v51  ;;  %v3668_v8 = vld [vmem:[#allocation54_spill] sm:$0xff] }
  0xf3   :  { %v3118_v18 = vadd.f32 %v925_v23, %v2995_v27  ;;  %v967_v12 = vadd.f32 %v966_v59, %v965_v57  ;;  %v1452_v47 = vpop.eup %1451  ;;  %v3123_v26 = vadd.f32 %v929_v61, %v2998_v6  ;;  %v3126_v7 = vadd.f32 %v933_v38, %v3001_v31 }
  0xf4   :  { %v988_v40 = vstv %s3069_s20  ;;  %v992_v2 = vstv %s3071_s21  ;;  %v1031_v27 = vmul.f32 %v1452_v47, %v2458_v10  ;;  %v1040_v56 = vmul.f32 %v1452_v47, %v3652_v55  ;;  %s3323_s20 = sld [smem:[#allocation7 + $0x407]] }
  0xf5   :  { %v969_v51 = vadd.f32 %v968_v49, %v967_v12  ;;  %v1049_v14 = vmul.f32 %v1452_v47, %v3653_v25  ;;  %v996_v24 = vstv %s3075_s23  ;;  %v1000_v6 = vstv %s3083_s25  ;;  %v3669_v49 = vld [vmem:[#allocation24_spill] sm:$0xff]  ;;  %s3325_s21 = sld [smem:[#allocation7 + $0x487]] }
  0xf6   :  { %v1454_v19 = vpop.eup %1453  ;;  %v1004_v42 = vstv %s3086_s26  ;;  %v1058_v31 = vmul.f32 %v1452_v47, %v3654_v52  ;;  %v1032_v32 = vadd.f32 %v1031_v27, %v3666_v41  ;;  %v1041_v5 = vadd.f32 %v1040_v56, %v3667_v21  ;;  %s3327_s23 = sld [smem:[#allocation7 + $0x507]] }
  0xf7   :  { %1457 = vtanh.f32 %v969_v51  ;;  %v972_v36 = vrot.slane %v1454_v19, 7  ;;  %v1033_v11 = vmul.f32 %v1454_v19, %v3655_v30  ;;  %v1042_v3 = vmul.f32 %v1454_v19, %v3656_v16  ;;  %s3329_s25 = sld [smem:[#allocation7 + $0x587]] }
  0xf8   :  { %v1456_v34 = vpop.eup %1455  ;;  %v1050_v35 = vadd.f32 %v1049_v14, %v3668_v8  ;;  %v1051_v22 = vmul.f32 %v1454_v19, %v3642_v4  ;;  %v1059_v12 = vadd.f32 %v1058_v31, %v3669_v49  ;;  %v1060_v51 = vmul.f32 %v1454_v19, %v3664_v28 }
  0xf9   :  { %v975_v29 = vrot.slane %v1456_v34, 6  ;;  %v980_v53 = vsel %vm481_vm0, %v1452_v47, %v972_v36  ;;  %v1034_v63 = vadd.f32 %v1033_v11, %v1032_v32  ;;  %v1035_v23 = vmul.f32 %v1456_v34, %v3657_v58 }
  0xfa   :  { %v1043_v9 = vadd.f32 %v1042_v3, %v1041_v5  ;;  %v1044_v59 = vmul.f32 %v1456_v34, %v3658_v50  ;;  %v1052_v61 = vadd.f32 %v1051_v22, %v1050_v35  ;;  %v1053_v38 = vmul.f32 %v1456_v34, %v3643_v17 }
  0xfb   :  { %v981_v45 = vsel %vm483_vm1, %v980_v53, %v975_v29  ;;  %v1036_v57 = vadd.f32 %v1035_v23, %v1034_v63  ;;  %v1008_v47 = vstv %s3109_s29  ;;  %v1062_v14 = vmul.f32 %v1456_v34, %v3665_v44 }
  0xfc   :  { %v1045_v27 = vadd.f32 %v1044_v59, %v1043_v9  ;;  %v1054_v56 = vadd.f32 %v1053_v38, %v1052_v61  ;;  %v1012_v41 = vstv %s3120_s0  ;;  %v1016_v32 = vstv %s3130_s6  ;;  %s3674_s0 = sld [smem:[#allocation88_spill]] }
  0xfd   :  { %v1458_v36 = vpop.eup %1457  ;;  %v1020_v11 = vstv %s3132_s22  ;;  %v1061_v21 = vadd.f32 %v1060_v51, %v1059_v12  ;;  %v1024_v34 = vstv %s3140_s27  ;;  %v1028_v8 = vstv %s3143_s3 }
  0xfe   :  { %v978_v19 = vrot.slane %v1458_v36, 5  ;;  %v1037_v31 = vmul.f32 %v1458_v36, %v3659_v43  ;;  %v1046_v5 = vmul.f32 %v1458_v36, %v3641_v46  ;;  %v1055_v3 = vmul.f32 %v1458_v36, %v3644_v15 }
  0xff   :  { %v1063_v35 = vadd.f32 %v1062_v14, %v1061_v21  ;;  %v1064_v22 = vmul.f32 %v1458_v36, %v2594_v37  ;;  %v1092_v36 = vstv %s3172_s8  ;;  %v1108_v21 = vstv %s3190_s12 }
 0x100   :  { %v982_v29 = vsel %vm485_vm2, %v981_v45, %v978_v19  ;;  %v1038_v53 = vadd.f32 %v1037_v31, %v1036_v57  ;;  %v1047_v63 = vadd.f32 %v1046_v5, %v1045_v27  ;;  %v1056_v23 = vadd.f32 %v1055_v3, %v1054_v56 }
 0x101   :  { %v985_v9 = vmul.f32 %v984_v33, %v982_v29  ;;  %v989_v59 = vmul.f32 %v988_v40, %v982_v29  ;;  %v993_v61 = vmul.f32 %v992_v2, %v982_v29  ;;  %v997_v38 = vmul.f32 %v996_v24, %v982_v29 }
 0x102   :  { %v1001_v49 = vmul.f32 %v1000_v6, %v982_v29  ;;  %v1005_v12 = vmul.f32 %v1004_v42, %v982_v29  ;;  %v1009_v51 = vmul.f32 %v1008_v47, %v982_v29  ;;  %v1013_v14 = vmul.f32 %v1012_v41, %v982_v29 }
 0x103   :  { %v3193_v45 = vadd.f32 %v985_v9, %v3078_v39  ;;  %v3196_v57 = vadd.f32 %v989_v59, %v3081_v60  ;;  %v3199_v33 = vadd.f32 %v993_v61, %v3093_v48  ;;  %v3202_v40 = vadd.f32 %v997_v38, %v3096_v20  ;;  %v3671_v9 = vld [vmem:[#allocation23_spill] sm:$0xff] }
 0x104   :  { %v3207_v2 = vadd.f32 %v1001_v49, %v3101_v62  ;;  %v3210_v24 = vadd.f32 %v1005_v12, %v3104_v0  ;;  %v3213_v39 = vadd.f32 %v1009_v51, %v3107_v13  ;;  %v3216_v60 = vadd.f32 %v1013_v14, %v3112_v1 }
 0x105   :  { %v1017_v48 = vmul.f32 %v1016_v32, %v982_v29  ;;  %v1021_v20 = vmul.f32 %v1020_v11, %v982_v29  ;;  %v1025_v6 = vmul.f32 %v1024_v34, %v982_v29  ;;  %v1029_v62 = vmul.f32 %v1028_v8, %v982_v29 }
 0x106   :  { %1459 = vtanh.f32 %v1038_v53  ;;  %v1065_v0 = vadd.f32 %v1064_v22, %v1063_v35  ;;  %v1080_v27 = vstv %s3158_s30  ;;  %v1084_v56 = vstv %s3162_s7  ;;  %v3670_v53 = vld [vmem:[#allocation82_spill] sm:$0xff] }
 0x107   :  { %v3225_v13 = vadd.f32 %v1017_v48, %v3115_v54  ;;  %v3228_v1 = vadd.f32 %v1021_v20, %v3118_v18  ;;  %v3231_v42 = vadd.f32 %v1025_v6, %v3123_v26  ;;  %v3234_v47 = vadd.f32 %v1029_v62, %v3126_v7  ;;  %v3672_v20 = vld [vmem:[#allocation55_spill] sm:$0xff] }
 0x108   :  { %1461 = vtanh.f32 %v1047_v63  ;;  %v1088_v54 = vstv %s3167_s5  ;;  %v1096_v32 = vstv %s3177_s10  ;;  %v1100_v18 = vstv %s3180_s2 }
 0x109   :  { %1463 = vtanh.f32 %v1056_v23  ;;  %v1104_v11 = vstv %s3188_s11  ;;  %v1112_v19 = vstv %s3204_s28  ;;  %v1116_v26 = vstv %s3218_s13 }
 0x10a   :  { %1465 = vtanh.f32 %v1065_v0  ;;  %v1120_v3 = vstv %s3220_s9  ;;  %v1124_v34 = vstv %s3222_s14 }
 0x10c   :  { %v1460_v41 = vpop.eup %1459 }
 0x10d   :  { %v1127_v31 = vmul.f32 %v1460_v41, %v2458_v10  ;;  %v1136_v7 = vmul.f32 %v1460_v41, %v3652_v55  ;;  %v1145_v8 = vmul.f32 %v1460_v41, %v3653_v25  ;;  %v1154_v35 = vmul.f32 %v1460_v41, %v3654_v52 }
 0x10e   :  { %v1462_v5 = vpop.eup %1461 }
 0x10f   :  { %v1464_v22 = vpop.eup %1463  ;;  %v1068_v29 = vrot.slane %v1462_v5, 7  ;;  %v1128_v63 = vadd.f32 %v1127_v31, %v3670_v53  ;;  %v1129_v23 = vmul.f32 %v1462_v5, %v3655_v30  ;;  %v1137_v59 = vadd.f32 %v1136_v7, %v3671_v9 }
 0x110   :  { %v1466_v61 = vpop.eup %1465  ;;  %v1071_v38 = vrot.slane %v1464_v22, 6  ;;  %v1131_v10 = vmul.f32 %v1464_v22, %v3657_v58  ;;  %v1138_v55 = vmul.f32 %v1462_v5, %v3656_v16  ;;  %v1140_v49 = vmul.f32 %v1464_v22, %v3658_v50 }
 0x111   :  { %v1074_v12 = vrot.slane %v1466_v61, 5  ;;  %v1076_v25 = vsel %vm481_vm0, %v1460_v41, %v1068_v29  ;;  %v1130_v52 = vadd.f32 %v1129_v23, %v1128_v63  ;;  %v1133_v51 = vmul.f32 %v1466_v61, %v3659_v43 }
 0x112   :  { %v1077_v14 = vsel %vm483_vm1, %v1076_v25, %v1071_v38  ;;  %v1139_v48 = vadd.f32 %v1138_v55, %v1137_v59  ;;  %v1142_v30 = vmul.f32 %v1466_v61, %v3641_v46  ;;  %v1146_v6 = vadd.f32 %v1145_v8, %v3672_v20 }
 0x113   :  { %v1078_v62 = vsel %vm485_vm2, %v1077_v14, %v1074_v12  ;;  %v1132_v58 = vadd.f32 %v1131_v10, %v1130_v52  ;;  %v1147_v16 = vmul.f32 %v1462_v5, %v3642_v4  ;;  %v1149_v50 = vmul.f32 %v1464_v22, %v3643_v17 }
 0x114   :  { %v1081_v0 = vmul.f32 %v1080_v27, %v1078_v62  ;;  %v1085_v31 = vmul.f32 %v1084_v56, %v1078_v62  ;;  %v1089_v41 = vmul.f32 %v1088_v54, %v1078_v62  ;;  %v1093_v7 = vmul.f32 %v1092_v36, %v1078_v62 }
 0x115   :  { %v1097_v29 = vmul.f32 %v1096_v32, %v1078_v62  ;;  %v1101_v43 = vmul.f32 %v1100_v18, %v1078_v62  ;;  %v1105_v53 = vmul.f32 %v1104_v11, %v1078_v62  ;;  %v1109_v63 = vmul.f32 %v1108_v21, %v1078_v62 }
 0x116   :  { %v3267_v23 = vadd.f32 %v1081_v0, %v3193_v45  ;;  %v3270_v46 = vadd.f32 %v1085_v31, %v3196_v57  ;;  %v3273_v8 = vadd.f32 %v1089_v41, %v3199_v33  ;;  %v3276_v4 = vadd.f32 %v1093_v7, %v3202_v40 }
 0x117   :  { %v3279_v17 = vadd.f32 %v1097_v29, %v3207_v2  ;;  %v3282_v27 = vadd.f32 %v1101_v43, %v3210_v24  ;;  %v3285_v56 = vadd.f32 %v1105_v53, %v3213_v39  ;;  %v3288_v45 = vadd.f32 %v1109_v63, %v3216_v60 }
 0x118   :  { %v1113_v57 = vmul.f32 %v1112_v19, %v1078_v62  ;;  %v1117_v54 = vmul.f32 %v1116_v26, %v1078_v62  ;;  %v1121_v36 = vmul.f32 %v1120_v3, %v1078_v62  ;;  %v1125_v33 = vmul.f32 %v1124_v34, %v1078_v62  ;;  %v3673_v26 = vld [vmem:[#allocation61_spill] sm:$0xff] }
 0x119   :  { %v1134_v32 = vadd.f32 %v1133_v51, %v1132_v58  ;;  %v1141_v18 = vadd.f32 %v1140_v49, %v1139_v48  ;;  %v1148_v40 = vadd.f32 %v1147_v16, %v1146_v6  ;;  %v1151_v11 = vmul.f32 %v1466_v61, %v3644_v15 }
 0x11a   :  { %v3292_v2 = vadd.f32 %v1113_v57, %v3225_v13  ;;  %v3295_v24 = vadd.f32 %v1117_v54, %v3228_v1  ;;  %v3298_v39 = vadd.f32 %v1121_v36, %v3231_v42  ;;  %v3301_v60 = vadd.f32 %v1125_v33, %v3234_v47 }
 0x11b   :  { %v1143_v21 = vadd.f32 %v1142_v30, %v1141_v18  ;;  %v1150_v19 = vadd.f32 %v1149_v50, %v1148_v40  ;;  %v1155_v3 = vadd.f32 %v1154_v35, %v3673_v26  ;;  %1467 = vtanh.f32 %v1134_v32 }
 0x11c   :  { %v1156_v15 = vmul.f32 %v1462_v5, %v3664_v28  ;;  %v1158_v13 = vmul.f32 %v1464_v22, %v3665_v44  ;;  %v1160_v47 = vmul.f32 %v1466_v61, %v2594_v37  ;;  %v1176_v38 = vstv %s3303_s4 }
 0x11d   :  { %1469 = vtanh.f32 %v1143_v21  ;;  %v1152_v1 = vadd.f32 %v1151_v11, %v1150_v19  ;;  %v1180_v10 = vstv %s3306_s19  ;;  %v1184_v55 = vstv %s3310_s24 }
 0x11e   :  { %v1157_v42 = vadd.f32 %v1156_v15, %v1155_v3  ;;  %v1188_v12 = vstv %s3312_s15  ;;  %v1192_v25 = vstv %s3315_s16  ;;  %v1196_v52 = vstv %s3317_s1 }
 0x11f   :  { %1471 = vtanh.f32 %v1152_v1  ;;  %v1200_v51 = vstv %s3319_s18  ;;  %v1204_v14 = vstv %s3321_s17  ;;  %v1208_v48 = vstv %s3323_s20 }
 0x120   :  { %v1159_v34 = vadd.f32 %v1158_v13, %v1157_v42  ;;  %v1212_v30 = vstv %s3325_s21  ;;  %v1216_v6 = vstv %s3327_s23  ;;  %v1220_v62 = vstv %s3329_s25 }
 0x121   :  { %v1468_v28 = vpop.eup %1467 }
 0x122   :  { %v1161_v44 = vadd.f32 %v1160_v47, %v1159_v34 }
 0x123   :  { %v1470_v5 = vpop.eup %1469 }
 0x124   :  { %1473 = vtanh.f32 %v1161_v44  ;;  %v1164_v37 = vrot.slane %v1470_v5, 7 }
 0x125   :  { %v1472_v35 = vpop.eup %1471 }
 0x126   :  { %v1167_v22 = vrot.slane %v1472_v35, 6  ;;  %v1172_v9 = vsel %vm481_vm0, %v1468_v28, %v1164_v37 }
 0x128   :  { %v1173_v59 = vsel %vm483_vm1, %v1172_v9, %v1167_v22 }
 0x12a   :  { %v1474_v61 = vpop.eup %1473 }
 0x12b   :  { %v1170_v49 = vrot.slane %v1474_v61, 5 }
 0x12d   :  { %v1174_v20 = vsel %vm485_vm2, %v1173_v59, %v1170_v49 }
 0x12e   :  { %v1177_v58 = vmul.f32 %v1176_v38, %v1174_v20  ;;  %v1181_v16 = vmul.f32 %v1180_v10, %v1174_v20  ;;  %v1185_v50 = vmul.f32 %v1184_v55, %v1174_v20  ;;  %v1189_v0 = vmul.f32 %v1188_v12, %v1174_v20 }
 0x12f   :  { %v1193_v31 = vmul.f32 %v1192_v25, %v1174_v20  ;;  %v1197_v41 = vmul.f32 %v1196_v52, %v1174_v20  ;;  %v1201_v7 = vmul.f32 %v1200_v51, %v1174_v20  ;;  %v1205_v29 = vmul.f32 %v1204_v14, %v1174_v20 }
 0x130   :  { %v1178_v43 = vadd.f32 %v1177_v58, %v3267_v23  ;;  %v1182_v53 = vadd.f32 %v1181_v16, %v3270_v46  ;;  %v1186_v63 = vadd.f32 %v1185_v50, %v3273_v8  ;;  %v1190_v57 = vadd.f32 %v1189_v0, %v3276_v4 }
 0x131   :  { %v1194_v54 = vadd.f32 %v1193_v31, %v3279_v17  ;;  %v1198_v36 = vadd.f32 %v1197_v41, %v3282_v27  ;;  %v1202_v33 = vadd.f32 %v1201_v7, %v3285_v56  ;;  %v1206_v32 = vadd.f32 %v1205_v29, %v3288_v45 }
 0x132   :  { %v1209_v18 = vmul.f32 %v1208_v48, %v1174_v20  ;;  %v1213_v40 = vmul.f32 %v1212_v30, %v1174_v20  ;;  %v1217_v11 = vmul.f32 %v1216_v6, %v1174_v20  ;;  %v1221_v21 = vmul.f32 %v1220_v62, %v1174_v20  ;;  %1224 = vst.msk [vmem:[%s3674_s0] sm:$0xf] %vm1223_vm3, %v1178_v43 }
 0x133   :  { %1393 = vst.msk [vmem:[%s3674_s0 + $0x4] sm:$0xf] %vm1223_vm3, %v1182_v53 }
 0x134   :  { %v1210_v23 = vadd.f32 %v1209_v18, %v3292_v2  ;;  %v1214_v46 = vadd.f32 %v1213_v40, %v3295_v24  ;;  %v1218_v8 = vadd.f32 %v1217_v11, %v3298_v39  ;;  %v1222_v4 = vadd.f32 %v1221_v21, %v3301_v60  ;;  %1394 = vst.msk [vmem:[%s3674_s0 + $0x8] sm:$0xf] %vm1223_vm3, %v1186_v63 }
 0x135   :  { %1395 = vst.msk [vmem:[%s3674_s0 + $0xc] sm:$0xf] %vm1223_vm3, %v1190_v57 }
 0x136   :  { %1396 = vst.msk [vmem:[%s3674_s0 + $0x10] sm:$0xf] %vm1223_vm3, %v1194_v54 }
 0x137   :  { %1397 = vst.msk [vmem:[%s3674_s0 + $0x14] sm:$0xf] %vm1223_vm3, %v1198_v36 }
 0x138   :  { %1398 = vst.msk [vmem:[%s3674_s0 + $0x18] sm:$0xf] %vm1223_vm3, %v1202_v33 }
 0x139   :  { %1399 = vst.msk [vmem:[%s3674_s0 + $0x1c] sm:$0xf] %vm1223_vm3, %v1206_v32 }
 0x13a   :  { %1400 = vst.msk [vmem:[%s3674_s0 + $0x20] sm:$0xf] %vm1223_vm3, %v1210_v23 }
 0x13b   :  { %1401 = vst.msk [vmem:[%s3674_s0 + $0x24] sm:$0xf] %vm1223_vm3, %v1214_v46 }
 0x13c   :  { %1402 = vst.msk [vmem:[%s3674_s0 + $0x28] sm:$0xf] %vm1223_vm3, %v1218_v8 }
 0x13d   :  { %1403 = vst.msk [vmem:[%s3674_s0 + $0x2c] sm:$0xf] %vm1223_vm3, %v1222_v4 }
 0x13e   :  { %1251 = vsyncpa [#allocation3], 1 }
 0x13f   :  { %1252 = vsyncpa [#allocation5], 1 }
 0x140   :  { %1253 = vsyncpa [#allocation8], 1 }

</bundles_post_ra>
